<compile_context>
chip_gen: v7x
topology: tpu7x:2x2x1
jax: 0.10.0
libtpu: 0.0.40
codegen_flags: <defaults>
</compile_context>

<pallas_src>
import math
from functools import partial

import jax
import jax.numpy as jnp
from jax.experimental import pallas as pl
from jax.experimental.pallas import tpu as pltpu

FRAMES = 3
H = W = 7
P = H * W                 # 49 pixels
C1, C2 = 16, 20
IN_FLAT = FRAMES * P      # 147  (== row-major NCHW flatten of one sample)
MID_FLAT = C1 * P         # 784
FLAT = C2 * P             # 980  (== nn.Flatten output size, channel-major)
HIDDEN = 256
ACTIONS = 5

DEFAULT_BLOCK_B = 256     # batch tile size (multiple of 8)


def _round_up(x, m):
    return ((x + m - 1) // m) * m


# ---------------------------------------------------------------------------
# Fused kernel: conv1 -> ReLU -> conv2 -> ReLU -> (Flatten) -> fc1 -> ReLU -> fc2
# Four plain 2D MXU matmuls; the Flatten is a no-op because the conv weights
# were expanded per-pixel at init (see prepare_params).  Biases are tiny (1, N)
# VMEM blocks with constant index_map (fetched once, broadcast-added in f32).
# ---------------------------------------------------------------------------
def _qnet_kernel(x_ref, w1_ref, b1_ref, w2_ref, b2_ref,
                 w3_ref, b3_ref, w4_ref, b4_ref, o_ref):
    f32 = jnp.float32
    x = x_ref[...].astype(w1_ref.dtype)                                      # (Bblk, 147)
    h = jnp.dot(x, w1_ref[...], preferred_element_type=f32) + b1_ref[...]    # conv1
    h = jnp.maximum(h, 0.0)
    h = jnp.dot(h.astype(w2_ref.dtype), w2_ref[...],
                preferred_element_type=f32) + b2_ref[...]                    # conv2 -> Flatten order
    h = jnp.maximum(h, 0.0)
    h = jnp.dot(h.astype(w3_ref.dtype), w3_ref[...],
                preferred_element_type=f32) + b3_ref[...]                    # fc1
    h = jnp.maximum(h, 0.0)
    o_ref[...] = jnp.dot(h.astype(w4_ref.dtype), w4_ref[...],
                         preferred_element_type=f32) + b4_ref[...]           # fc2 -> Q-values


def _fused_call(xf, p, block_b):
    b_pad = xf.shape[0]
    nb = b_pad // block_b

    grid_spec = pltpu.PrefetchScalarGridSpec(
        num_scalar_prefetch=0,
        grid=(nb,),
        in_specs=[
            pl.BlockSpec((block_b, IN_FLAT), lambda i: (i, 0)),      # x tile
            pl.BlockSpec((IN_FLAT, MID_FLAT), lambda i: (0, 0)),     # conv1 (expanded), resident
            pl.BlockSpec((1, MID_FLAT), lambda i: (0, 0)),
            pl.BlockSpec((MID_FLAT, FLAT), lambda i: (0, 0)),        # conv2 (expanded), resident
            pl.BlockSpec((1, FLAT), lambda i: (0, 0)),
            pl.BlockSpec((FLAT, HIDDEN), lambda i: (0, 0)),          # fc1, resident
            pl.BlockSpec((1, HIDDEN), lambda i: (0, 0)),
            pl.BlockSpec((HIDDEN, ACTIONS), lambda i: (0, 0)),       # fc2, resident
            pl.BlockSpec((1, ACTIONS), lambda i: (0, 0)),
        ],
        out_specs=pl.BlockSpec((block_b, ACTIONS), lambda i: (i, 0)),
    )

    flops = 2 * b_pad * (IN_FLAT * MID_FLAT + MID_FLAT * FLAT
                         + FLAT * HIDDEN + HIDDEN * ACTIONS)
    weight_bytes = sum(int(v.size) * v.dtype.itemsize for v in p.values())
    bytes_accessed = int(xf.size) * 4 + b_pad * ACTIONS * 4 + weight_bytes

    return pl.pallas_call(
        _qnet_kernel,
        out_shape=jax.ShapeDtypeStruct((b_pad, ACTIONS), jnp.float32),
        grid_spec=grid_spec,
        compiler_params=pltpu.CompilerParams(
            dimension_semantics=("parallel",),        # v7x: split batch over 2 TCs
            vmem_limit_bytes=32 * 1024 * 1024,        # headroom on all of v5e/v6e/v7x
        ),
        cost_estimate=pl.CostEstimate(
            flops=int(flops), transcendentals=0, bytes_accessed=int(bytes_accessed)),
    )(xf, p["w1"], p["b1"], p["w2"], p["b2"],
      p["w3"], p["b3"], p["w4"], p["b4"])


@partial(jax.jit, static_argnames=("block_b",))
def qnetwork_forward(x_nchw, params, block_b=None):
    """x_nchw: (B, 3, 7, 7) float32 (same layout as the PyTorch module)."""
    b = x_nchw.shape[0]
    # NCHW row-major flatten == channel-major (c*49 + p) order: free reshape.
    xf = x_nchw.reshape(b, IN_FLAT)
    if block_b is None:
        block_b = min(DEFAULT_BLOCK_B, _round_up(b, 8))
    assert block_b % 8 == 0, "batch tile must be a multiple of 8 (sublane rule)"
    b_pad = _round_up(b, block_b)
    if b_pad != b:
        # Zero rows are harmless (sliced off below); keeps BlockSpec tiling exact.
        xf = jnp.pad(xf, ((0, b_pad - b), (0, 0)))
    q = _fused_call(xf, params, block_b)
    return q[:b]


# ---------------------------------------------------------------------------
# Parameters.
# init_raw_params: PyTorch-layout weights (conv: (out, in) for the 1x1 kernels,
#   linear: (out, in)).  layer_init would zero the biases; we use small random
#   biases so the self-check actually exercises the kernel's bias path.
# prepare_params: one-time, offline transformation into the fused-kernel layout
#   (per-pixel expanded conv matrices, transposed linears, bf16 matmul weights).
# ---------------------------------------------------------------------------
def init_raw_params(key):
    k1, k2, k3, k4, k5 = jax.random.split(key, 5)
    ortho = jax.nn.initializers.orthogonal(scale=math.sqrt(2.0))
    bscale = 0.05
    return {
        "conv1_w": ortho(k1, (C1, FRAMES), jnp.float32),          # == torch (16, 3, 1, 1)
        "conv1_b": bscale * jax.random.normal(k5, (C1,), jnp.float32),
        "conv2_w": ortho(k2, (C2, C1), jnp.float32),              # == torch (20, 16, 1, 1)
        "conv2_b": bscale * jax.random.normal(k1, (C2,), jnp.float32),
        "fc1_w": ortho(k3, (HIDDEN, FLAT), jnp.float32),          # (256, 980)
        "fc1_b": bscale * jax.random.normal(k2, (HIDDEN,), jnp.float32),
        # last Linear keeps PyTorch default init: U(-1/sqrt(256), 1/sqrt(256))
        "fc2_w": jax.random.uniform(k4, (ACTIONS, HIDDEN), jnp.float32,
                                    minval=-1.0 / 16.0, maxval=1.0 / 16.0),
        "fc2_b": jax.random.uniform(k5, (ACTIONS,), jnp.float32,
                                    minval=-1.0 / 16.0, maxval=1.0 / 16.0),
    }


def prepare_params(raw, matmul_dtype=jnp.bfloat16):
    eye = jnp.eye(P, dtype=jnp.float32)
    w1 = raw["conv1_w"].astype(jnp.float32)     # (16, 3)  [f, c]
    w2 = raw["conv2_w"].astype(jnp.float32)     # (20, 16) [g, f]
    # W1big[c*49+p, f*49+q] = w1[f, c] * (p == q)
    w1_big = jnp.einsum("fc,pq->cpfq", w1, eye).reshape(IN_FLAT, MID_FLAT)
    # W2big[f*49+p, g*49+q] = w2[g, f] * (p == q)  -> output index g*49+q is exactly
    # the nn.Flatten index, so fc1 weights need no permutation.
    w2_big = jnp.einsum("gf,pq->fpgq", w2, eye).reshape(MID_FLAT, FLAT)
    return {
        "w1": w1_big.astype(matmul_dtype),
        "b1": jnp.repeat(raw["conv1_b"], P).reshape(1, MID_FLAT).astype(jnp.float32),
        "w2": w2_big.astype(matmul_dtype),
        "b2": jnp.repeat(raw["conv2_b"], P).reshape(1, FLAT).astype(jnp.float32),
        "w3": raw["fc1_w"].T.astype(matmul_dtype),                 # (980, 256)
        "b3": raw["fc1_b"].reshape(1, HIDDEN).astype(jnp.float32),
        "w4": raw["fc2_w"].T.astype(matmul_dtype),                 # (256, 5)
        "b4": raw["fc2_b"].reshape(1, ACTIONS).astype(jnp.float32),
    }


# ---------------------------------------------------------------------------
# Reference: the straightforward conv/flatten/linear formulation, mirroring the
# kernel's precision (bf16 matmul operands, f32 accumulation / bias / ReLU).
# This validates the block-diagonal expansion and Flatten ordering end-to-end.
# ---------------------------------------------------------------------------
def reference_forward(x_nchw, raw):
    f32, bf16 = jnp.float32, jnp.bfloat16
    b = x_nchw.shape[0]
    w1 = raw["conv1_w"].astype(bf16)            # (16, 3)
    w2 = raw["conv2_w"].astype(bf16)            # (20, 16)
    w3 = raw["fc1_w"].T.astype(bf16)            # (980, 256)
    w4 = raw["fc2_w"].T.astype(bf16)            # (256, 5)
    h = jnp.einsum("fc,bchw->bfhw", w1, x_nchw.astype(bf16), preferred_element_type=f32)
    h = jnp.maximum(h + raw["conv1_b"][None, :, None, None], 0.0)
    h = jnp.einsum("gf,bfhw->bghw", w2, h.astype(bf16), preferred_element_type=f32)
    h = jnp.maximum(h + raw["conv2_b"][None, :, None, None], 0.0)
    z = h.reshape(b, FLAT)                      # torch nn.Flatten: channel-major
    h = jnp.dot(z.astype(bf16), w3, preferred_element_type=f32) + raw["fc1_b"][None, :]
    h = jnp.maximum(h, 0.0)
    return jnp.dot(h.astype(bf16), w4, preferred_element_type=f32) + raw["fc2_b"][None, :]


if __name__ == "__main__":
    key = jax.random.PRNGKey(0)
    kp, kx = jax.random.split(key)
    raw_params = init_raw_params(kp)
    params = prepare_params(raw_params)         # one-time weight prep (bf16, expanded convs)

    B = 20                                      # small batch; NCHW like the torch module
    x = jax.random.normal(kx, (B, FRAMES, H, W), dtype=jnp.float32)

    # block_b=8 -> batch is padded 20->24 and the grid runs 3 batch tiles,
    # exercising the pipelined / weight-resident multi-step path.
    q = qnetwork_forward(x, params, block_b=8)
    q = jax.block_until_ready(q)
    assert q.shape == (B, ACTIONS), q.shape

    q_ref = reference_forward(x, raw_params)
    if not jnp.allclose(q, q_ref, atol=5e-3, rtol=5e-3):
        raise AssertionError(
            f"mismatch vs reference, max abs diff = {float(jnp.max(jnp.abs(q - q_ref)))}")

    print("KERNEL_OK")
</pallas_src>

<mosaic_0001>
module attributes {stable_mosaic.version = 11 : i64} {
  func.func @_qnet_kernel(%arg0: i32, %arg1: memref<8x147xf32, #tpu.memory_space<vmem>>, %arg2: memref<147x784xbf16, #tpu.memory_space<vmem>>, %arg3: memref<1x784xf32, #tpu.memory_space<vmem>>, %arg4: memref<784x980xbf16, #tpu.memory_space<vmem>>, %arg5: memref<1x980xf32, #tpu.memory_space<vmem>>, %arg6: memref<980x256xbf16, #tpu.memory_space<vmem>>, %arg7: memref<1x256xf32, #tpu.memory_space<vmem>>, %arg8: memref<256x5xbf16, #tpu.memory_space<vmem>>, %arg9: memref<1x5xf32, #tpu.memory_space<vmem>>, %arg10: memref<8x5xf32, #tpu.memory_space<vmem>>) attributes {dimension_semantics = [#tpu.dimension_semantics<parallel>], iteration_bounds = array<i64: 3>, scalar_prefetch = 0 : i64, scratch_operands = 0 : i64, tpu.core_type = #tpu.core_type<tc>, window_params = [{transform_indices = @transform_0, window_bounds = array<i64: 8, 147>}, {pipeline_mode = #tpu.pipeline_mode<synchronous>, transform_indices = @transform_1, window_bounds = array<i64: 147, 784>}, {pipeline_mode = #tpu.pipeline_mode<synchronous>, transform_indices = @transform_2, window_bounds = array<i64: 1, 784>}, {pipeline_mode = #tpu.pipeline_mode<synchronous>, transform_indices = @transform_3, window_bounds = array<i64: 784, 980>}, {pipeline_mode = #tpu.pipeline_mode<synchronous>, transform_indices = @transform_4, window_bounds = array<i64: 1, 980>}, {pipeline_mode = #tpu.pipeline_mode<synchronous>, transform_indices = @transform_5, window_bounds = array<i64: 980, 256>}, {pipeline_mode = #tpu.pipeline_mode<synchronous>, transform_indices = @transform_6, window_bounds = array<i64: 1, 256>}, {pipeline_mode = #tpu.pipeline_mode<synchronous>, transform_indices = @transform_7, window_bounds = array<i64: 256, 5>}, {pipeline_mode = #tpu.pipeline_mode<synchronous>, transform_indices = @transform_8, window_bounds = array<i64: 1, 5>}, {transform_indices = @transform_9, window_bounds = array<i64: 8, 5>}]} {
    %c0 = arith.constant 0 : index
    %c0_0 = arith.constant 0 : index
    %0 = vector.load %arg1[%c0, %c0_0] : memref<8x147xf32, #tpu.memory_space<vmem>>, vector<8x147xf32>
    %1 = arith.truncf %0 : vector<8x147xf32> to vector<8x147xbf16>
    %c0_1 = arith.constant 0 : index
    %c0_2 = arith.constant 0 : index
    %2 = vector.load %arg2[%c0_1, %c0_2] : memref<147x784xbf16, #tpu.memory_space<vmem>>, vector<147x784xbf16>
    %cst = arith.constant dense<0.000000e+00> : vector<8x784xf32>
    %3 = tpu.matmul %1, %2, %cst {dimension_numbers = #tpu.dot_dimension_numbers<[1], [0], [0], [1], [0, 0, 1, 1], [], []>} : vector<8x147xbf16>, vector<147x784xbf16>, vector<8x784xf32> -> vector<8x784xf32>
    %c0_3 = arith.constant 0 : index
    %c0_4 = arith.constant 0 : index
    %4 = vector.load %arg3[%c0_3, %c0_4] : memref<1x784xf32, #tpu.memory_space<vmem>>, vector<1x784xf32>
    %5 = vector.broadcast %4 : vector<1x784xf32> to vector<8x784xf32>
    %6 = arith.addf %3, %5 : vector<8x784xf32>
    %cst_5 = arith.constant 0.000000e+00 : f32
    %7 = vector.broadcast %cst_5 : f32 to vector<8x784xf32>
    %8 = arith.maximumf %6, %7 : vector<8x784xf32>
    %9 = arith.truncf %8 : vector<8x784xf32> to vector<8x784xbf16>
    %c0_6 = arith.constant 0 : index
    %c0_7 = arith.constant 0 : index
    %10 = vector.load %arg4[%c0_6, %c0_7] : memref<784x980xbf16, #tpu.memory_space<vmem>>, vector<784x980xbf16>
    %cst_8 = arith.constant dense<0.000000e+00> : vector<8x980xf32>
    %11 = tpu.matmul %9, %10, %cst_8 {dimension_numbers = #tpu.dot_dimension_numbers<[1], [0], [0], [1], [0, 0, 1, 1], [], []>} : vector<8x784xbf16>, vector<784x980xbf16>, vector<8x980xf32> -> vector<8x980xf32>
    %c0_9 = arith.constant 0 : index
    %c0_10 = arith.constant 0 : index
    %12 = vector.load %arg5[%c0_9, %c0_10] : memref<1x980xf32, #tpu.memory_space<vmem>>, vector<1x980xf32>
    %13 = vector.broadcast %12 : vector<1x980xf32> to vector<8x980xf32>
    %14 = arith.addf %11, %13 : vector<8x980xf32>
    %cst_11 = arith.constant 0.000000e+00 : f32
    %15 = vector.broadcast %cst_11 : f32 to vector<8x980xf32>
    %16 = arith.maximumf %14, %15 : vector<8x980xf32>
    %17 = arith.truncf %16 : vector<8x980xf32> to vector<8x980xbf16>
    %c0_12 = arith.constant 0 : index
    %c0_13 = arith.constant 0 : index
    %18 = vector.load %arg6[%c0_12, %c0_13] : memref<980x256xbf16, #tpu.memory_space<vmem>>, vector<980x256xbf16>
    %cst_14 = arith.constant dense<0.000000e+00> : vector<8x256xf32>
    %19 = tpu.matmul %17, %18, %cst_14 {dimension_numbers = #tpu.dot_dimension_numbers<[1], [0], [0], [1], [0, 0, 1, 1], [], []>} : vector<8x980xbf16>, vector<980x256xbf16>, vector<8x256xf32> -> vector<8x256xf32>
    %c0_15 = arith.constant 0 : index
    %c0_16 = arith.constant 0 : index
    %20 = vector.load %arg7[%c0_15, %c0_16] : memref<1x256xf32, #tpu.memory_space<vmem>>, vector<1x256xf32>
    %21 = vector.broadcast %20 : vector<1x256xf32> to vector<8x256xf32>
    %22 = arith.addf %19, %21 : vector<8x256xf32>
    %cst_17 = arith.constant 0.000000e+00 : f32
    %23 = vector.broadcast %cst_17 : f32 to vector<8x256xf32>
    %24 = arith.maximumf %22, %23 : vector<8x256xf32>
    %25 = arith.truncf %24 : vector<8x256xf32> to vector<8x256xbf16>
    %c0_18 = arith.constant 0 : index
    %c0_19 = arith.constant 0 : index
    %26 = vector.load %arg8[%c0_18, %c0_19] : memref<256x5xbf16, #tpu.memory_space<vmem>>, vector<256x5xbf16>
    %cst_20 = arith.constant dense<0.000000e+00> : vector<8x5xf32>
    %27 = tpu.matmul %25, %26, %cst_20 {dimension_numbers = #tpu.dot_dimension_numbers<[1], [0], [0], [1], [0, 0, 1, 1], [], []>} : vector<8x256xbf16>, vector<256x5xbf16>, vector<8x5xf32> -> vector<8x5xf32>
    %c0_21 = arith.constant 0 : index
    %c0_22 = arith.constant 0 : index
    %28 = vector.load %arg9[%c0_21, %c0_22] : memref<1x5xf32, #tpu.memory_space<vmem>>, vector<1x5xf32>
    %29 = vector.broadcast %28 : vector<1x5xf32> to vector<8x5xf32>
    %30 = arith.addf %27, %29 : vector<8x5xf32>
    %c0_23 = arith.constant 0 : index
    %c0_24 = arith.constant 0 : index
    %31 = vector.load %arg10[%c0_23, %c0_24] : memref<8x5xf32, #tpu.memory_space<vmem>>, vector<8x5xf32>
    tpu.vector_store %arg10[%c0_23, %c0_24], %30 {strides = array<i32>} : memref<8x5xf32, #tpu.memory_space<vmem>>, vector<8x5xf32>,
    return
  }
  func.func @transform_0(%arg0: i32) -> (i32, i32) {
    %c0_i32 = arith.constant 0 : i32
    %c0_i32_0 = arith.constant 0 : i32
    return %arg0, %c0_i32 : i32, i32
  }
  func.func @transform_1(%arg0: i32) -> (i32, i32) {
    %c0_i32 = arith.constant 0 : i32
    %c0_i32_0 = arith.constant 0 : i32
    %c0_i32_1 = arith.constant 0 : i32
    return %c0_i32, %c0_i32_0 : i32, i32
  }
  func.func @transform_2(%arg0: i32) -> (i32, i32) {
    %c0_i32 = arith.constant 0 : i32
    %c0_i32_0 = arith.constant 0 : i32
    %c0_i32_1 = arith.constant 0 : i32
    return %c0_i32, %c0_i32_0 : i32, i32
  }
  func.func @transform_3(%arg0: i32) -> (i32, i32) {
    %c0_i32 = arith.constant 0 : i32
    %c0_i32_0 = arith.constant 0 : i32
    %c0_i32_1 = arith.constant 0 : i32
    return %c0_i32, %c0_i32_0 : i32, i32
  }
  func.func @transform_4(%arg0: i32) -> (i32, i32) {
    %c0_i32 = arith.constant 0 : i32
    %c0_i32_0 = arith.constant 0 : i32
    %c0_i32_1 = arith.constant 0 : i32
    return %c0_i32, %c0_i32_0 : i32, i32
  }
  func.func @transform_5(%arg0: i32) -> (i32, i32) {
    %c0_i32 = arith.constant 0 : i32
    %c0_i32_0 = arith.constant 0 : i32
    %c0_i32_1 = arith.constant 0 : i32
    return %c0_i32, %c0_i32_0 : i32, i32
  }
  func.func @transform_6(%arg0: i32) -> (i32, i32) {
    %c0_i32 = arith.constant 0 : i32
    %c0_i32_0 = arith.constant 0 : i32
    %c0_i32_1 = arith.constant 0 : i32
    return %c0_i32, %c0_i32_0 : i32, i32
  }
  func.func @transform_7(%arg0: i32) -> (i32, i32) {
    %c0_i32 = arith.constant 0 : i32
    %c0_i32_0 = arith.constant 0 : i32
    %c0_i32_1 = arith.constant 0 : i32
    return %c0_i32, %c0_i32_0 : i32, i32
  }
  func.func @transform_8(%arg0: i32) -> (i32, i32) {
    %c0_i32 = arith.constant 0 : i32
    %c0_i32_0 = arith.constant 0 : i32
    %c0_i32_1 = arith.constant 0 : i32
    return %c0_i32, %c0_i32_0 : i32, i32
  }
  func.func @transform_9(%arg0: i32) -> (i32, i32) {
    %c0_i32 = arith.constant 0 : i32
    %c0_i32_0 = arith.constant 0 : i32
    return %arg0, %c0_i32 : i32, i32
  }
}

</mosaic_0001>

<bundles_post_ra>
// kernel: qnetwork_forward.1
= control target key start
LH: loop header
LB: loop body
LE: loop exit
PB: predicated region body
PF: predicated region fallthrough
CT: control target
= control target key end

     0   :  { %14 = vsyncpa [#allocation3], 0  ;;  %s7239_s0 = inlined_call_operand.vmem [shape: f32[24,147], index: 0, kind: input, shape index: {}]   ;;  %s7240_s1 = inlined_call_operand.hbm [shape: bf16[147,784], index: 1, kind: input, shape index: {}]   ;;  %s7241_s2 = inlined_call_operand.hbm [shape: f32[1,784], index: 2, kind: input, shape index: {}]   ;;  %s7242_s3 = inlined_call_operand.hbm [shape: bf16[784,980], index: 3, kind: input, shape index: {}]   ;;  %s7243_s4 = inlined_call_operand.hbm [shape: f32[1,980], index: 4, kind: input, shape index: {}]   ;;  %s7244_s5 = inlined_call_operand.hbm [shape: bf16[980,256], index: 5, kind: input, shape index: {}]   ;;  %s7245_s6 = inlined_call_operand.hbm [shape: f32[1,256], index: 6, kind: input, shape index: {}]   ;;  %s7246_s7 = inlined_call_operand.vmem [shape: bf16[256,5], index: 7, kind: input, shape index: {}]   ;;  %s7247_s8 = inlined_call_operand.hbm [shape: f32[1,5], index: 8, kind: input, shape index: {}]   ;;  %s7248_s9 = inlined_call_operand.vmem [shape: f32[24,5], index: 9, kind: output, shape index: {}]  }
   0x1   :  { %15 = vsyncpa [#allocation5], 0 }
   0x2   :  { %16 = vsyncpa [#allocation8], 0 }
   0x3   :  { %17 = vsyncpa [#allocation11], 0  ;;  %s6786_s30 = smov 0  }
   0x4 LB: > { %s6721_s10 = smov [#allocation4]   ;;  %s6792_s12 = sadd.s32 4294967295, %s6719_s30   ;;  %s6719_s30 = sphi %s6786_s30, %s23_s30  }
   0x5   : > { %s274_s11 = sshll.u32 %s6721_s10, 4  ;;  %p5390_p0 = scmp.ge.s32.totalorder %s6719_s30, 1  ;;  %s6797_s11 = int_to_ptr.vmem [resolvable:$true] %s274_s11 }
   0x6   : > { %p248_p1 = scmp.lt.s32.totalorder %s6719_s30, 4  ;;  %p7249_p2 = scmp.eq.s32.totalorder %s6792_s12, 0 }
   0x7   : > { %s6722_s14 = smov [#allocation7]   ;;  %s6723_s16 = smov [#allocation10]  }
   0x8   : > { %p6799_p3 = pnand %p5390_p0, %p248_p1  ;;  %s298_s15 = sshll.u32 %s6722_s14, 4  ;;  %s6805_s15 = int_to_ptr.vmem [resolvable:$true] %s298_s15 }
   0x9   : > { %s322_s17 = sshll.u32 %s6723_s16, 4  ;;  %s6724_s19 = smov [#allocation2]   ;;  %s6813_s17 = int_to_ptr.vmem [resolvable:$true] %s322_s17 }
   0xa   : > { %s7251_s13 = scalar_select %p6799_p3, 1, 0 }
   0xb   : > { %p6144_p4 = pneg %p6799_p3  ;;  %s260_s20 = sshll.u32 %s6724_s19, 4  ;;  %s6815_s20 = int_to_ptr.vmem [resolvable:$true] %s260_s20 }
   0xc   : > { %s6501_s23 = scalar_lea.hbm %s7241_s2, 112 }
   0xd   : > { %p6809_p5 = pnand %p7249_p2, %p6144_p4  ;;  %p6502_p6 = scmp.ne.s32.totalorder %s7241_s2, %s6501_s23 }
   0xe   : > { %p6508_p10 = scmp.lt.u32.totalorder %s6501_s23, %s7241_s2 }
   0xf   : > { %p6825_p7 = pneg %p6809_p5 }
  0x11   : > { %p6504_p8 = pnand %p6825_p7, %p6502_p6 }
  0x13   : > { %p6505_p9 = pneg %p6504_p8 }
  0x15   : > { %p6510_p11 = pnand %p6508_p10, %p6505_p9 }
  0x17   : > { %6513 = shalt.err (!%p6510_p11)
}
  0x18   : > { %s6514_s29 = scalar_lea.vmem %s6797_s11, 112  ;;  %s6521_s10 = scalar_lea.vmem %s6797_s11, 128 }
  0x19   : > { %p6515_p12 = scmp.ne.s32.totalorder %s6797_s11, %s6514_s29  ;;  %p6522_p1 = scmp.lt.s32.totalorder %s6797_s11, %s6797_s11 }
  0x1a   : > { %p6523_p4 = scmp.lt.s32.totalorder %s6521_s10, %s6514_s29 }
  0x1b   : > { %p6517_p13 = pnand %p6515_p12, %p6825_p7 }
  0x1c   : > { %p6524_p6 = por %p6523_p4, %p6522_p1 }
  0x1d   : > { %p6518_p0 = pneg %p6517_p13 }
  0x1f   : > { %p6525_p8 = pnand %p6524_p6, %p6518_p0 }
  0x21   : > { %6528 = shalt.err (!%p6525_p8)
}
  0x22   : > { %6150 = dma.hbm_to_vmem [thread:$0]  (!%p6809_p5), %s7241_s2, 112, %s6797_s11, [#allocation5]  }
  0x23   : > { %s6529_s22 = scalar_lea.hbm %s7243_s4, 128 }
  0x24   : > { %p6530_p9 = scmp.ne.s32.totalorder %s7243_s4, %s6529_s22  ;;  %p6536_p12 = scmp.lt.u32.totalorder %s6529_s22, %s7243_s4 }
  0x26   : > { %p6532_p10 = pnand %p6530_p9, %p6825_p7 }
  0x28   : > { %p6533_p11 = pneg %p6532_p10 }
  0x2a   : > { %p6538_p13 = pnand %p6536_p12, %p6533_p11 }
  0x2c   : > { %6541 = shalt.err (!%p6538_p13)
}
  0x2d   : > { %s6542_s11 = scalar_lea.vmem %s6805_s15, 128  ;;  %p6550_p6 = scmp.lt.s32.totalorder %s6805_s15, %s6805_s15 }
  0x2e   : > { %p6543_p0 = scmp.ne.s32.totalorder %s6805_s15, %s6542_s11  ;;  %p6551_p8 = scmp.lt.s32.totalorder %s6542_s11, %s6542_s11 }
  0x30   : > { %p6545_p1 = pnand %p6543_p0, %p6825_p7  ;;  %p6552_p9 = por %p6551_p8, %p6550_p6 }
  0x32   : > { %p6546_p4 = pneg %p6545_p1 }
  0x34   : > { %p6553_p10 = pnand %p6552_p9, %p6546_p4 }
  0x36   : > { %6556 = shalt.err (!%p6553_p10)
}
  0x37   : > { %6156 = dma.hbm_to_vmem [thread:$0]  (!%p6809_p5), %s7243_s4, 128, %s6805_s15, [#allocation8]  }
  0x38   : > { %s6557_s16 = scalar_lea.hbm %s7245_s6, 32 }
  0x39   : > { %p6558_p11 = scmp.ne.s32.totalorder %s7245_s6, %s6557_s16  ;;  %p6564_p0 = scmp.lt.u32.totalorder %s6557_s16, %s7245_s6 }
  0x3b   : > { %p6560_p12 = pnand %p6558_p11, %p6825_p7 }
  0x3d   : > { %p6561_p13 = pneg %p6560_p12 }
  0x3f   : > { %p6566_p1 = pnand %p6564_p0, %p6561_p13 }
  0x41   : > { %6569 = shalt.err (!%p6566_p1)
}
  0x42   : > { %s6570_s15 = scalar_lea.vmem %s6813_s17, 32  ;;  %p6578_p9 = scmp.lt.s32.totalorder %s6813_s17, %s6813_s17 }
  0x43   : > { %p6571_p4 = scmp.ne.s32.totalorder %s6813_s17, %s6570_s15  ;;  %p6579_p10 = scmp.lt.s32.totalorder %s6570_s15, %s6570_s15 }
  0x45   : > { %p6573_p6 = pnand %p6571_p4, %p6825_p7  ;;  %p6580_p11 = por %p6579_p10, %p6578_p9 }
  0x47   : > { %p6574_p8 = pneg %p6573_p6 }
  0x49   : > { %p6581_p12 = pnand %p6580_p11, %p6574_p8 }
  0x4b   : > { %6584 = shalt.err (!%p6581_p12)
}
  0x4c   : > { %6162 = dma.hbm_to_vmem [thread:$0]  (!%p6809_p5), %s7245_s6, 32, %s6813_s17, [#allocation11]  }
  0x4d   : > { %s6585_s28 = scalar_lea.hbm %s7240_s1, 8512 }
  0x4e   : > { %p6586_p13 = scmp.ne.s32.totalorder %s7240_s1, %s6585_s28  ;;  %p6592_p4 = scmp.lt.u32.totalorder %s6585_s28, %s7240_s1 }
  0x50   : > { %p6588_p0 = pnand %p6586_p13, %p6825_p7 }
  0x52   : > { %p6589_p1 = pneg %p6588_p0 }
  0x54   : > { %p6594_p6 = pnand %p6592_p4, %p6589_p1 }
  0x56   : > { %6597 = shalt.err (!%p6594_p6)
}
  0x57   : > { %s6598_s17 = scalar_lea.vmem %s6815_s20, 8512  ;;  %p6606_p11 = scmp.lt.s32.totalorder %s6815_s20, %s6815_s20 }
  0x58   : > { %p6599_p8 = scmp.ne.s32.totalorder %s6815_s20, %s6598_s17  ;;  %p6607_p12 = scmp.lt.s32.totalorder %s6598_s17, %s6598_s17 }
  0x5a   : > { %p6601_p9 = pnand %p6599_p8, %p6825_p7  ;;  %p6608_p13 = por %p6607_p12, %p6606_p11 }
  0x5c   : > { %p6602_p10 = pneg %p6601_p9 }
  0x5e   : > { %p6609_p0 = pnand %p6608_p13, %p6602_p10 }
  0x60   : > { %6612 = shalt.err (!%p6609_p0)
}
  0x61   : > { %s6725_s19 = smov 448   ;;  %s6726_s21 = smov 28  }
  0x62   : > { %6147 = dma.hbm_to_vmem [thread:$0]  (!%p6809_p5), %s7240_s1, 8512, %s6815_s20, [#allocation3], %s6725_s19, %s6725_s19, %s6726_s21  }
  0x63   : > { %s6727_s15 = smov [#allocation6]   ;;  %s6613_s11 = scalar_lea.hbm %s7242_s3, 50176 }
  0x64   : > { %s284_s24 = sshll.u32 %s6727_s15, 4  ;;  %p6614_p1 = scmp.ne.s32.totalorder %s7242_s3, %s6613_s11  ;;  %s285_s24 = int_to_ptr.vmem [resolvable:$true] %s284_s24 }
  0x65   : > { %p6620_p8 = scmp.lt.u32.totalorder %s6613_s11, %s7242_s3 }
  0x66   : > { %p6616_p4 = pnand %p6614_p1, %p6825_p7 }
  0x68   : > { %p6617_p6 = pneg %p6616_p4 }
  0x6a   : > { %p6622_p9 = pnand %p6620_p8, %p6617_p6 }
  0x6c   : > { %6625 = shalt.err (!%p6622_p9)
}
  0x6d   : > { %s6626_s20 = scalar_lea.vmem %s285_s24, 50176  ;;  %p6634_p13 = scmp.lt.s32.totalorder %s285_s24, %s285_s24 }
  0x6e   : > { %p6627_p10 = scmp.ne.s32.totalorder %s285_s24, %s6626_s20  ;;  %p6635_p0 = scmp.lt.s32.totalorder %s6626_s20, %s6626_s20 }
  0x70   : > { %p6629_p11 = pnand %p6627_p10, %p6825_p7  ;;  %p6636_p2 = por %p6635_p0, %p6634_p13 }
  0x72   : > { %p6630_p12 = pneg %p6629_p11 }
  0x74   : > { %p6637_p3 = pnand %p6636_p2, %p6630_p12 }
  0x76   : > { %6640 = shalt.err (!%p6637_p3)
}
  0x77   : > { %s6728_s16 = smov 512   ;;  %s6729_s17 = smov 32  }
  0x78   : > { %6153 = dma.hbm_to_vmem [thread:$0]  (!%p6809_p5), %s7242_s3, 50176, %s285_s24, [#allocation5], %s6728_s16, %s6728_s16, %s6729_s17  }
  0x79   : > { %s6730_s22 = smov [#allocation9]   ;;  %s6641_s27 = scalar_lea.hbm %s7244_s5, 15744 }
  0x7a   : > { %s308_s23 = sshll.u32 %s6730_s22, 4  ;;  %p6642_p2 = scmp.ne.s32.totalorder %s7244_s5, %s6641_s27  ;;  %s309_s23 = int_to_ptr.vmem [resolvable:$true] %s308_s23 }
  0x7b   : > { %p6648_p4 = scmp.lt.u32.totalorder %s6641_s27, %s7244_s5 }
  0x7c   : > { %p6644_p3 = pnand %p6642_p2, %p6825_p7 }
  0x7e   : > { %p6645_p1 = pneg %p6644_p3 }
  0x80   : > { %p6650_p6 = pnand %p6648_p4, %p6645_p1 }
  0x82   : > { %6653 = shalt.err (!%p6650_p6)
}
  0x83   : > { %s6654_s24 = scalar_lea.vmem %s309_s23, 15744  ;;  %p6662_p11 = scmp.lt.s32.totalorder %s309_s23, %s309_s23 }
  0x84   : > { %p6655_p8 = scmp.ne.s32.totalorder %s309_s23, %s6654_s24  ;;  %p6663_p12 = scmp.lt.s32.totalorder %s6654_s24, %s6654_s24 }
  0x86   : > { %p6657_p9 = pnand %p6655_p8, %p6825_p7  ;;  %p6664_p13 = por %p6663_p12, %p6662_p11 }
  0x88   : > { %p6658_p10 = pneg %p6657_p9 }
  0x8a   : > { %p6665_p0 = pnand %p6664_p13, %p6658_p10 }
  0x8c   : > { %6668 = shalt.err (!%p6665_p0)
}
  0x8d   : > { %s6731_s14 = smov 128   ;;  %s6732_s20 = smov 8  }
  0x8e   : > { %6159 = dma.hbm_to_vmem [thread:$0]  (!%p6809_p5), %s7244_s5, 15744, %s309_s23, [#allocation8], %s6731_s14, %s6731_s14, %s6732_s20  }
  0x8f   : > { %s6733_s19 = smov [#allocation12]   ;;  %s6669_s25 = scalar_lea.hbm %s7247_s8, 16 }
  0x90   : > { %s336_s21 = sshll.u32 %s6733_s19, 4  ;;  %p6670_p2 = scmp.ne.s32.totalorder %s7247_s8, %s6669_s25  ;;  %s337_s21 = int_to_ptr.vmem [resolvable:$true] %s336_s21 }
  0x91   : > { %p6676_p4 = scmp.lt.u32.totalorder %s6669_s25, %s7247_s8 }
  0x92   : > { %p6672_p3 = pnand %p6670_p2, %p6825_p7 }
  0x94   : > { %p6673_p1 = pneg %p6672_p3 }
  0x96   : > { %p6678_p6 = pnand %p6676_p4, %p6673_p1 }
  0x98   : > { %6681 = shalt.err (!%p6678_p6)
}
  0x99   : > { %s6682_s23 = scalar_lea.vmem %s337_s21, 16  ;;  %s6689_s10 = scalar_lea.vmem %s337_s21, 32 }
  0x9a   : > { %p6683_p8 = scmp.ne.s32.totalorder %s337_s21, %s6682_s23  ;;  %p6690_p11 = scmp.lt.s32.totalorder %s337_s21, %s337_s21 }
  0x9b   : > { %p6691_p12 = scmp.lt.s32.totalorder %s6689_s10, %s6682_s23 }
  0x9c   : > { %p6685_p9 = pnand %p6683_p8, %p6825_p7 }
  0x9d   : > { %p6692_p13 = por %p6691_p12, %p6690_p11 }
  0x9e   : > { %p6686_p10 = pneg %p6685_p9 }
  0xa0   : > { %p6693_p0 = pnand %p6692_p13, %p6686_p10 }
  0xa2   : > { %6696 = shalt.err (!%p6693_p0)
}
  0xa3   : > { %6165 = dma.hbm_to_vmem [thread:$0]  (!%p6809_p5), %s7247_s8, 16, %s337_s21, [#allocation11]  }
  0xa4   : > { %p7254_p2 = scmp.ne.s32.totalorder %s7251_s13, 0 }
  0xa5   : > { %p7255_p3 = scmp.eq.s32.totalorder (!%p7254_p2), %s6792_s12, 0 }
  0xa6   : > { %357 = sbr.rel (%p7254_p2) target bundleno = 1511 (0x5e7), region = 56 }
  0xad   : > { %6702 = dma.done.wait (%p7255_p3), [#allocation3], 8512   ;;  %p7256_p7 = pmov %p7255_p3 }
  0xae   : > { %p7257_p1 = pmov %p7255_p3 }
  0xaf   : > { %6704 = vsyncadd (%p7256_p7), [#allocation3], 4294958784 }
  0xb0   : > { %6706 = dma.done.wait (%p7257_p1), [#allocation5], 50288   ;;  %p7258_p4 = pmov %p7257_p1 }
  0xb1   : > { %p7259_p6 = pmov %p7257_p1 }
  0xb2   : > { %6708 = vsyncadd (%p7258_p4), [#allocation5], 4294917008 }
  0xb3   : > { %6710 = dma.done.wait (%p7259_p6), [#allocation8], 15872   ;;  %p7260_p5 = pmov %p7257_p1 }
  0xb4   : > { %p7261_p8 = pmov %p7257_p1 }
  0xb5   : > { %6712 = vsyncadd (%p7260_p5), [#allocation8], 4294951424 }
  0xb6   : > { %6714 = dma.done.wait (%p7261_p8), [#allocation11], 48   ;;  %p7262_p9 = pmov %p7257_p1 }
  0xb7   : > { %p416_p10 = scmp.lt.s32.totalorder %s6792_s12, 2  ;;  %v6203_v0 = vld [vmem:[#allocation2 + $0x4] ss:$28 sps:$4 sm:$0xff]   ;;  %v6206_v2 = vld [vmem:[#allocation2 + $0x3c] ss:$28 sps:$4 sm:$0xff]   ;;  %vm885_vm0 = vcmask 154624  }
  0xb8   : > { %6716 = vsyncadd (%p7262_p9), [#allocation11], 4294967248  ;;  %v6205_v1 = vld [vmem:[#allocation2] ss:$28 sps:$4 sm:$0xff]   ;;  %914 = vmatprep.subr.bf16.mxu1 %v6203_v0  ;;  %v6208_v3 = vld [vmem:[#allocation2 + $0x38] ss:$28 sps:$4 sm:$0xff]  }
  0xb9   : > { %s7264_s12 = smov (!%p416_p10, %s6792_s12), 2  ;;  %915 = vmatpush1.bf16.msra.mxu1 %v6205_v1  ;;  %v6209_v4 = vld [vmem:[#allocation2 + $0x74] ss:$28 sps:$4 sm:$0xff]   ;;  %v6212_v6 = vld [vmem:[#allocation2 + $0xac] ss:$28 sps:$4 sm:$0xff]   ;;  %vm889_vm1 = vcmask 1040384  }
  0xba   : > { %916 = vmatprep.subr.bf16.mxu1 %v6206_v2  ;;  %s6025_s13 = sshll.u32 %s7264_s12, 4  ;;  %v6211_v5 = vld [vmem:[#allocation2 + $0x70] ss:$28 sps:$4 sm:$0xff]   ;;  %v6214_v7 = vld [vmem:[#allocation2 + $0xa8] ss:$28 sps:$4 sm:$0xff]   ;;  %vm890_vm2 = vcmask 1041408  }
  0xbb   : > { %s6996_s20 = scalar_lea.vmem %s7239_s0, %s6025_s13  ;;  %v6215_v8 = vld [vmem:[#allocation2 + $0xe4] ss:$28 sps:$4 sm:$0xff]   ;;  %v6218_v12 = vld [vmem:[#allocation2 + $0x11c] ss:$28 sps:$4 sm:$0xff]   ;;  %v6221_v14 = vld [vmem:[#allocation2 + $0x154] ss:$28 sps:$4 sm:$0xff]  }
  0xbc   : > { %v427_v9 = vld [vmem:[%s6996_s20 + $0x8] sm:$0xff]  ;;  %v6217_v11 = vld [vmem:[#allocation2 + $0xe0] ss:$28 sps:$4 sm:$0xff]   ;;  %v6220_v13 = vld [vmem:[#allocation2 + $0x118] ss:$28 sps:$4 sm:$0xff]   ;;  %v6734_v18 = vmov 65535  }
  0xbd   : > { %917 = vmatpush1.bf16.msra.mxu1 %v6208_v3  ;;  %v6999_v10 = vpack.c.bf16 %v427_v9, %v427_v9  ;;  %v6223_v15 = vld [vmem:[#allocation2 + $0x150] ss:$28 sps:$4 sm:$0xff]   ;;  %v502_v17 = vld [vmem:[#allocation2 + $0x1f8] sm:$0x33]  ;;  %v891_v19 = vsel %vm889_vm1, 4294967295, %v6734_v18  ;;  %v426_v35 = vld [vmem:[%s6996_s20] sm:$0xff] }
  0xbe   : > { %918 = vmatprep.subr.bf16.mxu1 %v6209_v4  ;;  %v6224_v16 = vld [vmem:[#allocation2 + $0x18c] ss:$28 sps:$4 sm:$0xff]   ;;  %v6261_v20 = vld [vmem:[#allocation2 + $0x14] ss:$28 sps:$4 sm:$0xff]   ;;  %v6227_v24 = vld [vmem:[#allocation2 + $0x1c4] ss:$28 sps:$4 sm:$0xff]   ;;  %v5474_v25 = vcombine.high %v502_v17, %v502_v17  ;;  %v5473_v30 = vcombine.low %v502_v17, %v502_v17  ;;  %v7011_v38 = vpack.c.bf16 %v426_v35, %v426_v35 }
  0xbf   : > { %5480 = vmatprep.mubr.msk.bf16.mxu1 %vm885_vm0, %v6999_v10  ;;  %5482 = vmatprep.mubr.msk.bf16.mxu0 %vm885_vm0, %v6999_v10  ;;  %v6263_v21 = vld [vmem:[#allocation2 + $0x10] ss:$28 sps:$4 sm:$0xff]   ;;  %v6226_v22 = vld [vmem:[#allocation2 + $0x188] ss:$28 sps:$4 sm:$0xff]   ;;  %v7006_v26 = vsel %vm890_vm2, %v891_v19, 0  ;;  %v1219_v1 = vld [vmem:[#allocation6 + $0x400] sm:$0xff] }
  0xc0   : > { %v6264_v23 = vld [vmem:[#allocation2 + $0x4c] ss:$28 sps:$4 sm:$0xff]   ;;  %996 = vmatprep.subr.bf16.mxu0 %v6261_v20  ;;  %v6267_v28 = vld [vmem:[#allocation2 + $0x84] ss:$28 sps:$4 sm:$0xff]   ;;  %v897_v31 = vand.u32 %v5474_v25, %v7006_v26  ;;  %v6270_v33 = vld [vmem:[#allocation2 + $0xbc] ss:$28 sps:$4 sm:$0xff]   ;;  %v894_v34 = vand.u32 %v5473_v30, %v7006_v26 }
  0xc1   : > { %919 = vmatpush1.bf16.msra.mxu1 %v6211_v5  ;;  %997 = vmatpush1.bf16.msra.mxu0 %v6263_v21  ;;  %v6266_v27 = vld [vmem:[#allocation2 + $0x48] ss:$28 sps:$4 sm:$0xff]   ;;  %v6229_v29 = vld [vmem:[#allocation2 + $0x1c0] ss:$28 sps:$4 sm:$0xff]   ;;  %v6272_v37 = vld [vmem:[#allocation2 + $0xb8] ss:$28 sps:$4 sm:$0xff]  }
  0xc2   : > { %920 = vmatprep.subr.bf16.mxu1 %v6212_v6  ;;  %998 = vmatprep.subr.bf16.mxu0 %v6264_v23  ;;  %v6269_v32 = vld [vmem:[#allocation2 + $0x80] ss:$28 sps:$4 sm:$0xff]   ;;  %v6234_v36 = vld [vmem:[#allocation2 + $0xc] ss:$28 sps:$4 sm:$0xff]   ;;  %v6274_v39 = vld [vmem:[#allocation2 + $0xf4] ss:$28 sps:$4 sm:$0xff]  }
  0xc3   : > { %v6232_v40 = vld [vmem:[#allocation2 + $0x8] ss:$28 sps:$4 sm:$0xff]   ;;  %v6276_v42 = vld [vmem:[#allocation2 + $0xf0] ss:$28 sps:$4 sm:$0xff]   ;;  %v6235_v44 = vld [vmem:[#allocation2 + $0x40] ss:$28 sps:$4 sm:$0xff]  }
  0xc4   : > { %v6237_v41 = vld [vmem:[#allocation2 + $0x44] ss:$28 sps:$4 sm:$0xff]   ;;  %v6278_v43 = vld [vmem:[#allocation2 + $0x12c] ss:$28 sps:$4 sm:$0xff]   ;;  %v6240_v45 = vld [vmem:[#allocation2 + $0x7c] ss:$28 sps:$4 sm:$0xff]  }
  0xc5   : > { %921 = vmatpush1.bf16.msra.mxu1 %v6214_v7  ;;  %999 = vmatpush1.bf16.msra.mxu0 %v6266_v27  ;;  %v6280_v46 = vld [vmem:[#allocation2 + $0x128] ss:$28 sps:$4 sm:$0xff]   ;;  %v6238_v48 = vld [vmem:[#allocation2 + $0x78] ss:$28 sps:$4 sm:$0xff]   ;;  %v6284_v50 = vld [vmem:[#allocation2 + $0x160] ss:$28 sps:$4 sm:$0xff]  }
  0xc6   : > { %922 = vmatprep.subr.bf16.mxu1 %v6215_v8  ;;  %1000 = vmatprep.subr.bf16.mxu0 %v6267_v28  ;;  %v6282_v47 = vld [vmem:[#allocation2 + $0x164] ss:$28 sps:$4 sm:$0xff]   ;;  %v6243_v49 = vld [vmem:[#allocation2 + $0xb4] ss:$28 sps:$4 sm:$0xff]   ;;  %v6286_v51 = vld [vmem:[#allocation2 + $0x19c] ss:$28 sps:$4 sm:$0xff]  }
  0xc7   : > { %v6241_v52 = vld [vmem:[#allocation2 + $0xb0] ss:$28 sps:$4 sm:$0xff]   ;;  %v6288_v55 = vld [vmem:[#allocation2 + $0x198] ss:$28 sps:$4 sm:$0xff]   ;;  %v6244_v58 = vld [vmem:[#allocation2 + $0xe8] ss:$28 sps:$4 sm:$0xff]  }
  0xc8   : > { %v504_v53 = vld [vmem:[#allocation2 + $0x208] sm:$0x33]  ;;  %v6290_v56 = vld [vmem:[#allocation2 + $0x1d4] ss:$28 sps:$4 sm:$0xff]   ;;  %v6249_v59 = vld [vmem:[#allocation2 + $0x124] ss:$28 sps:$4 sm:$0xff]  }
  0xc9   : > { %923 = vmatpush1.bf16.msra.mxu1 %v6217_v11  ;;  %1001 = vmatpush1.bf16.msra.mxu0 %v6269_v32  ;;  %v6246_v54 = vld [vmem:[#allocation2 + $0xec] ss:$28 sps:$4 sm:$0xff]   ;;  %v5478_v57 = vcombine.high %v504_v53, %v504_v53  ;;  %v5477_v61 = vcombine.low %v504_v53, %v504_v53  ;;  %v6247_v62 = vld [vmem:[#allocation2 + $0x120] ss:$28 sps:$4 sm:$0xff]   ;;  %v6250_v3 = vld [vmem:[#allocation2 + $0x158] ss:$28 sps:$4 sm:$0xff]  }
  0xca   : > { %924 = vmatprep.subr.bf16.mxu1 %v6218_v12  ;;  %1002 = vmatprep.subr.bf16.mxu0 %v6270_v33  ;;  %v6292_v60 = vld [vmem:[#allocation2 + $0x1d0] ss:$28 sps:$4 sm:$0xff]   ;;  %v6252_v63 = vld [vmem:[#allocation2 + $0x15c] ss:$28 sps:$4 sm:$0xff]   ;;  %v503_v9 = vld [vmem:[#allocation2 + $0x200] sm:$0x33] }
  0xcb   : > { %v909_v0 = vand.u32 %v5478_v57, %v7006_v26  ;;  %v1223_v2 = vld [vmem:[#allocation6 + $0x420] sm:$0xff]  ;;  %v906_v4 = vand.u32 %v5477_v61, %v7006_v26  ;;  %v6255_v7 = vld [vmem:[#allocation2 + $0x194] ss:$28 sps:$4 sm:$0xff]   ;;  %v5476_v17 = vcombine.high %v503_v9, %v503_v9  ;;  %v6256_v18 = vld [vmem:[#allocation2 + $0x1c8] ss:$28 sps:$4 sm:$0xff]   ;;  %v5475_v23 = vcombine.low %v503_v9, %v503_v9  ;;  %s5409_s24 = sshll.u32 %s7264_s12, 3 }
  0xcc   : > { %v1227_v5 = vld [vmem:[#allocation6 + $0x440] sm:$0xff]  ;;  %v5613_v8 = vcombine.high %v1219_v1, %v1223_v2  ;;  %v6253_v11 = vld [vmem:[#allocation2 + $0x190] ss:$28 sps:$4 sm:$0xff]   ;;  %v5612_v12 = vcombine.low %v1219_v1, %v1223_v2  ;;  %v6281_v33 = vld [vmem:[#allocation2 + $0x88] ss:$28 sps:$4 sm:$0xff]   ;;  %vm3485_vm3 = vcmask 130048   ;;  %s424_s18 = scalar_lea.vmem %s7248_s9, %s5409_s24 }
  0xcd   : > { %925 = vmatpush1.bf16.msra.mxu1 %v6220_v13  ;;  %1003 = vmatpush1.bf16.msra.mxu0 %v6272_v37  ;;  %v1231_v6 = vld [vmem:[#allocation6 + $0x460] sm:$0xff]  ;;  %v900_v28 = vand.u32 %v5475_v23, %v7006_v26  ;;  %v6277_v32 = vld [vmem:[#allocation2 + $0x50] ss:$28 sps:$4 sm:$0xff]   ;;  %v6289_v35 = vld [vmem:[#allocation2 + $0xf8] ss:$28 sps:$4 sm:$0xff]   ;;  %vm4911_vm4 = vcmask 687104  }
  0xce   : > { %926 = vmatprep.subr.bf16.mxu1 %v6221_v14  ;;  %1004 = vmatprep.subr.bf16.mxu0 %v6274_v39  ;;  %v1235_v13 = vld [vmem:[#allocation6 + $0x480] sm:$0xff]  ;;  %v5620_v19 = vcombine.low %v1227_v5, %v1231_v6  ;;  %v6296_v37 = vld [vmem:[#allocation2 + $0x168] ss:$28 sps:$4 sm:$0xff]   ;;  %v6298_v39 = vld [vmem:[#allocation2 + $0x1d8] ss:$28 sps:$4 sm:$0xff]   ;;  %vm5264_vm5 = vcmask 39936  }
  0xcf   : > { %v1239_v14 = vld [vmem:[#allocation6 + $0x4a0] sm:$0xff] }
  0xd0   : > { %v1243_v20 = vld [vmem:[#allocation6 + $0x4c0] sm:$0xff]  ;;  %v5628_v25 = vcombine.low %v1235_v13, %v1239_v14 }
  0xd1   : > { %927 = vmatpush1.bf16.msra.mxu1 %v6223_v15  ;;  %1005 = vmatpush1.bf16.msra.mxu0 %v6276_v42  ;;  %v6258_v15 = vld [vmem:[#allocation2 + $0x1cc] ss:$28 sps:$4 sm:$0xff]   ;;  %v1247_v21 = vld [vmem:[#allocation6 + $0x4e0] sm:$0xff] }
  0xd2   : > { %928 = vmatprep.subr.bf16.mxu1 %v6224_v16  ;;  %1006 = vmatprep.subr.bf16.mxu0 %v6278_v43  ;;  %v5621_v16 = vcombine.high %v1227_v5, %v1231_v6  ;;  %v5637_v27 = vcombine.high %v1243_v20, %v1247_v21  ;;  %v5636_v30 = vcombine.low %v1243_v20, %v1247_v21  ;;  %v1095_v42 = vld [vmem:[#allocation6 + $0x20] sm:$0xff]  ;;  %v7038_v6 = vld [vmem:[#allocation6 + $0x28] sm:$0xff] }
  0xd3   : > { %v1255_v53 = vld [vmem:[#allocation6 + $0x520] sm:$0xff] }
  0xd4   : > { %v1119_v57 = vld [vmem:[#allocation6 + $0xe0] sm:$0xff] }
  0xd5   : > { %929 = vmatpush1.bf16.msra.mxu1 %v6226_v22  ;;  %1007 = vmatpush1.bf16.msra.mxu0 %v6280_v46  ;;  %v5629_v22 = vcombine.high %v1235_v13, %v1239_v14  ;;  %v1103_v46 = vld [vmem:[#allocation6 + $0x60] sm:$0xff] }
  0xd6   : > { %930 = vmatprep.subr.bf16.mxu1 %v6227_v24  ;;  %1008 = vmatprep.subr.bf16.mxu0 %v6282_v47  ;;  %v903_v24 = vand.u32 %v5476_v17, %v7006_v26  ;;  %v1267_v1 = vld [vmem:[#allocation6 + $0x580] sm:$0xff] }
  0xd7   : > { %v1271_v2 = vld [vmem:[#allocation6 + $0x5a0] sm:$0xff] }
  0xd8   : > { %v5661_v5 = vcombine.high %v1267_v1, %v1271_v2  ;;  %v1275_v14 = vld [vmem:[#allocation6 + $0x5c0] sm:$0xff] }
  0xd9   : > { %931 = vmatpush1.bf16.msra.mxu1 %v6229_v29  ;;  %1009 = vmatpush1.bf16.msra.mxu0 %v6284_v50  ;;  %v6273_v29 = vld [vmem:[#allocation2 + $0x18] ss:$28 sps:$4 sm:$0xff]   ;;  %v1111_v50 = vld [vmem:[#allocation6 + $0xa0] sm:$0xff] }
  0xda   : > { %932 = vmatprep.subr.bf16.mxu1 %v897_v31  ;;  %1010 = vmatprep.subr.bf16.mxu0 %v6286_v51  ;;  %v6735_v31 = vmov 0   ;;  %v1251_v51 = vld [vmem:[#allocation6 + $0x500] sm:$0xff] }
  0xdb   : > { %v1143_v20 = vld [vmem:[#allocation6 + $0x1a0] sm:$0xff] }
  0xdc   : > { %v1287_v23 = vld [vmem:[#allocation6 + $0x620] sm:$0xff] }
  0xdd   : > { %933 = vmatpush1.bf16.msra.mxu1 %v894_v34  ;;  %1011 = vmatpush1.bf16.msra.mxu0 %v6288_v55  ;;  %v6285_v34 = vld [vmem:[#allocation2 + $0xc0] ss:$28 sps:$4 sm:$0xff]   ;;  %v5645_v55 = vcombine.high %v1251_v51, %v1255_v53 }
  0xde   : > { %955 = vmatprep.subr.bf16.mxu1 %v6234_v36  ;;  %1012 = vmatprep.subr.bf16.mxu0 %v6290_v56  ;;  %v6293_v36 = vld [vmem:[#allocation2 + $0x130] ss:$28 sps:$4 sm:$0xff]   ;;  %v1115_v56 = vld [vmem:[#allocation6 + $0xc0] sm:$0xff] }
  0xdf   : > { %v5509_v61 = vcombine.high %v1115_v56, %v1119_v57 }
  0xe0   : > { %947 = vmatmul.mubr.bf16.vlgmr.msra.gmra.mrb[0].mxu1 %v7011_v38 }
  0xe1   : > { %956 = vmatpush1.bf16.msra.mxu1 %v6232_v40  ;;  %5481 = vmatprep.mubr.msk.bf16.mxu1 %vm885_vm0, %v6999_v10  ;;  %v6299_v40 = vld [vmem:[#allocation2 + $0x210] ss:$0 sps:$4 sm:$0x33]  }
  0xe2   : > { %957 = vmatprep.subr.bf16.mxu1 %v6237_v41  ;;  %1013 = vmatpush1.bf16.msra.mxu0 %v6292_v60  ;;  %v1091_v41 = vld [vmem:[#allocation6] sm:$0xff]  ;;  %v912_v43 = vand.u32 %v6299_v40, %v7006_v26  ;;  %v5644_v26 = vcombine.low %v1251_v51, %v1255_v53 }
  0xe3   : > { %1014 = vmatprep.subr.bf16.mxu0 %v909_v0  ;;  %v5484_v47 = vcombine.low %v1091_v41, %v1095_v42  ;;  %v1263_v60 = vld [vmem:[#allocation6 + $0x560] sm:$0xff] }
  0xe4   : > { %v1127_v0 = vld [vmem:[#allocation6 + $0x120] sm:$0xff] }
  0xe5   : > { %958 = vmatpush1.bf16.msra.mxu1 %v6235_v44  ;;  %v5485_v44 = vcombine.high %v1091_v41, %v1095_v42  ;;  %v1299_v40 = vld [vmem:[#allocation6 + $0x680] sm:$0xff] }
  0xe6   : > { %959 = vmatprep.subr.bf16.mxu1 %v6240_v45  ;;  %1015 = vmatpush1.bf16.msra.mxu0 %v906_v4  ;;  %v1099_v45 = vld [vmem:[#allocation6 + $0x40] sm:$0xff]  ;;  %v5508_v4 = vcombine.low %v1115_v56, %v1119_v57 }
  0xe7   : > { %3530 = vmatprep.subr.bf16.mxu0 %v5613_v8  ;;  %v5660_v8 = vcombine.low %v1267_v1, %v1271_v2  ;;  %v1303_v41 = vld [vmem:[#allocation6 + $0x6a0] sm:$0xff] }
  0xe8   : > { %v1171_v53 = vld [vmem:[#allocation6 + $0x280] sm:$0xff] }
  0xe9   : > { %960 = vmatpush1.bf16.msra.mxu1 %v6238_v48  ;;  %1029 = vmatmul.mubr.bf16.vlgmr.msra.gmra.mrb[0].mxu0 %v7011_v38  ;;  %v5493_v48 = vcombine.high %v1099_v45, %v1103_v46  ;;  %v1319_v56 = vld [vmem:[#allocation6 + $0x720] sm:$0xff] }
  0xea   : > { %961 = vmatprep.subr.bf16.mxu1 %v6243_v49  ;;  %3531 = vmatpush1.bf16.msra.mxu0 %v5612_v12  ;;  %v1107_v49 = vld [vmem:[#allocation6 + $0x80] sm:$0xff] }
  0xeb   : > { %3532 = vmatprep.subr.bf16.mxu0 %v5621_v16  ;;  %v1135_v12 = vld [vmem:[#allocation6 + $0x160] sm:$0xff] }
  0xed   : > { %962 = vmatpush1.bf16.msra.mxu1 %v6241_v52  ;;  %v5492_v52 = vcombine.low %v1099_v45, %v1103_v46  ;;  %v1163_v45 = vld [vmem:[#allocation6 + $0x240] sm:$0xff] }
  0xee   : > { %963 = vmatprep.subr.bf16.mxu1 %v6246_v54  ;;  %3533 = vmatpush1.bf16.msra.mxu0 %v5620_v19  ;;  %v5501_v54 = vcombine.high %v1107_v49, %v1111_v50  ;;  %v1139_v19 = vld [vmem:[#allocation6 + $0x180] sm:$0xff] }
  0xef   : > { %3534 = vmatprep.subr.bf16.mxu0 %v5629_v22  ;;  %v1283_v22 = vld [vmem:[#allocation6 + $0x600] sm:$0xff] }
  0xf0   : > { %v1167_v46 = vld [vmem:[#allocation6 + $0x260] sm:$0xff] }
  0xf1   : > { %964 = vmatpush1.bf16.msra.mxu1 %v6244_v58  ;;  %v1259_v58 = vld [vmem:[#allocation6 + $0x540] sm:$0xff] }
  0xf2   : > { %965 = vmatprep.subr.bf16.mxu1 %v6249_v59  ;;  %3535 = vmatpush1.bf16.msra.mxu0 %v5628_v25  ;;  %v5500_v59 = vcombine.low %v1107_v49, %v1111_v50  ;;  %v5676_v25 = vcombine.low %v1283_v22, %v1287_v23  ;;  %v1311_v49 = vld [vmem:[#allocation6 + $0x6e0] sm:$0xff]  ;;  %v5557_v50 = vcombine.high %v1163_v45, %v1167_v46 }
  0xf3   : > { %3536 = vmatprep.subr.bf16.mxu0 %v5637_v27  ;;  %v5677_v27 = vcombine.high %v1283_v22, %v1287_v23  ;;  %v1203_v22 = vld [vmem:[#allocation6 + $0x380] sm:$0xff] }
  0xf4   : > { %v1207_v23 = vld [vmem:[#allocation6 + $0x3a0] sm:$0xff] }
  0xf5   : > { %966 = vmatpush1.bf16.msra.mxu1 %v6247_v62  ;;  %v5652_v62 = vcombine.low %v1259_v58, %v1263_v60 }
  0xf6   : > { %967 = vmatprep.subr.bf16.mxu1 %v6252_v63  ;;  %3537 = vmatpush1.bf16.msra.mxu0 %v5636_v30  ;;  %v1123_v63 = vld [vmem:[#allocation6 + $0x100] sm:$0xff]  ;;  %v5532_v30 = vcombine.low %v1139_v19, %v1143_v20 }
  0xf7   : > { %3538 = vmatprep.subr.bf16.mxu0 %v5645_v55  ;;  %v5516_v13 = vcombine.low %v1123_v63, %v1127_v0  ;;  %v1315_v55 = vld [vmem:[#allocation6 + $0x700] sm:$0xff] }
  0xf9   : > { %968 = vmatpush1.bf16.msra.mxu1 %v6250_v3  ;;  %v7036_v3 = vld [vmem:[#allocation6 + $0x8] sm:$0xff] }
  0xfa   : > { %969 = vmatprep.subr.bf16.mxu1 %v6255_v7  ;;  %3539 = vmatpush1.bf16.msra.mxu0 %v5644_v26  ;;  %v5517_v7 = vcombine.high %v1123_v63, %v1127_v0  ;;  %v5486_v9 = vcombine.low %v7036_v3, %v7038_v6  ;;  %v5556_v26 = vcombine.low %v1163_v45, %v1167_v46  ;;  %v1327_v63 = vld [vmem:[#allocation6 + $0x760] sm:$0xff] }
  0xfd   : > { %970 = vmatpush1.bf16.msra.mxu1 %v6253_v11  ;;  %v1131_v11 = vld [vmem:[#allocation6 + $0x140] sm:$0xff] }
  0xfe   : > { %971 = vmatprep.subr.bf16.mxu1 %v6258_v15  ;;  %v1279_v15 = vld [vmem:[#allocation6 + $0x5e0] sm:$0xff]  ;;  %v5525_v16 = vcombine.high %v1131_v11, %v1135_v12  ;;  %v5524_v21 = vcombine.low %v1131_v11, %v1135_v12 }
  0xff   : > { %v5668_v17 = vcombine.low %v1275_v14, %v1279_v15  ;;  %v1335_v11 = vld [vmem:[#allocation6 + $0x7a0] sm:$0xff] }
 0x101   : > { %972 = vmatpush1.bf16.msra.mxu1 %v6256_v18  ;;  %v5669_v18 = vcombine.high %v1275_v14, %v1279_v15  ;;  %v1195_v14 = vld [vmem:[#allocation6 + $0x340] sm:$0xff] }
 0x102   : > { %973 = vmatprep.subr.bf16.mxu1 %v903_v24  ;;  %v5533_v24 = vcombine.high %v1139_v19, %v1143_v20  ;;  %v1199_v15 = vld [vmem:[#allocation6 + $0x360] sm:$0xff] }
 0x103   : > { %v1343_v19 = vld [vmem:[#allocation6 + $0x7e0] sm:$0xff]  ;;  %v5589_v20 = vcombine.high %v1195_v14, %v1199_v15 }
 0x105   : > { %974 = vmatpush1.bf16.msra.mxu1 %v900_v28  ;;  %v1147_v28 = vld [vmem:[#allocation6 + $0x1c0] sm:$0xff] }
 0x106   : > { %1037 = vmatprep.subr.bf16.mxu1 %v6735_v31 }
 0x108   : > { %988 = vmatmul.mubr.bf16.vlgmr.msra.gmra.mrb[4].mxu1 %v7011_v38 }
 0x109   : > { %1038 = vmatpush1.bf16.msra.mxu1 %v6273_v29  ;;  %5483 = vmatprep.mubr.msk.bf16.mxu1 %vm885_vm0, %v6999_v10  ;;  %v6297_v10 = vld [vmem:[#allocation2 + $0x1a0] ss:$28 sps:$4 sm:$0xff]  }
 0x10a   : > { %1039 = vmatprep.subr.bf16.mxu1 %v6735_v31  ;;  %v1151_v29 = vld [vmem:[#allocation6 + $0x1e0] sm:$0xff] }
 0x10d   : > { %1040 = vmatpush1.bf16.msra.mxu1 %v6277_v32  ;;  %v1291_v32 = vld [vmem:[#allocation6 + $0x640] sm:$0xff] }
 0x10e   : > { %1041 = vmatprep.subr.bf16.mxu1 %v6735_v31 }
 0x111   : > { %1042 = vmatpush1.bf16.msra.mxu1 %v6281_v33  ;;  %v1295_v33 = vld [vmem:[#allocation6 + $0x660] sm:$0xff] }
 0x112   : > { %1043 = vmatprep.subr.bf16.mxu1 %v6735_v31 }
 0x115   : > { %1044 = vmatpush1.bf16.msra.mxu1 %v6285_v34  ;;  %v5541_v34 = vcombine.high %v1147_v28, %v1151_v29 }
 0x116   : > { %1045 = vmatprep.subr.bf16.mxu1 %v6735_v31 }
 0x119   : > { %1046 = vmatpush1.bf16.msra.mxu1 %v6289_v35  ;;  %v5684_v35 = vcombine.low %v1291_v32, %v1295_v33 }
 0x11a   : > { %1047 = vmatprep.subr.bf16.mxu1 %v6735_v31 }
 0x11d   : > { %1048 = vmatpush1.bf16.msra.mxu1 %v6293_v36  ;;  %v5685_v36 = vcombine.high %v1291_v32, %v1295_v33  ;;  %v1211_v32 = vld [vmem:[#allocation6 + $0x3c0] sm:$0xff] }
 0x11e   : > { %1049 = vmatprep.subr.bf16.mxu1 %v6735_v31  ;;  %v1215_v33 = vld [vmem:[#allocation6 + $0x3e0] sm:$0xff] }
 0x121   : > { %1050 = vmatpush1.bf16.msra.mxu1 %v6296_v37  ;;  %v1155_v37 = vld [vmem:[#allocation6 + $0x200] sm:$0xff] }
 0x122   : > { %1051 = vmatprep.subr.bf16.mxu1 %v6735_v31 }
 0x125   : > { %1052 = vmatpush1.bf16.msra.mxu1 %v6297_v10  ;;  %v1159_v10 = vld [vmem:[#allocation6 + $0x220] sm:$0xff] }
 0x126   : > { %1053 = vmatprep.subr.bf16.mxu1 %v6735_v31  ;;  %v5549_v42 = vcombine.high %v1155_v37, %v1159_v10 }
 0x129   : > { %1054 = vmatpush1.bf16.msra.mxu1 %v6298_v39  ;;  %v5540_v39 = vcombine.low %v1147_v28, %v1151_v29  ;;  %v7044_v28 = vld [vmem:[#allocation6 + $0x820] sm:$0xff]  ;;  %v5597_v29 = vcombine.high %v1203_v22, %v1207_v23 }
 0x12a   : > { %1055 = vmatprep.subr.bf16.mxu1 %v6735_v31 }
 0x12d   : > { %1056 = vmatpush1.bf16.msra.mxu1 %v912_v43  ;;  %v5692_v43 = vcombine.low %v1299_v40, %v1303_v41 }
 0x12e   : > { %3489 = vmatprep.subr.bf16.mxu1 %v5485_v44  ;;  %v5693_v44 = vcombine.high %v1299_v40, %v1303_v41 }
 0x130   : > { %1070 = vmatmul.mubr.bf16.vlgmr.msra.gmra.mrb[8].mxu1 %v7011_v38  ;;  %v5653_v38 = vcombine.high %v1259_v58, %v1263_v60  ;;  %v5708_v58 = vcombine.low %v1315_v55, %v1319_v56  ;;  %v1179_v60 = vld [vmem:[#allocation6 + $0x2c0] sm:$0xff] }
 0x131   : > { %3490 = vmatpush1.bf16.msra.mxu1 %v5484_v47  ;;  %v5548_v47 = vcombine.low %v1155_v37, %v1159_v10  ;;  %v5604_v37 = vcombine.low %v1211_v32, %v1215_v33  ;;  %v5487_v10 = vcombine.high %v7036_v3, %v7038_v6  ;;  %v1136_v3 = vld [vmem:[#allocation6 + $0x168] sm:$0xff] }
 0x132   : > { %3491 = vmatprep.subr.bf16.mxu1 %v5493_v48  ;;  %3540 = vmatprep.subr.bf16.mxu0 %v5653_v38  ;;  %v1307_v48 = vld [vmem:[#allocation6 + $0x6c0] sm:$0xff] }
 0x133   : > { %3541 = vmatpush1.bf16.msra.mxu0 %v5652_v62  ;;  %v5700_v51 = vcombine.low %v1307_v48, %v1311_v49  ;;  %v1323_v38 = vld [vmem:[#allocation6 + $0x740] sm:$0xff] }
 0x134   : > { %3542 = vmatprep.subr.bf16.mxu0 %v5661_v5  ;;  %v5716_v1 = vcombine.low %v1323_v38, %v1327_v63  ;;  %v5717_v2 = vcombine.high %v1323_v38, %v1327_v63  ;;  %v1191_v5 = vld [vmem:[#allocation6 + $0x320] sm:$0xff]  ;;  %v1120_v38 = vld [vmem:[#allocation6 + $0xe8] sm:$0xff] }
 0x135   : > { %3492 = vmatpush1.bf16.msra.mxu1 %v5492_v52  ;;  %v5701_v52 = vcombine.high %v1307_v48, %v1311_v49 }
 0x136   : > { %3493 = vmatprep.subr.bf16.mxu1 %v5501_v54  ;;  %v1175_v54 = vld [vmem:[#allocation6 + $0x2a0] sm:$0xff] }
 0x137   : > { %3543 = vmatpush1.bf16.msra.mxu0 %v5660_v8  ;;  %v5565_v57 = vcombine.high %v1171_v53, %v1175_v54  ;;  %v5564_v62 = vcombine.low %v1171_v53, %v1175_v54  ;;  %v1331_v8 = vld [vmem:[#allocation6 + $0x780] sm:$0xff]  ;;  %v1100_v54 = vld [vmem:[#allocation6 + $0x48] sm:$0xff] }
 0x138   : > { %3544 = vmatprep.subr.bf16.mxu0 %v5669_v18  ;;  %v1339_v18 = vld [vmem:[#allocation6 + $0x7c0] sm:$0xff] }
 0x139   : > { %3494 = vmatpush1.bf16.msra.mxu1 %v5500_v59  ;;  %v5709_v59 = vcombine.high %v1315_v55, %v1319_v56 }
 0x13a   : > { %3495 = vmatprep.subr.bf16.mxu1 %v5509_v61  ;;  %v1183_v61 = vld [vmem:[#allocation6 + $0x2e0] sm:$0xff] }
 0x13b   : > { %3545 = vmatpush1.bf16.msra.mxu0 %v5668_v17  ;;  %v5573_v0 = vcombine.high %v1179_v60, %v1183_v61 }
 0x13c   : > { %3546 = vmatprep.subr.bf16.mxu0 %v5677_v27  ;;  %v7042_v27 = vld [vmem:[#allocation6 + $0x800] sm:$0xff] }
 0x13d   : > { %3496 = vmatpush1.bf16.msra.mxu1 %v5508_v4  ;;  %v1187_v4 = vld [vmem:[#allocation6 + $0x300] sm:$0xff] }
 0x13e   : > { %3497 = vmatprep.subr.bf16.mxu1 %v5517_v7  ;;  %v5572_v7 = vcombine.low %v1179_v60, %v1183_v61  ;;  %v5581_v12 = vcombine.high %v1187_v4, %v1191_v5  ;;  %v5580_v17 = vcombine.low %v1187_v4, %v1191_v5 }
 0x13f   : > { %3547 = vmatpush1.bf16.msra.mxu0 %v5676_v25  ;;  %v5588_v25 = vcombine.low %v1195_v14, %v1199_v15 }
 0x140   : > { %3548 = vmatprep.subr.bf16.mxu0 %v5685_v36  ;;  %v5605_v36 = vcombine.high %v1211_v32, %v1215_v33  ;;  %v1164_v33 = vld [vmem:[#allocation6 + $0x248] sm:$0xff] }
 0x141   : > { %3498 = vmatpush1.bf16.msra.mxu1 %v5516_v13  ;;  %v5725_v13 = vcombine.high %v1331_v8, %v1335_v11 }
 0x142   : > { %3499 = vmatprep.subr.bf16.mxu1 %v5525_v16  ;;  %v5724_v16 = vcombine.low %v1331_v8, %v1335_v11  ;;  %v1140_v8 = vld [vmem:[#allocation6 + $0x188] sm:$0xff] }
 0x143   : > { %3549 = vmatpush1.bf16.msra.mxu0 %v5684_v35  ;;  %v5596_v35 = vcombine.low %v1203_v22, %v1207_v23  ;;  %v1144_v11 = vld [vmem:[#allocation6 + $0x1a8] sm:$0xff] }
 0x144   : > { %3550 = vmatprep.subr.bf16.mxu0 %v5693_v44  ;;  %v5535_v14 = vcombine.high %v1140_v8, %v1144_v11  ;;  %v1156_v22 = vld [vmem:[#allocation6 + $0x208] sm:$0xff] }
 0x145   : > { %3500 = vmatpush1.bf16.msra.mxu1 %v5524_v21  ;;  %v5733_v21 = vcombine.high %v1339_v18, %v1343_v19  ;;  %v1160_v23 = vld [vmem:[#allocation6 + $0x228] sm:$0xff] }
 0x146   : > { %3501 = vmatprep.subr.bf16.mxu1 %v5533_v24  ;;  %v5732_v24 = vcombine.low %v1339_v18, %v1343_v19  ;;  %v5551_v32 = vcombine.high %v1156_v22, %v1160_v23 }
 0x147   : > { %3551 = vmatpush1.bf16.msra.mxu0 %v5692_v43 }
 0x148   : > { %3552 = vmatprep.subr.bf16.mxu0 %v5701_v52 }
 0x149   : > { %3502 = vmatpush1.bf16.msra.mxu1 %v5532_v30  ;;  %v5741_v30 = vcombine.high %v7042_v27, %v7044_v28 }
 0x14a   : > { %3503 = vmatprep.subr.bf16.mxu1 %v5541_v34  ;;  %v5740_v34 = vcombine.low %v7042_v27, %v7044_v28 }
 0x14b   : > { %3553 = vmatpush1.bf16.msra.mxu0 %v5700_v51 }
 0x14c   : > { %3554 = vmatprep.subr.bf16.mxu0 %v5709_v59  ;;  %v1112_v59 = vld [vmem:[#allocation6 + $0xa8] sm:$0xff] }
 0x14d   : > { %3504 = vmatpush1.bf16.msra.mxu1 %v5540_v39  ;;  %v508_v39 = vlaneseq }
 0x14e   : > { %3505 = vmatprep.subr.bf16.mxu1 %v5549_v42  ;;  %v7057_v42 = vld [vmem:[#allocation4] sm:$0x7f] }
 0x14f   : > { %3555 = vmatpush1.bf16.msra.mxu0 %v5708_v58  ;;  %v7052_v40 = vshrl.u32 %v508_v39, 7  ;;  %v1108_v58 = vld [vmem:[#allocation6 + $0x88] sm:$0xff] }
 0x150   : > { %3556 = vmatprep.subr.bf16.mxu0 %v5717_v2  ;;  %v5503_v61 = vcombine.high %v1108_v58, %v1112_v59  ;;  %v5502_v63 = vcombine.low %v1108_v58, %v1112_v59  ;;  %v1128_v2 = vld [vmem:[#allocation6 + $0x128] sm:$0xff] }
 0x151   : > { %3506 = vmatpush1.bf16.msra.mxu1 %v5548_v47  ;;  %v7055_v41 = vsub.s32 0, %v7052_v40  ;;  %v7060_v43 = vsub.s32 1, %v7052_v40 }
 0x152   : > { %3507 = vmatprep.subr.bf16.mxu1 %v5557_v50 }
 0x153   : > { %3557 = vmatpush1.bf16.msra.mxu0 %v5716_v1  ;;  %v511_v44 = vrot.slane %v7057_v42, %v7055_v41  ;;  %v515_v45 = vrot.slane %v7057_v42, %v7060_v43  ;;  %v1124_v1 = vld [vmem:[#allocation6 + $0x108] sm:$0xff] }
 0x154   : > { %3558 = vmatprep.subr.bf16.mxu0 %v5725_v13  ;;  %v5519_v5 = vcombine.high %v1124_v1, %v1128_v2  ;;  %v5518_v6 = vcombine.low %v1124_v1, %v1128_v2 }
 0x155   : > { %3508 = vmatpush1.bf16.msra.mxu1 %v5556_v26  ;;  %v1104_v26 = vld [vmem:[#allocation6 + $0x68] sm:$0xff] }
 0x156   : > { %3509 = vmatprep.subr.bf16.mxu1 %v5565_v57  ;;  %v5495_v57 = vcombine.high %v1100_v54, %v1104_v26  ;;  %v5494_v60 = vcombine.low %v1100_v54, %v1104_v26 }
 0x157   : > { %3559 = vmatpush1.bf16.msra.mxu0 %v5724_v16  ;;  %v1148_v16 = vld [vmem:[#allocation6 + $0x1c8] sm:$0xff] }
 0x158   : > { %3560 = vmatprep.subr.bf16.mxu0 %v5733_v21 }
 0x159   : > { %3510 = vmatpush1.bf16.msra.mxu1 %v5564_v62  ;;  %v1116_v62 = vld [vmem:[#allocation6 + $0xc8] sm:$0xff] }
 0x15a   : > { %3511 = vmatprep.subr.bf16.mxu1 %v5573_v0  ;;  %v5511_v0 = vcombine.high %v1116_v62, %v1120_v38  ;;  %v5510_v4 = vcombine.low %v1116_v62, %v1120_v38  ;;  %v1184_v62 = vld [vmem:[#allocation6 + $0x2e8] sm:$0xff] }
 0x15b   : > { %3561 = vmatpush1.bf16.msra.mxu0 %v5732_v24  ;;  %v530_v24 = vsub.s32 5, %v7052_v40 }
 0x15c   : > { %3571 = vmatprep.subr.bf16.mxu0 %v5741_v30  ;;  %v522_v30 = vsub.s32 3, %v7052_v40 }
 0x15d   : > { %3512 = vmatpush1.bf16.msra.mxu1 %v5572_v7  ;;  %v1132_v7 = vld [vmem:[#allocation6 + $0x148] sm:$0xff] }
 0x15e   : > { %3513 = vmatprep.subr.bf16.mxu1 %v5581_v12  ;;  %v5526_v12 = vcombine.low %v1132_v7, %v1136_v3  ;;  %v523_v39 = vrot.slane %v7057_v42, %v522_v30 }
 0x161   : > { %3514 = vmatpush1.bf16.msra.mxu1 %v5580_v17  ;;  %v1152_v17 = vld [vmem:[#allocation6 + $0x1e8] sm:$0xff] }
 0x162   : > { %3515 = vmatprep.subr.bf16.mxu1 %v5589_v20  ;;  %v5534_v20 = vcombine.low %v1140_v8, %v1144_v11  ;;  %v5543_v21 = vcombine.high %v1148_v16, %v1152_v17 }
 0x165   : > { %3516 = vmatpush1.bf16.msra.mxu1 %v5588_v25  ;;  %v518_v25 = vsub.s32 2, %v7052_v40 }
 0x166   : > { %3517 = vmatprep.subr.bf16.mxu1 %v5597_v29  ;;  %v5542_v29 = vcombine.low %v1148_v16, %v1152_v17  ;;  %v1375_v16 = vld [vmem:[#allocation6 + $0x8e0] sm:$0xff]  ;;  %v1196_v17 = vld [vmem:[#allocation6 + $0x348] sm:$0xff] }
 0x169   : > { %3518 = vmatpush1.bf16.msra.mxu1 %v5596_v35  ;;  %v1168_v35 = vld [vmem:[#allocation6 + $0x268] sm:$0xff] }
 0x16a   : > { %3519 = vmatprep.subr.bf16.mxu1 %v5605_v36  ;;  %v531_v36 = vrot.slane %v7057_v42, %v530_v24 }
 0x16d   : > { %3520 = vmatpush1.bf16.msra.mxu1 %v5604_v37  ;;  %v519_v37 = vrot.slane %v7057_v42, %v518_v25 }
 0x16e   : > { %3653 = vmatprep.subr.bf16.mxu1 %v5487_v10  ;;  %v5550_v10 = vcombine.low %v1156_v22, %v1160_v23  ;;  %v1204_v22 = vld [vmem:[#allocation6 + $0x388] sm:$0xff] }
 0x16f   : > { %v1208_v23 = vld [vmem:[#allocation6 + $0x3a8] sm:$0xff] }
 0x1b3   : > { %v948_v46 = vpop.f32.mrb[0].mxu1 }
 0x1b4   : > { %v949_v47 = vadd.f32 %v948_v46, %v511_v44  ;;  %v950_v48 = vpop.f32.mrb[1].mxu1  ;;  %v5559_v44 = vcombine.high %v1164_v33, %v1168_v35  ;;  %v1172_v46 = vld [vmem:[#allocation6 + $0x288] sm:$0xff] }
 0x1b5   : > { %v951_v49 = vadd.f32 %v950_v48, %v515_v45  ;;  %v952_v50 = vpop.f32.mrb[2].mxu1 }
 0x1b6   : > { %v1077_v51 = vmax.f32 %v949_v47, 0.0  ;;  %v953_v52 = vpop.f32.mrb[3].mxu1  ;;  %v1176_v47 = vld [vmem:[#allocation6 + $0x2a8] sm:$0xff] }
 0x1b7   : > { %v1078_v53 = vmax.f32 %v951_v49, 0.0  ;;  %v5558_v52 = vcombine.low %v1164_v33, %v1168_v35  ;;  %v5567_v26 = vcombine.high %v1172_v46, %v1176_v47  ;;  %v5566_v1 = vcombine.low %v1172_v46, %v1176_v47 }
 0x1b8   : > { %v7068_v56 = vpack.c.bf16 %v1077_v51, %v1077_v51  ;;  %v5599_v35 = vcombine.high %v1204_v22, %v1208_v23 }
 0x1b9   : > { %v7066_v55 = vpack.c.bf16 %v1078_v53, %v1078_v53 }
 0x1bb   : > { %3521 = vmatprep.mubr.bf16.mxu1 %v7066_v55 }
 0x1bc   : > { %3522 = vmatmul.mubr.bf16.vlgmr.msra.gmra.mrb[12].mxu1 %v7068_v56  ;;  %v7076_v13 = vpop.f32.mrb[0].mxu0 }
 0x1bd   : > { %3654 = vmatpush1.bf16.msra.mxu1 %v5486_v9  ;;  %3685 = vmatprep.mubr.bf16.mxu1 %v7066_v55  ;;  %v5527_v9 = vcombine.high %v1132_v7, %v1136_v3  ;;  %v1032_v15 = vpop.f32.mrb[1].mxu0  ;;  %v1367_v7 = vld [vmem:[#allocation6 + $0x8a0] sm:$0xff]  ;;  %v1188_v3 = vld [vmem:[#allocation6 + $0x308] sm:$0xff] }
 0x1be   : > { %3655 = vmatprep.subr.bf16.mxu1 %v5495_v57  ;;  %v1034_v18 = vpop.f32.mrb[2].mxu0  ;;  %v1033_v48 = vadd.f32 %v1032_v15, %v531_v36  ;;  %v1355_v57 = vld [vmem:[#allocation6 + $0x840] sm:$0xff] }
 0x1bf   : > { %v1035_v19 = vpop.f32.mrb[3].mxu0  ;;  %v1371_v15 = vld [vmem:[#allocation6 + $0x8c0] sm:$0xff]  ;;  %v1200_v18 = vld [vmem:[#allocation6 + $0x368] sm:$0xff] }
 0x1c0   : > { %v1082_v38 = vmax.f32 %v1033_v48, 0.0  ;;  %v5765_v27 = vcombine.high %v1371_v15, %v1375_v16  ;;  %v5591_v28 = vcombine.high %v1196_v17, %v1200_v18  ;;  %v1387_v36 = vld [vmem:[#allocation6 + $0x940] sm:$0xff] }
 0x1c1   : > { %3656 = vmatpush1.bf16.msra.mxu1 %v5494_v60  ;;  %v1359_v60 = vld [vmem:[#allocation6 + $0x860] sm:$0xff] }
 0x1c2   : > { %3657 = vmatprep.subr.bf16.mxu1 %v5503_v61  ;;  %v1180_v61 = vld [vmem:[#allocation6 + $0x2c8] sm:$0xff]  ;;  %v5749_v2 = vcombine.high %v1355_v57, %v1359_v60  ;;  %v5748_v8 = vcombine.low %v1355_v57, %v1359_v60  ;;  %v1395_v48 = vld [vmem:[#allocation6 + $0x980] sm:$0xff] }
 0x1c3   : > { %v5574_v11 = vcombine.low %v1180_v61, %v1184_v62  ;;  %v1403_v57 = vld [vmem:[#allocation6 + $0x9c0] sm:$0xff]  ;;  %v1232_v60 = vld [vmem:[#allocation6 + $0x468] sm:$0xff] }
 0x1c5   : > { %3658 = vmatpush1.bf16.msra.mxu1 %v5502_v63 }
 0x1c6   : > { %3659 = vmatprep.subr.bf16.mxu1 %v5511_v0 }
 0x1c9   : > { %3660 = vmatpush1.bf16.msra.mxu1 %v5510_v4  ;;  %v5575_v4 = vcombine.high %v1180_v61, %v1184_v62 }
 0x1ca   : > { %3661 = vmatprep.subr.bf16.mxu1 %v5519_v5  ;;  %v1363_v5 = vld [vmem:[#allocation6 + $0x880] sm:$0xff] }
 0x1cb   : > { %v5756_v19 = vcombine.low %v1363_v5, %v1367_v7 }
 0x1cd   : > { %3662 = vmatpush1.bf16.msra.mxu1 %v5518_v6  ;;  %v1192_v6 = vld [vmem:[#allocation6 + $0x328] sm:$0xff] }
 0x1ce   : > { %3663 = vmatprep.subr.bf16.mxu1 %v5527_v9  ;;  %v7095_v9 = vpack.c.bf16 %v1082_v38, %v1082_v38 }
 0x1d1   : > { %3664 = vmatpush1.bf16.msra.mxu1 %v5526_v12  ;;  %v5757_v12 = vcombine.high %v1363_v5, %v1367_v7  ;;  %v1236_v5 = vld [vmem:[#allocation6 + $0x488] sm:$0xff] }
 0x1d2   : > { %3665 = vmatprep.subr.bf16.mxu1 %v5535_v14  ;;  %v5583_v14 = vcombine.high %v1188_v3, %v1192_v6  ;;  %v1240_v7 = vld [vmem:[#allocation6 + $0x4a8] sm:$0xff] }
 0x1d5   : > { %3666 = vmatpush1.bf16.msra.mxu1 %v5534_v20  ;;  %v5582_v20 = vcombine.low %v1188_v3, %v1192_v6 }
 0x1d6   : > { %3667 = vmatprep.subr.bf16.mxu1 %v5543_v21  ;;  %v1383_v21 = vld [vmem:[#allocation6 + $0x920] sm:$0xff] }
 0x1d9   : > { %3668 = vmatpush1.bf16.msra.mxu1 %v5542_v29  ;;  %v5764_v29 = vcombine.low %v1371_v15, %v1375_v16  ;;  %v1244_v15 = vld [vmem:[#allocation6 + $0x4c8] sm:$0xff] }
 0x1da   : > { %3669 = vmatprep.subr.bf16.mxu1 %v5551_v32  ;;  %v5590_v32 = vcombine.low %v1196_v17, %v1200_v18  ;;  %v1248_v16 = vld [vmem:[#allocation6 + $0x4e8] sm:$0xff]  ;;  %v5630_v18 = vcombine.low %v1236_v5, %v1240_v7 }
 0x1db   : > { %v989_v45 = vpop.f32.mrb[4].mxu1 }
 0x1dc   : > { %v990_v49 = vadd.f32 %v989_v45, %v519_v37  ;;  %v991_v50 = vpop.f32.mrb[5].mxu1  ;;  %v1391_v37 = vld [vmem:[#allocation6 + $0x960] sm:$0xff]  ;;  %v5598_v45 = vcombine.low %v1204_v22, %v1208_v23 }
 0x1dd   : > { %v992_v51 = vadd.f32 %v991_v50, %v523_v39  ;;  %3670 = vmatpush1.bf16.msra.mxu1 %v5550_v10  ;;  %v993_v53 = vpop.f32.mrb[6].mxu1  ;;  %v1212_v10 = vld [vmem:[#allocation6 + $0x3c8] sm:$0xff]  ;;  %v5781_v46 = vcombine.high %v1387_v36, %v1391_v37 }
 0x1de   : > { %v1079_v54 = vmax.f32 %v990_v49, 0.0  ;;  %3671 = vmatprep.subr.bf16.mxu1 %v5559_v44  ;;  %v994_v58 = vpop.f32.mrb[7].mxu1  ;;  %v1216_v39 = vld [vmem:[#allocation6 + $0x3e8] sm:$0xff]  ;;  %v1399_v49 = vld [vmem:[#allocation6 + $0x9a0] sm:$0xff] }
 0x1df   : > { %v1080_v59 = vmax.f32 %v992_v51, 0.0  ;;  %v5607_v47 = vcombine.high %v1212_v10, %v1216_v39  ;;  %v1220_v50 = vld [vmem:[#allocation6 + $0x408] sm:$0xff]  ;;  %v5606_v53 = vcombine.low %v1212_v10, %v1216_v39  ;;  %v1407_v58 = vld [vmem:[#allocation6 + $0x9e0] sm:$0xff]  ;;  %v5788_v61 = vcombine.low %v1395_v48, %v1399_v49 }
 0x1e0   : > { %v7090_v63 = vpack.c.bf16 %v1079_v54, %v1079_v54  ;;  %v1224_v51 = vld [vmem:[#allocation6 + $0x428] sm:$0xff]  ;;  %v5789_v54 = vcombine.high %v1395_v48, %v1399_v49  ;;  %v5797_v38 = vcombine.high %v1403_v57, %v1407_v58  ;;  %v5796_v3 = vcombine.low %v1403_v57, %v1407_v58  ;;  %v1439_v39 = vld [vmem:[#allocation6 + $0xae0] sm:$0xff] }
 0x1e1   : > { %v7092_v0 = vpack.c.bf16 %v1080_v59, %v1080_v59  ;;  %3672 = vmatpush1.bf16.msra.mxu1 %v5558_v52  ;;  %v5780_v52 = vcombine.low %v1387_v36, %v1391_v37  ;;  %v1228_v59 = vld [vmem:[#allocation6 + $0x448] sm:$0xff]  ;;  %v5614_v62 = vcombine.low %v1220_v50, %v1224_v51  ;;  %v1435_v37 = vld [vmem:[#allocation6 + $0xac0] sm:$0xff] }
 0x1e2   : > { %3673 = vmatprep.subr.bf16.mxu1 %v5567_v26  ;;  %v5615_v26 = vcombine.high %v1220_v50, %v1224_v51  ;;  %v5622_v6 = vcombine.low %v1228_v59, %v1232_v60  ;;  %v5829_v48 = vcombine.high %v1435_v37, %v1439_v39  ;;  %v1443_v50 = vld [vmem:[#allocation6 + $0xb00] sm:$0xff] }
 0x1e3   : > { %3562 = vmatprep.mubr.bf16.mxu0 %v7092_v0  ;;  %v1447_v51 = vld [vmem:[#allocation6 + $0xb20] sm:$0xff] }
 0x1e4   : > { %3563 = vmatmul.mubr.bf16.vlgmr.msra.gmra.mrb[4].mxu0 %v7090_v63  ;;  %v5837_v57 = vcombine.high %v1443_v50, %v1447_v51 }
 0x1e5   : > { %3572 = vmatpush1.bf16.msra.mxu0 %v5740_v34  ;;  %3674 = vmatpush1.bf16.msra.mxu1 %v5566_v1  ;;  %v1379_v34 = vld [vmem:[#allocation6 + $0x900] sm:$0xff]  ;;  %v5623_v1 = vcombine.high %v1228_v59, %v1232_v60 }
 0x1e6   : > { %3573 = vmatprep.subr.bf16.mxu0 %v5749_v2  ;;  %3675 = vmatprep.subr.bf16.mxu1 %v5575_v4  ;;  %v5773_v33 = vcombine.high %v1379_v34, %v1383_v21  ;;  %v5772_v44 = vcombine.low %v1379_v34, %v1383_v21  ;;  %v1411_v2 = vld [vmem:[#allocation6 + $0xa00] sm:$0xff]  ;;  %v1252_v34 = vld [vmem:[#allocation6 + $0x508] sm:$0xff] }
 0x1e7   : > { %3603 = vmatprep.mubr.bf16.mxu0 %v7095_v9  ;;  %v1415_v4 = vld [vmem:[#allocation6 + $0xa20] sm:$0xff]  ;;  %v1256_v21 = vld [vmem:[#allocation6 + $0x528] sm:$0xff] }
 0x1e8   : > { %v5804_v17 = vcombine.low %v1411_v2, %v1415_v4  ;;  %v5647_v36 = vcombine.high %v1252_v34, %v1256_v21  ;;  %v1451_v59 = vld [vmem:[#allocation6 + $0xb40] sm:$0xff] }
 0x1e9   : > { %3574 = vmatpush1.bf16.msra.mxu0 %v5748_v8  ;;  %3676 = vmatpush1.bf16.msra.mxu1 %v5574_v11  ;;  %v5805_v8 = vcombine.high %v1411_v2, %v1415_v4  ;;  %v5631_v11 = vcombine.high %v1236_v5, %v1240_v7  ;;  %v1455_v60 = vld [vmem:[#allocation6 + $0xb60] sm:$0xff] }
 0x1ea   : > { %3575 = vmatprep.subr.bf16.mxu0 %v5757_v12  ;;  %3677 = vmatprep.subr.bf16.mxu1 %v5583_v14  ;;  %v1419_v12 = vld [vmem:[#allocation6 + $0xa40] sm:$0xff]  ;;  %v5845_v4 = vcombine.high %v1451_v59, %v1455_v60 }
 0x1eb   : > { %v1423_v14 = vld [vmem:[#allocation6 + $0xa60] sm:$0xff] }
 0x1ec   : > { %v1459_v7 = vld [vmem:[#allocation6 + $0xb80] sm:$0xff] }
 0x1ed   : > { %3576 = vmatpush1.bf16.msra.mxu0 %v5756_v19  ;;  %3678 = vmatpush1.bf16.msra.mxu1 %v5582_v20  ;;  %v5813_v19 = vcombine.high %v1419_v12, %v1423_v14  ;;  %v5639_v20 = vcombine.high %v1244_v15, %v1248_v16 }
 0x1ee   : > { %3577 = vmatprep.subr.bf16.mxu0 %v5765_v27  ;;  %3679 = vmatprep.subr.bf16.mxu1 %v5591_v28  ;;  %v1427_v27 = vld [vmem:[#allocation6 + $0xa80] sm:$0xff] }
 0x1ef   : > { %v1431_v28 = vld [vmem:[#allocation6 + $0xaa0] sm:$0xff] }
 0x1f1   : > { %3578 = vmatpush1.bf16.msra.mxu0 %v5764_v29  ;;  %3680 = vmatpush1.bf16.msra.mxu1 %v5590_v32  ;;  %v5812_v29 = vcombine.low %v1419_v12, %v1423_v14  ;;  %v5638_v32 = vcombine.low %v1244_v15, %v1248_v16  ;;  %v5844_v12 = vcombine.low %v1451_v59, %v1455_v60  ;;  %v1324_v60 = vld [vmem:[#allocation6 + $0x748] sm:$0xff] }
 0x1f2   : > { %3579 = vmatprep.subr.bf16.mxu0 %v5773_v33  ;;  %3681 = vmatprep.subr.bf16.mxu1 %v5599_v35  ;;  %v5821_v35 = vcombine.high %v1427_v27, %v1431_v28 }
 0x1f5   : > { %3580 = vmatpush1.bf16.msra.mxu0 %v5772_v44  ;;  %3682 = vmatpush1.bf16.msra.mxu1 %v5598_v45  ;;  %v1260_v44 = vld [vmem:[#allocation6 + $0x548] sm:$0xff] }
 0x1f6   : > { %3581 = vmatprep.subr.bf16.mxu0 %v5781_v46  ;;  %3683 = vmatprep.subr.bf16.mxu1 %v5607_v47  ;;  %v1264_v45 = vld [vmem:[#allocation6 + $0x568] sm:$0xff]  ;;  %v5820_v46 = vcombine.low %v1427_v27, %v1431_v28  ;;  %v5646_v47 = vcombine.low %v1252_v34, %v1256_v21 }
 0x1f7   : > { %v5655_v49 = vcombine.high %v1260_v44, %v1264_v45 }
 0x1f9   : > { %3582 = vmatpush1.bf16.msra.mxu0 %v5780_v52  ;;  %3684 = vmatpush1.bf16.msra.mxu1 %v5606_v53  ;;  %v1268_v52 = vld [vmem:[#allocation6 + $0x588] sm:$0xff] }
 0x1fa   : > { %3583 = vmatprep.subr.bf16.mxu0 %v5789_v54  ;;  %3694 = vmatprep.subr.bf16.mxu1 %v5615_v26  ;;  %v1272_v53 = vld [vmem:[#allocation6 + $0x5a8] sm:$0xff]  ;;  %v5828_v54 = vcombine.low %v1435_v37, %v1439_v39  ;;  %v5654_v26 = vcombine.low %v1260_v44, %v1264_v45  ;;  %v534_v37 = vsub.s32 6, %v7052_v40 }
 0x1fb   : > { %v5663_v58 = vcombine.high %v1268_v52, %v1272_v53  ;;  %v5662_v2 = vcombine.low %v1268_v52, %v1272_v53  ;;  %v1308_v45 = vld [vmem:[#allocation6 + $0x6c8] sm:$0xff] }
 0x1fc   : > { %3686 = vmatmul.mubr.bf16.vlgmr.msra.gmra.mrb[16].mxu1 %v7068_v56 }
 0x1fd   : > { %3584 = vmatpush1.bf16.msra.mxu0 %v5788_v61  ;;  %3695 = vmatpush1.bf16.msra.mxu1 %v5614_v62  ;;  %v1276_v61 = vld [vmem:[#allocation6 + $0x5c8] sm:$0xff] }
 0x1fe   : > { %3585 = vmatprep.subr.bf16.mxu0 %v5797_v38  ;;  %3696 = vmatprep.subr.bf16.mxu1 %v5623_v1  ;;  %v1280_v62 = vld [vmem:[#allocation6 + $0x5e8] sm:$0xff]  ;;  %v526_v38 = vsub.s32 4, %v7052_v40  ;;  %v5836_v1 = vcombine.low %v1443_v50, %v1447_v51  ;;  %v1097_v50 = vld [vmem:[#allocation6 + $0x30] sm:$0xff] }
 0x1ff   : > { %3726 = vmatprep.mubr.bf16.mxu1 %v7092_v0  ;;  %v5671_v5 = vcombine.high %v1276_v61, %v1280_v62  ;;  %v5670_v14 = vcombine.low %v1276_v61, %v1280_v62  ;;  %v1328_v61 = vld [vmem:[#allocation6 + $0x768] sm:$0xff] }
 0x201   : > { %3586 = vmatpush1.bf16.msra.mxu0 %v5796_v3  ;;  %3697 = vmatpush1.bf16.msra.mxu1 %v5622_v6  ;;  %v1463_v3 = vld [vmem:[#allocation6 + $0xba0] sm:$0xff]  ;;  %v1284_v6 = vld [vmem:[#allocation6 + $0x608] sm:$0xff] }
 0x202   : > { %3587 = vmatprep.subr.bf16.mxu0 %v5805_v8  ;;  %3698 = vmatprep.subr.bf16.mxu1 %v5631_v11  ;;  %v1288_v8 = vld [vmem:[#allocation6 + $0x628] sm:$0xff]  ;;  %v527_v11 = vrot.slane %v7057_v42, %v526_v38  ;;  %v5853_v15 = vcombine.high %v1459_v7, %v1463_v3  ;;  %v5852_v28 = vcombine.low %v1459_v7, %v1463_v3 }
 0x203   : > { %v7104_v22 = vpop.f32.mrb[8].mxu1  ;;  %v5679_v16 = vcombine.high %v1284_v6, %v1288_v8  ;;  %v5678_v34 = vcombine.low %v1284_v6, %v1288_v8  ;;  %v1336_v3 = vld [vmem:[#allocation6 + $0x7a8] sm:$0xff]  ;;  %v5718_v8 = vcombine.low %v1324_v60, %v1328_v61 }
 0x204   : > { %v1073_v23 = vpop.f32.mrb[9].mxu1  ;;  %v1031_v27 = vadd.f32 %v7076_v13, %v527_v11 }
 0x205   : > { %3588 = vmatpush1.bf16.msra.mxu0 %v5804_v17  ;;  %3699 = vmatpush1.bf16.msra.mxu1 %v5630_v18  ;;  %v1074_v33 = vpop.f32.mrb[10].mxu1  ;;  %v1467_v17 = vld [vmem:[#allocation6 + $0xbc0] sm:$0xff] }
 0x206   : > { %3589 = vmatprep.subr.bf16.mxu0 %v5813_v19  ;;  %3700 = vmatprep.subr.bf16.mxu1 %v5639_v20  ;;  %v1075_v10 = vpop.f32.mrb[11].mxu1  ;;  %v1471_v18 = vld [vmem:[#allocation6 + $0xbe0] sm:$0xff]  ;;  %v1292_v19 = vld [vmem:[#allocation6 + $0x648] sm:$0xff] }
 0x207   : > { %v1296_v20 = vld [vmem:[#allocation6 + $0x668] sm:$0xff]  ;;  %v5861_v21 = vcombine.high %v1467_v17, %v1471_v18  ;;  %v1475_v33 = vld [vmem:[#allocation6 + $0xc00] sm:$0xff]  ;;  %v5860_v10 = vcombine.low %v1467_v17, %v1471_v18 }
 0x208   : > { %v5687_v23 = vcombine.high %v1292_v19, %v1296_v20  ;;  %v5686_v39 = vcombine.low %v1292_v19, %v1296_v20  ;;  %v1344_v17 = vld [vmem:[#allocation6 + $0x7e8] sm:$0xff] }
 0x209   : > { %3590 = vmatpush1.bf16.msra.mxu0 %v5812_v29  ;;  %3701 = vmatpush1.bf16.msra.mxu1 %v5638_v32  ;;  %v1300_v29 = vld [vmem:[#allocation6 + $0x688] sm:$0xff] }
 0x20a   : > { %3591 = vmatprep.subr.bf16.mxu0 %v5821_v35  ;;  %3702 = vmatprep.subr.bf16.mxu1 %v5647_v36  ;;  %v1304_v32 = vld [vmem:[#allocation6 + $0x6a8] sm:$0xff]  ;;  %v1479_v35 = vld [vmem:[#allocation6 + $0xc20] sm:$0xff]  ;;  %v1081_v36 = vmax.f32 %v1031_v27, 0.0 }
 0x20b   : > { %v5695_v13 = vcombine.high %v1300_v29, %v1304_v32  ;;  %v5869_v44 = vcombine.high %v1475_v33, %v1479_v35  ;;  %v5694_v51 = vcombine.low %v1300_v29, %v1304_v32  ;;  %v5868_v52 = vcombine.low %v1475_v33, %v1479_v35 }
 0x20d   : > { %3592 = vmatpush1.bf16.msra.mxu0 %v5820_v46  ;;  %3703 = vmatpush1.bf16.msra.mxu1 %v5646_v47  ;;  %v1312_v46 = vld [vmem:[#allocation6 + $0x6e8] sm:$0xff]  ;;  %v7112_v47 = vpack.c.bf16 %v1081_v36, %v1081_v36  ;;  %v1125_v36 = vld [vmem:[#allocation6 + $0x110] sm:$0xff] }
 0x20e   : > { %3593 = vmatprep.subr.bf16.mxu0 %v5829_v48  ;;  %3704 = vmatprep.subr.bf16.mxu1 %v5655_v49  ;;  %v535_v48 = vrot.slane %v7057_v42, %v534_v37  ;;  %v1093_v49 = vld [vmem:[#allocation6 + $0x10] sm:$0xff]  ;;  %v5703_v53 = vcombine.high %v1308_v45, %v1312_v46  ;;  %v5702_v59 = vcombine.low %v1308_v45, %v1312_v46 }
 0x20f   : > { %v5488_v6 = vcombine.low %v1093_v49, %v1097_v50 }
 0x211   : > { %3594 = vmatpush1.bf16.msra.mxu0 %v5828_v54  ;;  %3705 = vmatpush1.bf16.msra.mxu1 %v5654_v26  ;;  %v1316_v54 = vld [vmem:[#allocation6 + $0x708] sm:$0xff] }
 0x212   : > { %3595 = vmatprep.subr.bf16.mxu0 %v5837_v57  ;;  %3706 = vmatprep.subr.bf16.mxu1 %v5663_v58  ;;  %v1320_v26 = vld [vmem:[#allocation6 + $0x728] sm:$0xff]  ;;  %v5489_v57 = vcombine.high %v1093_v49, %v1097_v50  ;;  %v1072_v58 = vadd.f32 %v7104_v22, %v535_v48  ;;  %v1133_v49 = vld [vmem:[#allocation6 + $0x150] sm:$0xff] }
 0x213   : > { %v5711_v42 = vcombine.high %v1316_v54, %v1320_v26  ;;  %v1332_v22 = vld [vmem:[#allocation6 + $0x788] sm:$0xff]  ;;  %v1137_v50 = vld [vmem:[#allocation6 + $0x170] sm:$0xff] }
 0x214   : > { %v1083_v62 = vmax.f32 %v1072_v58, 0.0  ;;  %v5726_v19 = vcombine.low %v1332_v22, %v1336_v3  ;;  %v1141_v58 = vld [vmem:[#allocation6 + $0x190] sm:$0xff] }
 0x215   : > { %3596 = vmatpush1.bf16.msra.mxu0 %v5836_v1  ;;  %3707 = vmatpush1.bf16.msra.mxu1 %v5662_v2  ;;  %v5710_v1 = vcombine.low %v1316_v54, %v1320_v26  ;;  %v5719_v2 = vcombine.high %v1324_v60, %v1328_v61  ;;  %v5529_v26 = vcombine.high %v1133_v49, %v1137_v50  ;;  %v1376_v60 = vld [vmem:[#allocation6 + $0x8e8] sm:$0xff] }
 0x216   : > { %3597 = vmatprep.subr.bf16.mxu0 %v5845_v4  ;;  %3708 = vmatprep.subr.bf16.mxu1 %v5671_v5  ;;  %v1101_v4 = vld [vmem:[#allocation6 + $0x50] sm:$0xff]  ;;  %v7120_v7 = vpack.c.bf16 %v1083_v62, %v1083_v62  ;;  %v5528_v61 = vcombine.low %v1133_v49, %v1137_v50 }
 0x217   : > { %v1105_v5 = vld [vmem:[#allocation6 + $0x70] sm:$0xff] }
 0x218   : > { %v5497_v11 = vcombine.high %v1101_v4, %v1105_v5  ;;  %v5496_v18 = vcombine.low %v1101_v4, %v1105_v5  ;;  %v1149_v4 = vld [vmem:[#allocation6 + $0x1d0] sm:$0xff] }
 0x219   : > { %3598 = vmatpush1.bf16.msra.mxu0 %v5844_v12  ;;  %3709 = vmatpush1.bf16.msra.mxu1 %v5670_v14  ;;  %v1109_v12 = vld [vmem:[#allocation6 + $0x90] sm:$0xff]  ;;  %v5727_v14 = vcombine.high %v1332_v22, %v1336_v3  ;;  %v1380_v22 = vld [vmem:[#allocation6 + $0x908] sm:$0xff] }
 0x21a   : > { %3599 = vmatprep.subr.bf16.mxu0 %v5853_v15  ;;  %3710 = vmatprep.subr.bf16.mxu1 %v5679_v16  ;;  %v1113_v15 = vld [vmem:[#allocation6 + $0xb0] sm:$0xff]  ;;  %v1340_v16 = vld [vmem:[#allocation6 + $0x7c8] sm:$0xff] }
 0x21b   : > { %v5505_v20 = vcombine.high %v1109_v12, %v1113_v15  ;;  %v5735_v27 = vcombine.high %v1340_v16, %v1344_v17  ;;  %v5504_v29 = vcombine.low %v1109_v12, %v1113_v15  ;;  %v5734_v32 = vcombine.low %v1340_v16, %v1344_v17  ;;  %v1153_v5 = vld [vmem:[#allocation6 + $0x1f0] sm:$0xff]  ;;  %v1384_v3 = vld [vmem:[#allocation6 + $0x928] sm:$0xff] }
 0x21c   : > { %v5775_v12 = vcombine.high %v1380_v22, %v1384_v3  ;;  %v1161_v15 = vld [vmem:[#allocation6 + $0x230] sm:$0xff]  ;;  %v1388_v16 = vld [vmem:[#allocation6 + $0x948] sm:$0xff] }
 0x21d   : > { %3600 = vmatpush1.bf16.msra.mxu0 %v5852_v28  ;;  %3711 = vmatpush1.bf16.msra.mxu1 %v5678_v34  ;;  %v1117_v28 = vld [vmem:[#allocation6 + $0xd0] sm:$0xff]  ;;  %v1392_v17 = vld [vmem:[#allocation6 + $0x968] sm:$0xff] }
 0x21e   : > { %3601 = vmatprep.subr.bf16.mxu0 %v5861_v21  ;;  %3712 = vmatprep.subr.bf16.mxu1 %v5687_v23  ;;  %v1121_v34 = vld [vmem:[#allocation6 + $0xf0] sm:$0xff]  ;;  %v1348_v21 = vld [vmem:[#allocation6 + $0x808] sm:$0xff] }
 0x21f   : > { %v1352_v23 = vld [vmem:[#allocation6 + $0x828] sm:$0xff]  ;;  %v5513_v33 = vcombine.high %v1117_v28, %v1121_v34  ;;  %v1181_v49 = vld [vmem:[#allocation6 + $0x2d0] sm:$0xff] }
 0x220   : > { %v5743_v35 = vcombine.high %v1348_v21, %v1352_v23  ;;  %v5742_v45 = vcombine.low %v1348_v21, %v1352_v23  ;;  %v1396_v21 = vld [vmem:[#allocation6 + $0x988] sm:$0xff]  ;;  %v1185_v50 = vld [vmem:[#allocation6 + $0x2f0] sm:$0xff] }
 0x221   : > { %3602 = vmatpush1.bf16.msra.mxu0 %v5860_v10  ;;  %3713 = vmatpush1.bf16.msra.mxu1 %v5686_v39  ;;  %v1129_v10 = vld [vmem:[#allocation6 + $0x130] sm:$0xff]  ;;  %v1356_v39 = vld [vmem:[#allocation6 + $0x848] sm:$0xff] }
 0x222   : > { %3714 = vmatprep.subr.bf16.mxu1 %v5695_v13  ;;  %3612 = vmatprep.subr.bf16.mxu0 %v5869_v44  ;;  %v1360_v13 = vld [vmem:[#allocation6 + $0x868] sm:$0xff]  ;;  %v5512_v44 = vcombine.low %v1117_v28, %v1121_v34  ;;  %v5521_v46 = vcombine.high %v1125_v36, %v1129_v10  ;;  %v1165_v28 = vld [vmem:[#allocation6 + $0x250] sm:$0xff] }
 0x223   : > { %v5751_v48 = vcombine.high %v1356_v39, %v1360_v13  ;;  %v5750_v54 = vcombine.low %v1356_v39, %v1360_v13  ;;  %v1169_v34 = vld [vmem:[#allocation6 + $0x270] sm:$0xff]  ;;  %v1400_v23 = vld [vmem:[#allocation6 + $0x9a8] sm:$0xff] }
 0x224   : > { %3604 = vmatmul.mubr.bf16.vlgmr.msra.gmra.mrb[4].mxu0 %v7112_v47  ;;  %v1404_v39 = vld [vmem:[#allocation6 + $0x9c8] sm:$0xff] }
 0x225   : > { %3715 = vmatpush1.bf16.msra.mxu1 %v5694_v51  ;;  %3613 = vmatpush1.bf16.msra.mxu0 %v5868_v52  ;;  %v1364_v51 = vld [vmem:[#allocation6 + $0x888] sm:$0xff] }
 0x226   : > { %3716 = vmatprep.subr.bf16.mxu1 %v5703_v53  ;;  %3644 = vmatprep.mubr.bf16.mxu0 %v6735_v31  ;;  %v1368_v52 = vld [vmem:[#allocation6 + $0x8a8] sm:$0xff]  ;;  %v5520_v53 = vcombine.low %v1125_v36, %v1129_v10  ;;  %v1173_v36 = vld [vmem:[#allocation6 + $0x290] sm:$0xff] }
 0x227   : > { %3817 = vmatprep.subr.bf16.mxu0 %v5489_v57  ;;  %v5759_v57 = vcombine.high %v1364_v51, %v1368_v52  ;;  %v5758_v62 = vcombine.low %v1364_v51, %v1368_v52  ;;  %v1177_v10 = vld [vmem:[#allocation6 + $0x2b0] sm:$0xff]  ;;  %v1408_v13 = vld [vmem:[#allocation6 + $0x9e8] sm:$0xff] }
 0x228   : > { %v1412_v51 = vld [vmem:[#allocation6 + $0xa08] sm:$0xff] }
 0x229   : > { %3717 = vmatpush1.bf16.msra.mxu1 %v5702_v59  ;;  %v1145_v59 = vld [vmem:[#allocation6 + $0x1b0] sm:$0xff]  ;;  %v1416_v52 = vld [vmem:[#allocation6 + $0xa28] sm:$0xff] }
 0x22a   : > { %3718 = vmatprep.subr.bf16.mxu1 %v5711_v42  ;;  %v1372_v42 = vld [vmem:[#allocation6 + $0x8c8] sm:$0xff] }
 0x22d   : > { %3719 = vmatpush1.bf16.msra.mxu1 %v5710_v1  ;;  %v5537_v1 = vcombine.high %v1141_v58, %v1145_v59 }
 0x22e   : > { %3720 = vmatprep.subr.bf16.mxu1 %v5719_v2  ;;  %v5767_v2 = vcombine.high %v1372_v42, %v1376_v60 }
 0x230   : > { %5876 = vmatmul.mubr.msk.bf16.vlgmr.msra.gmra.mrb[4].mxu0 %vm3485_vm3, %v7120_v7 }
 0x231   : > { %3818 = vmatpush1.bf16.msra.mxu0 %v5488_v6  ;;  %3721 = vmatpush1.bf16.msra.mxu1 %v5718_v8  ;;  %v5536_v6 = vcombine.low %v1141_v58, %v1145_v59  ;;  %v5766_v8 = vcombine.low %v1372_v42, %v1376_v60  ;;  %v1189_v58 = vld [vmem:[#allocation6 + $0x310] sm:$0xff]  ;;  %v1420_v42 = vld [vmem:[#allocation6 + $0xa48] sm:$0xff] }
 0x232   : > { %3849 = vmatprep.mubr.bf16.mxu0 %v7066_v55  ;;  %3819 = vmatprep.subr.bf16.mxu0 %v5497_v11  ;;  %v5545_v11 = vcombine.high %v1149_v4, %v1153_v5  ;;  %v1193_v59 = vld [vmem:[#allocation6 + $0x330] sm:$0xff]  ;;  %v1424_v60 = vld [vmem:[#allocation6 + $0xa68] sm:$0xff] }
 0x233   : > { %3722 = vmatprep.subr.bf16.mxu1 %v5727_v14  ;;  %v1157_v14 = vld [vmem:[#allocation6 + $0x210] sm:$0xff] }
 0x235   : > { %3820 = vmatpush1.bf16.msra.mxu0 %v5496_v18  ;;  %3723 = vmatpush1.bf16.msra.mxu1 %v5726_v19  ;;  %v5544_v18 = vcombine.low %v1149_v4, %v1153_v5  ;;  %v5774_v19 = vcombine.low %v1380_v22, %v1384_v3  ;;  %v1197_v4 = vld [vmem:[#allocation6 + $0x350] sm:$0xff]  ;;  %v1428_v22 = vld [vmem:[#allocation6 + $0xa88] sm:$0xff] }
 0x236   : > { %3821 = vmatprep.subr.bf16.mxu0 %v5505_v20  ;;  %3724 = vmatprep.subr.bf16.mxu1 %v5735_v27  ;;  %v5553_v20 = vcombine.high %v1157_v14, %v1161_v15  ;;  %v5783_v27 = vcombine.high %v1388_v16, %v1392_v17  ;;  %v1201_v5 = vld [vmem:[#allocation6 + $0x370] sm:$0xff]  ;;  %v1432_v3 = vld [vmem:[#allocation6 + $0xaa8] sm:$0xff] }
 0x239   : > { %3822 = vmatpush1.bf16.msra.mxu0 %v5504_v29  ;;  %3725 = vmatpush1.bf16.msra.mxu1 %v5734_v32  ;;  %v5552_v29 = vcombine.low %v1157_v14, %v1161_v15  ;;  %v5782_v32 = vcombine.low %v1388_v16, %v1392_v17  ;;  %v1205_v14 = vld [vmem:[#allocation6 + $0x390] sm:$0xff]  ;;  %v1436_v16 = vld [vmem:[#allocation6 + $0xac8] sm:$0xff] }
 0x23a   : > { %3823 = vmatprep.subr.bf16.mxu0 %v5513_v33  ;;  %3735 = vmatprep.subr.bf16.mxu1 %v5743_v35  ;;  %v5561_v33 = vcombine.high %v1165_v28, %v1169_v34  ;;  %v5791_v35 = vcombine.high %v1396_v21, %v1400_v23  ;;  %v1209_v15 = vld [vmem:[#allocation6 + $0x3b0] sm:$0xff]  ;;  %v1440_v17 = vld [vmem:[#allocation6 + $0xae8] sm:$0xff] }
 0x23c   : > { %3727 = vmatmul.mubr.bf16.vlgmr.msra.gmra.mrb[16].mxu1 %v7090_v63 }
 0x23d   : > { %3824 = vmatpush1.bf16.msra.mxu0 %v5512_v44  ;;  %3736 = vmatpush1.bf16.msra.mxu1 %v5742_v45  ;;  %v5560_v44 = vcombine.low %v1165_v28, %v1169_v34  ;;  %v5790_v45 = vcombine.low %v1396_v21, %v1400_v23  ;;  %v1213_v28 = vld [vmem:[#allocation6 + $0x3d0] sm:$0xff]  ;;  %v1444_v21 = vld [vmem:[#allocation6 + $0xb08] sm:$0xff] }
 0x23e   : > { %3825 = vmatprep.subr.bf16.mxu0 %v5521_v46  ;;  %3737 = vmatprep.subr.bf16.mxu1 %v5751_v48  ;;  %v5569_v46 = vcombine.high %v1173_v36, %v1177_v10  ;;  %v5799_v48 = vcombine.high %v1404_v39, %v1408_v13  ;;  %v1217_v34 = vld [vmem:[#allocation6 + $0x3f0] sm:$0xff]  ;;  %v1448_v23 = vld [vmem:[#allocation6 + $0xb28] sm:$0xff] }
 0x23f   : > { %3767 = vmatprep.mubr.bf16.mxu1 %v7095_v9 }
 0x241   : > { %3826 = vmatpush1.bf16.msra.mxu0 %v5520_v53  ;;  %3738 = vmatpush1.bf16.msra.mxu1 %v5750_v54  ;;  %v5568_v53 = vcombine.low %v1173_v36, %v1177_v10  ;;  %v5798_v54 = vcombine.low %v1404_v39, %v1408_v13  ;;  %v1221_v36 = vld [vmem:[#allocation6 + $0x410] sm:$0xff]  ;;  %v1452_v39 = vld [vmem:[#allocation6 + $0xb48] sm:$0xff] }
 0x242   : > { %3827 = vmatprep.subr.bf16.mxu0 %v5529_v26  ;;  %3739 = vmatprep.subr.bf16.mxu1 %v5759_v57  ;;  %v5577_v26 = vcombine.high %v1181_v49, %v1185_v50  ;;  %v5807_v57 = vcombine.high %v1412_v51, %v1416_v52  ;;  %v1225_v10 = vld [vmem:[#allocation6 + $0x430] sm:$0xff]  ;;  %v1456_v13 = vld [vmem:[#allocation6 + $0xb68] sm:$0xff] }
 0x245   : > { %3828 = vmatpush1.bf16.msra.mxu0 %v5528_v61  ;;  %3740 = vmatpush1.bf16.msra.mxu1 %v5758_v62  ;;  %v5576_v61 = vcombine.low %v1181_v49, %v1185_v50  ;;  %v5806_v62 = vcombine.low %v1412_v51, %v1416_v52  ;;  %v1229_v49 = vld [vmem:[#allocation6 + $0x450] sm:$0xff]  ;;  %v1460_v51 = vld [vmem:[#allocation6 + $0xb88] sm:$0xff] }
 0x246   : > { %3829 = vmatprep.subr.bf16.mxu0 %v5537_v1  ;;  %3741 = vmatprep.subr.bf16.mxu1 %v5767_v2  ;;  %v5585_v1 = vcombine.high %v1189_v58, %v1193_v59  ;;  %v5815_v2 = vcombine.high %v1420_v42, %v1424_v60  ;;  %v1233_v50 = vld [vmem:[#allocation6 + $0x470] sm:$0xff]  ;;  %v1464_v52 = vld [vmem:[#allocation6 + $0xba8] sm:$0xff] }
 0x249   : > { %3830 = vmatpush1.bf16.msra.mxu0 %v5536_v6  ;;  %3742 = vmatpush1.bf16.msra.mxu1 %v5766_v8  ;;  %v5584_v6 = vcombine.low %v1189_v58, %v1193_v59  ;;  %v5814_v8 = vcombine.low %v1420_v42, %v1424_v60  ;;  %v1237_v58 = vld [vmem:[#allocation6 + $0x490] sm:$0xff]  ;;  %v1468_v42 = vld [vmem:[#allocation6 + $0xbc8] sm:$0xff] }
 0x24a   : > { %3831 = vmatprep.subr.bf16.mxu0 %v5545_v11  ;;  %3743 = vmatprep.subr.bf16.mxu1 %v5775_v12  ;;  %v5593_v11 = vcombine.high %v1197_v4, %v1201_v5  ;;  %v5823_v12 = vcombine.high %v1428_v22, %v1432_v3  ;;  %v1241_v59 = vld [vmem:[#allocation6 + $0x4b0] sm:$0xff]  ;;  %v1472_v60 = vld [vmem:[#allocation6 + $0xbe8] sm:$0xff] }
 0x24d   : > { %3832 = vmatpush1.bf16.msra.mxu0 %v5544_v18  ;;  %3744 = vmatpush1.bf16.msra.mxu1 %v5774_v19  ;;  %v5592_v18 = vcombine.low %v1197_v4, %v1201_v5  ;;  %v5822_v19 = vcombine.low %v1428_v22, %v1432_v3  ;;  %v1245_v4 = vld [vmem:[#allocation6 + $0x4d0] sm:$0xff]  ;;  %v1476_v22 = vld [vmem:[#allocation6 + $0xc08] sm:$0xff] }
 0x24e   : > { %3833 = vmatprep.subr.bf16.mxu0 %v5553_v20  ;;  %3745 = vmatprep.subr.bf16.mxu1 %v5783_v27  ;;  %v5601_v20 = vcombine.high %v1205_v14, %v1209_v15  ;;  %v5831_v27 = vcombine.high %v1436_v16, %v1440_v17  ;;  %v1249_v5 = vld [vmem:[#allocation6 + $0x4f0] sm:$0xff]  ;;  %v1480_v3 = vld [vmem:[#allocation6 + $0xc28] sm:$0xff] }
 0x251   : > { %3834 = vmatpush1.bf16.msra.mxu0 %v5552_v29  ;;  %3746 = vmatpush1.bf16.msra.mxu1 %v5782_v32  ;;  %v5600_v29 = vcombine.low %v1205_v14, %v1209_v15  ;;  %v5830_v32 = vcombine.low %v1436_v16, %v1440_v17  ;;  %v1253_v14 = vld [vmem:[#allocation6 + $0x510] sm:$0xff]  ;;  %v1094_v16 = vld [vmem:[#allocation6 + $0x18] sm:$0xff] }
 0x252   : > { %3835 = vmatprep.subr.bf16.mxu0 %v5561_v33  ;;  %3747 = vmatprep.subr.bf16.mxu1 %v5791_v35  ;;  %v5609_v33 = vcombine.high %v1213_v28, %v1217_v34  ;;  %v5839_v35 = vcombine.high %v1444_v21, %v1448_v23  ;;  %v1257_v15 = vld [vmem:[#allocation6 + $0x530] sm:$0xff]  ;;  %v1098_v17 = vld [vmem:[#allocation6 + $0x38] sm:$0xff] }
 0x255   : > { %3836 = vmatpush1.bf16.msra.mxu0 %v5560_v44  ;;  %3748 = vmatpush1.bf16.msra.mxu1 %v5790_v45  ;;  %v5608_v44 = vcombine.low %v1213_v28, %v1217_v34  ;;  %v5838_v45 = vcombine.low %v1444_v21, %v1448_v23  ;;  %v1265_v28 = vld [vmem:[#allocation6 + $0x570] sm:$0xff]  ;;  %v5491_v34 = vcombine.high %v1094_v16, %v1098_v17 }
 0x256   : > { %3837 = vmatprep.subr.bf16.mxu0 %v5569_v46  ;;  %3749 = vmatprep.subr.bf16.mxu1 %v5799_v48  ;;  %v5617_v46 = vcombine.high %v1221_v36, %v1225_v10  ;;  %v5847_v48 = vcombine.high %v1452_v39, %v1456_v13  ;;  %v5648_v21 = vcombine.low %v1253_v14, %v1257_v15 }
 0x259   : > { %3838 = vmatpush1.bf16.msra.mxu0 %v5568_v53  ;;  %3750 = vmatpush1.bf16.msra.mxu1 %v5798_v54  ;;  %v5616_v53 = vcombine.low %v1221_v36, %v1225_v10  ;;  %v5846_v54 = vcombine.low %v1452_v39, %v1456_v13  ;;  %v1277_v36 = vld [vmem:[#allocation6 + $0x5d0] sm:$0xff]  ;;  %v1102_v39 = vld [vmem:[#allocation6 + $0x58] sm:$0xff] }
 0x25a   : > { %3839 = vmatprep.subr.bf16.mxu0 %v5577_v26  ;;  %3751 = vmatprep.subr.bf16.mxu1 %v5807_v57  ;;  %v5625_v26 = vcombine.high %v1229_v49, %v1233_v50  ;;  %v5855_v57 = vcombine.high %v1460_v51, %v1464_v52  ;;  %v1281_v10 = vld [vmem:[#allocation6 + $0x5f0] sm:$0xff]  ;;  %v1106_v13 = vld [vmem:[#allocation6 + $0x78] sm:$0xff] }
 0x25d   : > { %3840 = vmatpush1.bf16.msra.mxu0 %v5576_v61  ;;  %3752 = vmatpush1.bf16.msra.mxu1 %v5806_v62  ;;  %v5624_v61 = vcombine.low %v1229_v49, %v1233_v50  ;;  %v5854_v62 = vcombine.low %v1460_v51, %v1464_v52  ;;  %v1285_v49 = vld [vmem:[#allocation6 + $0x610] sm:$0xff]  ;;  %v1110_v51 = vld [vmem:[#allocation6 + $0x98] sm:$0xff] }
 0x25e   : > { %3841 = vmatprep.subr.bf16.mxu0 %v5585_v1  ;;  %3753 = vmatprep.subr.bf16.mxu1 %v5815_v2  ;;  %v5633_v1 = vcombine.high %v1237_v58, %v1241_v59  ;;  %v5863_v2 = vcombine.high %v1468_v42, %v1472_v60  ;;  %v1289_v50 = vld [vmem:[#allocation6 + $0x630] sm:$0xff]  ;;  %v1114_v52 = vld [vmem:[#allocation6 + $0xb8] sm:$0xff] }
 0x261   : > { %3842 = vmatpush1.bf16.msra.mxu0 %v5584_v6  ;;  %3754 = vmatpush1.bf16.msra.mxu1 %v5814_v8  ;;  %v5632_v6 = vcombine.low %v1237_v58, %v1241_v59  ;;  %v5862_v8 = vcombine.low %v1468_v42, %v1472_v60  ;;  %v1293_v58 = vld [vmem:[#allocation6 + $0x650] sm:$0xff]  ;;  %v1118_v42 = vld [vmem:[#allocation6 + $0xd8] sm:$0xff] }
 0x262   : > { %3843 = vmatprep.subr.bf16.mxu0 %v5593_v11  ;;  %3755 = vmatprep.subr.bf16.mxu1 %v5823_v12  ;;  %v5641_v11 = vcombine.high %v1245_v4, %v1249_v5  ;;  %v5871_v12 = vcombine.high %v1476_v22, %v1480_v3  ;;  %v1297_v59 = vld [vmem:[#allocation6 + $0x670] sm:$0xff]  ;;  %v1122_v60 = vld [vmem:[#allocation6 + $0xf8] sm:$0xff] }
 0x265   : > { %3844 = vmatpush1.bf16.msra.mxu0 %v5592_v18  ;;  %3756 = vmatpush1.bf16.msra.mxu1 %v5822_v19  ;;  %v5640_v18 = vcombine.low %v1245_v4, %v1249_v5  ;;  %v5870_v19 = vcombine.low %v1476_v22, %v1480_v3  ;;  %v5515_v4 = vcombine.high %v1118_v42, %v1122_v60  ;;  %v1305_v5 = vld [vmem:[#allocation6 + $0x6b0] sm:$0xff]  ;;  %v1126_v3 = vld [vmem:[#allocation6 + $0x118] sm:$0xff] }
 0x266   : > { %3845 = vmatprep.subr.bf16.mxu0 %v5601_v20  ;;  %3757 = vmatprep.subr.bf16.mxu1 %v5831_v27  ;;  %v5649_v20 = vcombine.high %v1253_v14, %v1257_v15  ;;  %v1261_v27 = vld [vmem:[#allocation6 + $0x550] sm:$0xff]  ;;  %v5514_v14 = vcombine.low %v1118_v42, %v1122_v60 }
 0x267   : > { %v5657_v23 = vcombine.high %v1261_v27, %v1265_v28  ;;  %v1341_v60 = vld [vmem:[#allocation6 + $0x7d0] sm:$0xff] }
 0x269   : > { %3846 = vmatpush1.bf16.msra.mxu0 %v5600_v29  ;;  %3758 = vmatpush1.bf16.msra.mxu1 %v5830_v32  ;;  %v1269_v29 = vld [vmem:[#allocation6 + $0x590] sm:$0xff] }
 0x26a   : > { %3847 = vmatprep.subr.bf16.mxu0 %v5609_v33  ;;  %3759 = vmatprep.subr.bf16.mxu1 %v5839_v35  ;;  %v1273_v32 = vld [vmem:[#allocation6 + $0x5b0] sm:$0xff]  ;;  %v5656_v33 = vcombine.low %v1261_v27, %v1265_v28 }
 0x26b   : > { %v5665_v35 = vcombine.high %v1269_v29, %v1273_v32 }
 0x26d   : > { %3848 = vmatpush1.bf16.msra.mxu0 %v5608_v44  ;;  %3760 = vmatpush1.bf16.msra.mxu1 %v5838_v45  ;;  %v5664_v44 = vcombine.low %v1269_v29, %v1273_v32  ;;  %v5490_v45 = vcombine.low %v1094_v16, %v1098_v17  ;;  %v1309_v17 = vld [vmem:[#allocation6 + $0x6d0] sm:$0xff]  ;;  %v1142_v32 = vld [vmem:[#allocation6 + $0x198] sm:$0xff] }
 0x26e   : > { %3858 = vmatprep.subr.bf16.mxu0 %v5617_v46  ;;  %3761 = vmatprep.subr.bf16.mxu1 %v5847_v48  ;;  %v5673_v46 = vcombine.high %v1277_v36, %v1281_v10  ;;  %v5499_v48 = vcombine.high %v1102_v39, %v1106_v13  ;;  %v1321_v29 = vld [vmem:[#allocation6 + $0x730] sm:$0xff] }
 0x270   : > { %3850 = vmatmul.mubr.bf16.vlgmr.msra.gmra.mrb[8].mxu0 %v7068_v56 }
 0x271   : > { %3859 = vmatpush1.bf16.msra.mxu0 %v5616_v53  ;;  %3890 = vmatprep.mubr.bf16.mxu0 %v7092_v0  ;;  %v5672_v53 = vcombine.low %v1277_v36, %v1281_v10 }
 0x272   : > { %3762 = vmatpush1.bf16.msra.mxu1 %v5846_v54  ;;  %3860 = vmatprep.subr.bf16.mxu0 %v5625_v26  ;;  %v5498_v54 = vcombine.low %v1102_v39, %v1106_v13  ;;  %v5681_v26 = vcombine.high %v1285_v49, %v1289_v50  ;;  %v1325_v13 = vld [vmem:[#allocation6 + $0x750] sm:$0xff] }
 0x273   : > { %3763 = vmatprep.subr.bf16.mxu1 %v5855_v57  ;;  %v5507_v57 = vcombine.high %v1110_v51, %v1114_v52 }
 0x275   : > { %3861 = vmatpush1.bf16.msra.mxu0 %v5624_v61  ;;  %v5680_v61 = vcombine.low %v1285_v49, %v1289_v50 }
 0x276   : > { %3764 = vmatpush1.bf16.msra.mxu1 %v5854_v62  ;;  %3862 = vmatprep.subr.bf16.mxu0 %v5633_v1  ;;  %v5506_v62 = vcombine.low %v1110_v51, %v1114_v52  ;;  %v5689_v1 = vcombine.high %v1293_v58, %v1297_v59  ;;  %v1333_v52 = vld [vmem:[#allocation6 + $0x790] sm:$0xff] }
 0x277   : > { %3765 = vmatprep.subr.bf16.mxu1 %v5863_v2 }
 0x279   : > { %3863 = vmatpush1.bf16.msra.mxu0 %v5632_v6  ;;  %v1130_v6 = vld [vmem:[#allocation6 + $0x138] sm:$0xff] }
 0x27a   : > { %3766 = vmatpush1.bf16.msra.mxu1 %v5862_v8  ;;  %3864 = vmatprep.subr.bf16.mxu0 %v5641_v11  ;;  %v5688_v11 = vcombine.low %v1293_v58, %v1297_v59  ;;  %v5523_v16 = vcombine.high %v1126_v3, %v1130_v6  ;;  %v5522_v28 = vcombine.low %v1126_v3, %v1130_v6  ;;  %v1349_v6 = vld [vmem:[#allocation6 + $0x810] sm:$0xff] }
 0x27b   : > { %3776 = vmatprep.subr.bf16.mxu1 %v5871_v12 }
 0x27d   : > { %3768 = vmatmul.mubr.bf16.vlgmr.msra.gmra.mrb[16].mxu1 %v7112_v47  ;;  %3865 = vmatpush1.bf16.msra.mxu0 %v5640_v18  ;;  %v1313_v18 = vld [vmem:[#allocation6 + $0x6f0] sm:$0xff] }
 0x27e   : > { %3777 = vmatpush1.bf16.msra.mxu1 %v5870_v19  ;;  %3866 = vmatprep.subr.bf16.mxu0 %v5649_v20  ;;  %v1134_v19 = vld [vmem:[#allocation6 + $0x158] sm:$0xff] }
 0x27f   : > { %3808 = vmatprep.mubr.bf16.mxu1 %v6735_v31  ;;  %3981 = vmatprep.subr.bf16.mxu1 %v5491_v34  ;;  %v1138_v20 = vld [vmem:[#allocation6 + $0x178] sm:$0xff]  ;;  %v5705_v34 = vcombine.high %v1309_v17, %v1313_v18 }
 0x280   : > { %v5530_v36 = vcombine.low %v1134_v19, %v1138_v20 }
 0x281   : > { %3867 = vmatpush1.bf16.msra.mxu0 %v5648_v21  ;;  %v5531_v21 = vcombine.high %v1134_v19, %v1138_v20  ;;  %v1361_v19 = vld [vmem:[#allocation6 + $0x870] sm:$0xff]  ;;  %v1182_v20 = vld [vmem:[#allocation6 + $0x2d8] sm:$0xff] }
 0x282   : > { %3868 = vmatprep.subr.bf16.mxu0 %v5657_v23  ;;  %v1317_v23 = vld [vmem:[#allocation6 + $0x710] sm:$0xff] }
 0x283   : > { %v5713_v10 = vcombine.high %v1317_v23, %v1321_v29 }
 0x285   : > { %3869 = vmatpush1.bf16.msra.mxu0 %v5656_v33  ;;  %v1146_v33 = vld [vmem:[#allocation6 + $0x1b8] sm:$0xff] }
 0x286   : > { %3870 = vmatprep.subr.bf16.mxu0 %v5665_v35  ;;  %v5704_v35 = vcombine.low %v1309_v17, %v1313_v18  ;;  %v5539_v39 = vcombine.high %v1142_v32, %v1146_v33  ;;  %v5538_v49 = vcombine.low %v1142_v32, %v1146_v33  ;;  %v1357_v18 = vld [vmem:[#allocation6 + $0x850] sm:$0xff]  ;;  %v1190_v33 = vld [vmem:[#allocation6 + $0x318] sm:$0xff] }
 0x287   : > { %v1369_v32 = vld [vmem:[#allocation6 + $0x8b0] sm:$0xff] }
 0x289   : > { %5877 = vmatmul.mubr.msk.bf16.vlgmr.msra.gmra.mrb[16].mxu1 %vm3485_vm3, %v7120_v7  ;;  %3871 = vmatpush1.bf16.msra.mxu0 %v5664_v44  ;;  %v1329_v44 = vld [vmem:[#allocation6 + $0x770] sm:$0xff] }
 0x28a   : > { %3982 = vmatpush1.bf16.msra.mxu1 %v5490_v45  ;;  %4013 = vmatprep.mubr.bf16.mxu1 %v7066_v55  ;;  %v1301_v55 = vld [vmem:[#allocation6 + $0x690] sm:$0xff]  ;;  %v1150_v45 = vld [vmem:[#allocation6 + $0x1d8] sm:$0xff]  ;;  %v5721_v50 = vcombine.high %v1325_v13, %v1329_v44 }
 0x28b   : > { %3872 = vmatprep.subr.bf16.mxu0 %v5673_v46  ;;  %3983 = vmatprep.subr.bf16.mxu1 %v5499_v48  ;;  %v5697_v15 = vcombine.high %v1301_v55, %v1305_v5  ;;  %v5696_v27 = vcombine.low %v1301_v55, %v1305_v5  ;;  %v1154_v46 = vld [vmem:[#allocation6 + $0x1f8] sm:$0xff]  ;;  %v5712_v48 = vcombine.low %v1317_v23, %v1321_v29  ;;  %v1365_v29 = vld [vmem:[#allocation6 + $0x890] sm:$0xff] }
 0x28c   : > { %v5547_v51 = vcombine.high %v1150_v45, %v1154_v46  ;;  %v5546_v58 = vcombine.low %v1150_v45, %v1154_v46  ;;  %v1377_v45 = vld [vmem:[#allocation6 + $0x8f0] sm:$0xff]  ;;  %v1198_v46 = vld [vmem:[#allocation6 + $0x358] sm:$0xff] }
 0x28d   : > { %3873 = vmatpush1.bf16.msra.mxu0 %v5672_v53  ;;  %v1337_v53 = vld [vmem:[#allocation6 + $0x7b0] sm:$0xff] }
 0x28e   : > { %3984 = vmatpush1.bf16.msra.mxu1 %v5498_v54  ;;  %3874 = vmatprep.subr.bf16.mxu0 %v5681_v26  ;;  %v1158_v54 = vld [vmem:[#allocation6 + $0x218] sm:$0xff]  ;;  %v5729_v59 = vcombine.high %v1333_v52, %v1337_v53 }
 0x28f   : > { %3985 = vmatprep.subr.bf16.mxu1 %v5507_v57  ;;  %v7134_v2 = vpop.f32.mrb[12].mxu1  ;;  %v1162_v26 = vld [vmem:[#allocation6 + $0x238] sm:$0xff]  ;;  %v5720_v57 = vcombine.low %v1325_v13, %v1329_v44  ;;  %v1373_v44 = vld [vmem:[#allocation6 + $0x8d0] sm:$0xff] }
 0x290   : > { %v7136_v22 = vpop.f32.mrb[13].mxu1  ;;  %v5555_v42 = vcombine.high %v1158_v54, %v1162_v26  ;;  %v5554_v55 = vcombine.low %v1158_v54, %v1162_v26  ;;  %v1385_v54 = vld [vmem:[#allocation6 + $0x930] sm:$0xff]  ;;  %v1206_v26 = vld [vmem:[#allocation6 + $0x398] sm:$0xff] }
 0x291   : > { %3875 = vmatpush1.bf16.msra.mxu0 %v5680_v61  ;;  %v3527_v8 = vpop.f32.mrb[14].mxu1  ;;  %v1345_v61 = vld [vmem:[#allocation6 + $0x7f0] sm:$0xff] }
 0x292   : > { %3986 = vmatpush1.bf16.msra.mxu1 %v5506_v62  ;;  %v3528_v12 = vpop.f32.mrb[15].mxu1  ;;  %3876 = vmatprep.subr.bf16.mxu0 %v5689_v1  ;;  %v1166_v62 = vld [vmem:[#allocation6 + $0x258] sm:$0xff]  ;;  %v5737_v5 = vcombine.high %v1341_v60, %v1345_v61  ;;  %v1353_v8 = vld [vmem:[#allocation6 + $0x830] sm:$0xff] }
 0x293   : > { %3987 = vmatprep.subr.bf16.mxu1 %v5515_v4  ;;  %v1170_v1 = vld [vmem:[#allocation6 + $0x278] sm:$0xff]  ;;  %v5728_v4 = vcombine.low %v1333_v52, %v1337_v53  ;;  %v1381_v53 = vld [vmem:[#allocation6 + $0x910] sm:$0xff] }
 0x294   : > { %v5563_v3 = vcombine.high %v1166_v62, %v1170_v1  ;;  %v1178_v12 = vld [vmem:[#allocation6 + $0x2b8] sm:$0xff] }
 0x295   : > { %3877 = vmatpush1.bf16.msra.mxu0 %v5688_v11  ;;  %v1174_v11 = vld [vmem:[#allocation6 + $0x298] sm:$0xff] }
 0x296   : > { %3988 = vmatpush1.bf16.msra.mxu1 %v5514_v14  ;;  %3878 = vmatprep.subr.bf16.mxu0 %v5697_v15  ;;  %v5736_v14 = vcombine.low %v1341_v60, %v1345_v61  ;;  %v5562_v15 = vcombine.low %v1166_v62, %v1170_v1  ;;  %v5571_v17 = vcombine.high %v1174_v11, %v1178_v12  ;;  %v1389_v61 = vld [vmem:[#allocation6 + $0x950] sm:$0xff]  ;;  %v1214_v1 = vld [vmem:[#allocation6 + $0x3d8] sm:$0xff] }
 0x297   : > { %3989 = vmatprep.subr.bf16.mxu1 %v5523_v16  ;;  %v5745_v16 = vcombine.high %v1349_v6, %v1353_v8  ;;  %v1393_v62 = vld [vmem:[#allocation6 + $0x970] sm:$0xff] }
 0x299   : > { %3879 = vmatpush1.bf16.msra.mxu0 %v5696_v27  ;;  %v1186_v27 = vld [vmem:[#allocation6 + $0x2f8] sm:$0xff] }
 0x29a   : > { %3990 = vmatpush1.bf16.msra.mxu1 %v5522_v28  ;;  %3880 = vmatprep.subr.bf16.mxu0 %v5705_v34  ;;  %v5744_v28 = vcombine.low %v1349_v6, %v1353_v8  ;;  %v5570_v34 = vcombine.low %v1174_v11, %v1178_v12  ;;  %v5579_v23 = vcombine.high %v1182_v20, %v1186_v27  ;;  %v1397_v8 = vld [vmem:[#allocation6 + $0x990] sm:$0xff]  ;;  %v1222_v12 = vld [vmem:[#allocation6 + $0x418] sm:$0xff] }
 0x29b   : > { %3991 = vmatprep.subr.bf16.mxu1 %v5531_v21  ;;  %v5753_v21 = vcombine.high %v1357_v18, %v1361_v19  ;;  %v1401_v11 = vld [vmem:[#allocation6 + $0x9b0] sm:$0xff] }
 0x29d   : > { %3881 = vmatpush1.bf16.msra.mxu0 %v5704_v35  ;;  %v1194_v35 = vld [vmem:[#allocation6 + $0x338] sm:$0xff] }
 0x29e   : > { %3992 = vmatpush1.bf16.msra.mxu1 %v5530_v36  ;;  %3882 = vmatprep.subr.bf16.mxu0 %v5713_v10  ;;  %v5752_v36 = vcombine.low %v1357_v18, %v1361_v19  ;;  %v5578_v10 = vcombine.low %v1182_v20, %v1186_v27  ;;  %v5587_v13 = vcombine.high %v1190_v33, %v1194_v35  ;;  %v1405_v19 = vld [vmem:[#allocation6 + $0x9d0] sm:$0xff]  ;;  %v1230_v27 = vld [vmem:[#allocation6 + $0x458] sm:$0xff] }
 0x29f   : > { %3993 = vmatprep.subr.bf16.mxu1 %v5539_v39  ;;  %v5761_v39 = vcombine.high %v1365_v29, %v1369_v32  ;;  %v1409_v20 = vld [vmem:[#allocation6 + $0x9f0] sm:$0xff] }
 0x2a1   : > { %3883 = vmatpush1.bf16.msra.mxu0 %v5712_v48  ;;  %v1202_v48 = vld [vmem:[#allocation6 + $0x378] sm:$0xff] }
 0x2a2   : > { %3994 = vmatpush1.bf16.msra.mxu1 %v5538_v49  ;;  %3884 = vmatprep.subr.bf16.mxu0 %v5721_v50  ;;  %v5760_v49 = vcombine.low %v1365_v29, %v1369_v32  ;;  %v5586_v50 = vcombine.low %v1190_v33, %v1194_v35  ;;  %v5595_v52 = vcombine.high %v1198_v46, %v1202_v48  ;;  %v1413_v32 = vld [vmem:[#allocation6 + $0xa10] sm:$0xff]  ;;  %v1238_v35 = vld [vmem:[#allocation6 + $0x498] sm:$0xff] }
 0x2a3   : > { %3995 = vmatprep.subr.bf16.mxu1 %v5547_v51  ;;  %v5769_v51 = vcombine.high %v1373_v44, %v1377_v45  ;;  %v1417_v33 = vld [vmem:[#allocation6 + $0xa30] sm:$0xff] }
 0x2a5   : > { %3885 = vmatpush1.bf16.msra.mxu0 %v5720_v57  ;;  %v1210_v57 = vld [vmem:[#allocation6 + $0x3b8] sm:$0xff] }
 0x2a6   : > { %3996 = vmatpush1.bf16.msra.mxu1 %v5546_v58  ;;  %3886 = vmatprep.subr.bf16.mxu0 %v5729_v59  ;;  %v5768_v58 = vcombine.low %v1373_v44, %v1377_v45  ;;  %v5594_v59 = vcombine.low %v1198_v46, %v1202_v48  ;;  %v5603_v60 = vcombine.high %v1206_v26, %v1210_v57  ;;  %v1421_v45 = vld [vmem:[#allocation6 + $0xa50] sm:$0xff]  ;;  %v1246_v48 = vld [vmem:[#allocation6 + $0x4d8] sm:$0xff] }
 0x2a7   : > { %3997 = vmatprep.subr.bf16.mxu1 %v5555_v42  ;;  %v5777_v42 = vcombine.high %v1381_v53, %v1385_v54  ;;  %v1425_v46 = vld [vmem:[#allocation6 + $0xa70] sm:$0xff] }
 0x2a9   : > { %3887 = vmatpush1.bf16.msra.mxu0 %v5728_v4  ;;  %v1218_v4 = vld [vmem:[#allocation6 + $0x3f8] sm:$0xff] }
 0x2aa   : > { %3998 = vmatpush1.bf16.msra.mxu1 %v5554_v55  ;;  %3888 = vmatprep.subr.bf16.mxu0 %v5737_v5  ;;  %v5776_v55 = vcombine.low %v1381_v53, %v1385_v54  ;;  %v5602_v5 = vcombine.low %v1206_v26, %v1210_v57  ;;  %v5611_v6 = vcombine.high %v1214_v1, %v1218_v4  ;;  %v1429_v53 = vld [vmem:[#allocation6 + $0xa90] sm:$0xff]  ;;  %v1258_v26 = vld [vmem:[#allocation6 + $0x538] sm:$0xff] }
 0x2ab   : > { %3999 = vmatprep.subr.bf16.mxu1 %v5563_v3  ;;  %v5785_v3 = vcombine.high %v1389_v61, %v1393_v62  ;;  %v1433_v54 = vld [vmem:[#allocation6 + $0xab0] sm:$0xff]  ;;  %v5816_v57 = vcombine.low %v1421_v45, %v1425_v46 }
 0x2ad   : > { %3889 = vmatpush1.bf16.msra.mxu0 %v5736_v14  ;;  %v1226_v14 = vld [vmem:[#allocation6 + $0x438] sm:$0xff] }
 0x2ae   : > { %4000 = vmatpush1.bf16.msra.mxu1 %v5562_v15  ;;  %3899 = vmatprep.subr.bf16.mxu0 %v5745_v16  ;;  %v5784_v15 = vcombine.low %v1389_v61, %v1393_v62  ;;  %v5610_v16 = vcombine.low %v1214_v1, %v1218_v4  ;;  %v5619_v18 = vcombine.high %v1222_v12, %v1226_v14  ;;  %v1441_v61 = vld [vmem:[#allocation6 + $0xaf0] sm:$0xff]  ;;  %v1262_v62 = vld [vmem:[#allocation6 + $0x558] sm:$0xff] }
 0x2af   : > { %4001 = vmatprep.subr.bf16.mxu1 %v5571_v17  ;;  %v5793_v17 = vcombine.high %v1397_v8, %v1401_v11  ;;  %v1266_v1 = vld [vmem:[#allocation6 + $0x578] sm:$0xff]  ;;  %v5824_v4 = vcombine.low %v1429_v53, %v1433_v54 }
 0x2b0   : > { %3891 = vmatmul.mubr.bf16.vlgmr.msra.gmra.mrb[8].mxu0 %v7090_v63 }
 0x2b1   : > { %3900 = vmatpush1.bf16.msra.mxu0 %v5744_v28  ;;  %3931 = vmatprep.mubr.bf16.mxu0 %v7095_v9  ;;  %v1234_v28 = vld [vmem:[#allocation6 + $0x478] sm:$0xff] }
 0x2b2   : > { %4002 = vmatpush1.bf16.msra.mxu1 %v5570_v34  ;;  %3901 = vmatprep.subr.bf16.mxu0 %v5753_v21  ;;  %v5792_v34 = vcombine.low %v1397_v8, %v1401_v11  ;;  %v5618_v21 = vcombine.low %v1222_v12, %v1226_v14  ;;  %v5627_v29 = vcombine.high %v1230_v27, %v1234_v28  ;;  %v1449_v8 = vld [vmem:[#allocation6 + $0xb30] sm:$0xff]  ;;  %v1270_v11 = vld [vmem:[#allocation6 + $0x598] sm:$0xff] }
 0x2b3   : > { %4003 = vmatprep.subr.bf16.mxu1 %v5579_v23  ;;  %v5801_v23 = vcombine.high %v1405_v19, %v1409_v20  ;;  %v1274_v12 = vld [vmem:[#allocation6 + $0x5b8] sm:$0xff] }
 0x2b5   : > { %3902 = vmatpush1.bf16.msra.mxu0 %v5752_v36  ;;  %v1242_v36 = vld [vmem:[#allocation6 + $0x4b8] sm:$0xff] }
 0x2b6   : > { %4004 = vmatpush1.bf16.msra.mxu1 %v5578_v10  ;;  %3903 = vmatprep.subr.bf16.mxu0 %v5761_v39  ;;  %v5800_v10 = vcombine.low %v1405_v19, %v1409_v20  ;;  %v5626_v39 = vcombine.low %v1230_v27, %v1234_v28  ;;  %v5635_v44 = vcombine.high %v1238_v35, %v1242_v36  ;;  %v1457_v19 = vld [vmem:[#allocation6 + $0xb70] sm:$0xff]  ;;  %v1278_v20 = vld [vmem:[#allocation6 + $0x5d8] sm:$0xff] }
 0x2b7   : > { %4005 = vmatprep.subr.bf16.mxu1 %v5587_v13  ;;  %v5809_v13 = vcombine.high %v1413_v32, %v1417_v33  ;;  %v1282_v27 = vld [vmem:[#allocation6 + $0x5f8] sm:$0xff] }
 0x2b9   : > { %3904 = vmatpush1.bf16.msra.mxu0 %v5760_v49  ;;  %v1250_v49 = vld [vmem:[#allocation6 + $0x4f8] sm:$0xff] }
 0x2ba   : > { %4006 = vmatpush1.bf16.msra.mxu1 %v5586_v50  ;;  %3905 = vmatprep.subr.bf16.mxu0 %v5769_v51  ;;  %v5808_v50 = vcombine.low %v1413_v32, %v1417_v33  ;;  %v5634_v51 = vcombine.low %v1238_v35, %v1242_v36  ;;  %v1465_v32 = vld [vmem:[#allocation6 + $0xbb0] sm:$0xff]  ;;  %v1286_v33 = vld [vmem:[#allocation6 + $0x618] sm:$0xff] }
 0x2bb   : > { %4007 = vmatprep.subr.bf16.mxu1 %v5595_v52  ;;  %v5643_v52 = vcombine.high %v1246_v48, %v1250_v49  ;;  %v1290_v35 = vld [vmem:[#allocation6 + $0x638] sm:$0xff] }
 0x2bd   : > { %3906 = vmatpush1.bf16.msra.mxu0 %v5768_v58  ;;  %v5642_v58 = vcombine.low %v1246_v48, %v1250_v49  ;;  %v1298_v48 = vld [vmem:[#allocation6 + $0x678] sm:$0xff] }
 0x2be   : > { %4008 = vmatpush1.bf16.msra.mxu1 %v5594_v59  ;;  %3907 = vmatprep.subr.bf16.mxu0 %v5777_v42  ;;  %v5825_v59 = vcombine.high %v1429_v53, %v1433_v54  ;;  %v1481_v53 = vld [vmem:[#allocation6 + $0xc30] sm:$0xff]  ;;  %v1302_v54 = vld [vmem:[#allocation6 + $0x698] sm:$0xff] }
 0x2bf   : > { %4009 = vmatprep.subr.bf16.mxu1 %v5603_v60  ;;  %v1437_v60 = vld [vmem:[#allocation6 + $0xad0] sm:$0xff] }
 0x2c0   : > { %v5832_v14 = vcombine.low %v1437_v60, %v1441_v61 }
 0x2c1   : > { %3908 = vmatpush1.bf16.msra.mxu0 %v5776_v55 }
 0x2c2   : > { %4010 = vmatpush1.bf16.msra.mxu1 %v5602_v5  ;;  %3909 = vmatprep.subr.bf16.mxu0 %v5785_v3  ;;  %v5833_v5 = vcombine.high %v1437_v60, %v1441_v61  ;;  %v5659_v3 = vcombine.high %v1262_v62, %v1266_v1  ;;  %v1314_v60 = vld [vmem:[#allocation6 + $0x6f8] sm:$0xff] }
 0x2c3   : > { %4011 = vmatprep.subr.bf16.mxu1 %v5611_v6  ;;  %v1445_v6 = vld [vmem:[#allocation6 + $0xb10] sm:$0xff] }
 0x2c4   : > { %v5840_v28 = vcombine.low %v1445_v6, %v1449_v8 }
 0x2c5   : > { %3910 = vmatpush1.bf16.msra.mxu0 %v5784_v15  ;;  %v5658_v15 = vcombine.low %v1262_v62, %v1266_v1  ;;  %v6302_v1 = vld [vmem:[#allocation9 + $0x4] ss:$8 sps:$4 sm:$0xff]  }
 0x2c6   : > { %4012 = vmatpush1.bf16.msra.mxu1 %v5610_v16  ;;  %3911 = vmatprep.subr.bf16.mxu0 %v5793_v17  ;;  %v5841_v16 = vcombine.high %v1445_v6, %v1449_v8  ;;  %v5667_v17 = vcombine.high %v1270_v11, %v1274_v12  ;;  %v1326_v8 = vld [vmem:[#allocation6 + $0x758] sm:$0xff] }
 0x2c7   : > { %4022 = vmatprep.subr.bf16.mxu1 %v5619_v18  ;;  %v1453_v18 = vld [vmem:[#allocation6 + $0xb50] sm:$0xff] }
 0x2c8   : > { %v5848_v36 = vcombine.low %v1453_v18, %v1457_v19 }
 0x2c9   : > { %4014 = vmatmul.mubr.bf16.vlgmr.msra.gmra.mrb[20].mxu1 %v7068_v56  ;;  %3912 = vmatpush1.bf16.msra.mxu0 %v5792_v34  ;;  %v5817_v56 = vcombine.high %v1421_v45, %v1425_v46  ;;  %v5666_v34 = vcombine.low %v1270_v11, %v1274_v12  ;;  %v1473_v45 = vld [vmem:[#allocation6 + $0xbf0] sm:$0xff]  ;;  %v1294_v46 = vld [vmem:[#allocation6 + $0x658] sm:$0xff] }
 0x2ca   : > { %4023 = vmatpush1.bf16.msra.mxu1 %v5618_v21  ;;  %4054 = vmatprep.mubr.bf16.mxu1 %v7092_v0  ;;  %v1254_v0 = vld [vmem:[#allocation6 + $0x518] sm:$0xff]  ;;  %v5849_v21 = vcombine.high %v1453_v18, %v1457_v19 }
 0x2cb   : > { %3913 = vmatprep.subr.bf16.mxu0 %v5801_v23  ;;  %4024 = vmatprep.subr.bf16.mxu1 %v5627_v29  ;;  %v5651_v42 = vcombine.high %v1254_v0, %v1258_v26  ;;  %v5650_v55 = vcombine.low %v1254_v0, %v1258_v26  ;;  %v5675_v23 = vcombine.high %v1278_v20, %v1282_v27  ;;  %v1461_v29 = vld [vmem:[#allocation6 + $0xb90] sm:$0xff]  ;;  %v1306_v0 = vld [vmem:[#allocation6 + $0x6b8] sm:$0xff] }
 0x2cc   : > { %v5856_v49 = vcombine.low %v1461_v29, %v1465_v32  ;;  %v5698_v62 = vcombine.low %v1302_v54, %v1306_v0  ;;  %v1330_v11 = vld [vmem:[#allocation6 + $0x778] sm:$0xff] }
 0x2cd   : > { %3914 = vmatpush1.bf16.msra.mxu0 %v5800_v10  ;;  %v5674_v10 = vcombine.low %v1278_v20, %v1282_v27  ;;  %v5722_v18 = vcombine.low %v1326_v8, %v1330_v11  ;;  %v6305_v19 = vld [vmem:[#allocation9 + $0x14] ss:$8 sps:$4 sm:$0xff]  }
 0x2ce   : > { %4025 = vmatpush1.bf16.msra.mxu1 %v5626_v39  ;;  %3915 = vmatprep.subr.bf16.mxu0 %v5809_v13  ;;  %v5857_v39 = vcombine.high %v1461_v29, %v1465_v32  ;;  %v5683_v13 = vcombine.high %v1286_v33, %v1290_v35  ;;  %v7144_v20 = vld [vmem:[#allocation7] sm:$0xff]  ;;  %v6308_v32 = vld [vmem:[#allocation9 + $0x24] ss:$8 sps:$4 sm:$0xff]  }
 0x2cf   : > { %4026 = vmatprep.subr.bf16.mxu1 %v5635_v44  ;;  %v1469_v44 = vld [vmem:[#allocation6 + $0xbd0] sm:$0xff] }
 0x2d0   : > { %v5864_v26 = vcombine.low %v1469_v44, %v1473_v45 }
 0x2d1   : > { %3916 = vmatpush1.bf16.msra.mxu0 %v5808_v50  ;;  %v5682_v50 = vcombine.low %v1286_v33, %v1290_v35  ;;  %v1492_v33 = vrot.slane %v7144_v20, %v7060_v43 }
 0x2d2   : > { %4027 = vmatpush1.bf16.msra.mxu1 %v5634_v51  ;;  %3917 = vmatprep.subr.bf16.mxu0 %v5817_v56  ;;  %v5865_v51 = vcombine.high %v1469_v44, %v1473_v45  ;;  %v5691_v56 = vcombine.high %v1294_v46, %v1298_v48  ;;  %v6311_v45 = vld [vmem:[#allocation9 + $0x34] ss:$8 sps:$4 sm:$0xff]  }
 0x2d3   : > { %4028 = vmatprep.subr.bf16.mxu1 %v5643_v52  ;;  %v1477_v52 = vld [vmem:[#allocation6 + $0xc10] sm:$0xff] }
 0x2d4   : > { %v5872_v61 = vcombine.low %v1477_v52, %v1481_v53 }
 0x2d5   : > { %3918 = vmatpush1.bf16.msra.mxu0 %v5816_v57  ;;  %v5690_v57 = vcombine.low %v1294_v46, %v1298_v48  ;;  %v3526_v46 = vadd.f32 %v7136_v22, %v1492_v33  ;;  %v6329_v33 = vld [vmem:[#allocation9 + $0x94] ss:$8 sps:$4 sm:$0xff]  }
 0x2d6   : > { %4029 = vmatpush1.bf16.msra.mxu1 %v5642_v58  ;;  %3919 = vmatprep.subr.bf16.mxu0 %v5825_v59  ;;  %v5873_v58 = vcombine.high %v1477_v52, %v1481_v53  ;;  %v5699_v59 = vcombine.high %v1302_v54, %v1306_v0  ;;  %v1362_v52 = vld [vmem:[#allocation6 + $0x878] sm:$0xff] }
 0x2d7   : > { %4030 = vmatprep.subr.bf16.mxu1 %v5651_v42  ;;  %v1310_v42 = vld [vmem:[#allocation6 + $0x6d8] sm:$0xff] }
 0x2d8   : > { %v6309_v0 = vld [vmem:[#allocation9 + $0x30] ss:$8 sps:$4 sm:$0xff]  }
 0x2d9   : > { %3920 = vmatpush1.bf16.msra.mxu0 %v5824_v4  ;;  %v5707_v4 = vcombine.high %v1310_v42, %v1314_v60 }
 0x2da   : > { %4031 = vmatpush1.bf16.msra.mxu1 %v5650_v55  ;;  %3921 = vmatprep.subr.bf16.mxu0 %v5833_v5  ;;  %v1318_v55 = vld [vmem:[#allocation6 + $0x718] sm:$0xff] }
 0x2db   : > { %4032 = vmatprep.subr.bf16.mxu1 %v5659_v3  ;;  %v1322_v5 = vld [vmem:[#allocation6 + $0x738] sm:$0xff]  ;;  %v5706_v3 = vcombine.low %v1310_v42, %v1314_v60 }
 0x2dc   : > { %v5715_v6 = vcombine.high %v1318_v55, %v1322_v5  ;;  %v5714_v12 = vcombine.low %v1318_v55, %v1322_v5  ;;  %v1370_v42 = vld [vmem:[#allocation6 + $0x8b8] sm:$0xff] }
 0x2dd   : > { %3922 = vmatpush1.bf16.msra.mxu0 %v5832_v14  ;;  %v5723_v14 = vcombine.high %v1326_v8, %v1330_v11  ;;  %v1374_v55 = vld [vmem:[#allocation6 + $0x8d8] sm:$0xff]  ;;  %v6320_v8 = vld [vmem:[#allocation9 + $0x64] ss:$8 sps:$4 sm:$0xff]  }
 0x2de   : > { %4033 = vmatpush1.bf16.msra.mxu1 %v5658_v15  ;;  %3923 = vmatprep.subr.bf16.mxu0 %v5841_v16  ;;  %v1334_v15 = vld [vmem:[#allocation6 + $0x798] sm:$0xff] }
 0x2df   : > { %4034 = vmatprep.subr.bf16.mxu1 %v5667_v17  ;;  %v1338_v16 = vld [vmem:[#allocation6 + $0x7b8] sm:$0xff]  ;;  %v6300_v17 = vld [vmem:[#allocation9] ss:$8 sps:$4 sm:$0xff]  }
 0x2e0   : > { %v5731_v27 = vcombine.high %v1334_v15, %v1338_v16  ;;  %v5730_v29 = vcombine.low %v1334_v15, %v1338_v16  ;;  %v1378_v5 = vld [vmem:[#allocation6 + $0x8f8] sm:$0xff] }
 0x2e1   : > { %3924 = vmatpush1.bf16.msra.mxu0 %v5840_v28  ;;  %v1342_v28 = vld [vmem:[#allocation6 + $0x7d8] sm:$0xff] }
 0x2e2   : > { %4035 = vmatpush1.bf16.msra.mxu1 %v5666_v34  ;;  %3925 = vmatprep.subr.bf16.mxu0 %v5849_v21  ;;  %v1346_v34 = vld [vmem:[#allocation6 + $0x7f8] sm:$0xff] }
 0x2e3   : > { %4036 = vmatprep.subr.bf16.mxu1 %v5675_v23  ;;  %v6303_v21 = vld [vmem:[#allocation9 + $0x10] ss:$8 sps:$4 sm:$0xff]   ;;  %v1488_v23 = vrot.slane %v7144_v20, %v7055_v41  ;;  %v5739_v35 = vcombine.high %v1342_v28, %v1346_v34  ;;  %v5738_v44 = vcombine.low %v1342_v28, %v1346_v34  ;;  %v6323_v15 = vld [vmem:[#allocation9 + $0x74] ss:$8 sps:$4 sm:$0xff]   ;;  %v6326_v28 = vld [vmem:[#allocation9 + $0x84] ss:$8 sps:$4 sm:$0xff]  }
 0x2e4   : > { %v1382_v11 = vld [vmem:[#allocation6 + $0x918] sm:$0xff] }
 0x2e5   : > { %3926 = vmatpush1.bf16.msra.mxu0 %v5848_v36  ;;  %v1350_v36 = vld [vmem:[#allocation6 + $0x818] sm:$0xff] }
 0x2e6   : > { %4037 = vmatpush1.bf16.msra.mxu1 %v5674_v10  ;;  %3927 = vmatprep.subr.bf16.mxu0 %v5857_v39  ;;  %v1354_v10 = vld [vmem:[#allocation6 + $0x838] sm:$0xff]  ;;  %v6306_v39 = vld [vmem:[#allocation9 + $0x20] ss:$8 sps:$4 sm:$0xff]  }
 0x2e7   : > { %4038 = vmatprep.subr.bf16.mxu1 %v5683_v13  ;;  %v3524_v13 = vadd.f32 %v7134_v2, %v1488_v23  ;;  %v1402_v23 = vld [vmem:[#allocation6 + $0x9b8] sm:$0xff] }
 0x2e9   : > { %3928 = vmatpush1.bf16.msra.mxu0 %v5856_v49  ;;  %v5747_v49 = vcombine.high %v1350_v36, %v1354_v10 }
 0x2ea   : > { %4039 = vmatpush1.bf16.msra.mxu1 %v5682_v50  ;;  %3929 = vmatprep.subr.bf16.mxu0 %v5865_v51 }
 0x2eb   : > { %4040 = vmatprep.subr.bf16.mxu1 %v5691_v56  ;;  %v1358_v56 = vld [vmem:[#allocation6 + $0x858] sm:$0xff] }
 0x2ec   : > { %v5755_v22 = vcombine.high %v1358_v56, %v1362_v52 }
 0x2ed   : > { %3930 = vmatpush1.bf16.msra.mxu0 %v5864_v26  ;;  %v5746_v26 = vcombine.low %v1350_v36, %v1354_v10  ;;  %v1406_v36 = vld [vmem:[#allocation6 + $0x9d8] sm:$0xff] }
 0x2ee   : > { %4041 = vmatpush1.bf16.msra.mxu1 %v5690_v57  ;;  %3940 = vmatprep.subr.bf16.mxu0 %v5873_v58  ;;  %v6314_v58 = vld [vmem:[#allocation9 + $0x44] ss:$8 sps:$4 sm:$0xff]   ;;  %v1410_v10 = vld [vmem:[#allocation6 + $0x9f8] sm:$0xff] }
 0x2ef   : > { %4042 = vmatprep.subr.bf16.mxu1 %v5699_v59  ;;  %v1366_v59 = vld [vmem:[#allocation6 + $0x898] sm:$0xff] }
 0x2f0   : > { %3932 = vmatmul.mubr.bf16.vlgmr.msra.gmra.mrb[8].mxu0 %v7112_v47 }
 0x2f1   : > { %3941 = vmatpush1.bf16.msra.mxu0 %v5872_v61  ;;  %3972 = vmatprep.mubr.bf16.mxu0 %v6735_v31  ;;  %v6312_v61 = vld [vmem:[#allocation9 + $0x40] ss:$8 sps:$4 sm:$0xff]  }
 0x2f2   : > { %4043 = vmatpush1.bf16.msra.mxu1 %v5698_v62  ;;  %4921 = vmatprep.subr.bf16.mxu0 %v6302_v1  ;;  %v5754_v62 = vcombine.low %v1358_v56, %v1362_v52  ;;  %v6317_v1 = vld [vmem:[#allocation9 + $0x54] ss:$8 sps:$4 sm:$0xff]  }
 0x2f3   : > { %4044 = vmatprep.subr.bf16.mxu1 %v5707_v4  ;;  %v5763_v4 = vcombine.high %v1366_v59, %v1370_v42  ;;  %v6335_v56 = vld [vmem:[#allocation9 + $0xb4] ss:$8 sps:$4 sm:$0xff]  }
 0x2f6   : > { %4045 = vmatpush1.bf16.msra.mxu1 %v5706_v3  ;;  %v6315_v3 = vld [vmem:[#allocation9 + $0x50] ss:$8 sps:$4 sm:$0xff]  }
 0x2f7   : > { %4046 = vmatprep.subr.bf16.mxu1 %v5715_v6  ;;  %v5762_v6 = vcombine.low %v1366_v59, %v1370_v42  ;;  %v6336_v59 = vld [vmem:[#allocation9 + $0xc0] ss:$8 sps:$4 sm:$0xff]  }
 0x2fa   : > { %4047 = vmatpush1.bf16.msra.mxu1 %v5714_v12  ;;  %v1386_v12 = vld [vmem:[#allocation6 + $0x938] sm:$0xff] }
 0x2fb   : > { %4048 = vmatprep.subr.bf16.mxu1 %v5723_v14  ;;  %v5770_v14 = vcombine.low %v1374_v55, %v1378_v5  ;;  %v5779_v16 = vcombine.high %v1382_v11, %v1386_v12 }
 0x2fc   : > { %5878 = vmatmul.mubr.msk.bf16.vlgmr.msra.gmra.mrb[8].mxu0 %vm3485_vm3, %v7120_v7 }
 0x2fd   : > { %4922 = vmatpush1.bf16.msra.mxu0 %v6300_v17  ;;  %v1390_v17 = vld [vmem:[#allocation6 + $0x958] sm:$0xff] }
 0x2fe   : > { %4049 = vmatpush1.bf16.msra.mxu1 %v5722_v18  ;;  %4923 = vmatprep.subr.bf16.mxu0 %v6305_v19  ;;  %v1394_v18 = vld [vmem:[#allocation6 + $0x978] sm:$0xff] }
 0x2ff   : > { %4050 = vmatprep.subr.bf16.mxu1 %v5731_v27  ;;  %v6321_v19 = vld [vmem:[#allocation9 + $0x70] ss:$8 sps:$4 sm:$0xff]   ;;  %v5778_v27 = vcombine.low %v1382_v11, %v1386_v12  ;;  %v5787_v34 = vcombine.high %v1390_v17, %v1394_v18  ;;  %v6347_v12 = vld [vmem:[#allocation9 + $0xf4] ss:$8 sps:$4 sm:$0xff]  }
 0x301   : > { %4924 = vmatpush1.bf16.msra.mxu0 %v6303_v21  ;;  %v1398_v21 = vld [vmem:[#allocation6 + $0x998] sm:$0xff] }
 0x302   : > { %4051 = vmatpush1.bf16.msra.mxu1 %v5730_v29  ;;  %4925 = vmatprep.subr.bf16.mxu0 %v6308_v32  ;;  %v6324_v29 = vld [vmem:[#allocation9 + $0x80] ss:$8 sps:$4 sm:$0xff]   ;;  %v5786_v32 = vcombine.low %v1390_v17, %v1394_v18 }
 0x303   : > { %v3646_v48 = vpop.f32.mrb[4].mxu0  ;;  %4052 = vmatprep.subr.bf16.mxu1 %v5739_v35  ;;  %v5795_v35 = vcombine.high %v1398_v21, %v1402_v23 }
 0x304   : > { %v7154_v50 = vadd.f32 %v3646_v48, %v3524_v13  ;;  %v3648_v51 = vpop.f32.mrb[5].mxu0  ;;  %v5794_v13 = vcombine.low %v1398_v21, %v1402_v23  ;;  %v1418_v48 = vld [vmem:[#allocation6 + $0xa38] sm:$0xff]  ;;  %v6348_v21 = vld [vmem:[#allocation9 + $0x100] ss:$8 sps:$4 sm:$0xff]  }
 0x305   : > { %4926 = vmatpush1.bf16.msra.mxu0 %v6306_v39  ;;  %v6051_v53 = vadd.f32 %v3648_v51, %v3526_v46  ;;  %v3650_v54 = vpop.f32.mrb[6].mxu0  ;;  %v6327_v39 = vld [vmem:[#allocation9 + $0x90] ss:$8 sps:$4 sm:$0xff]   ;;  %v5802_v51 = vcombine.low %v1406_v36, %v1410_v10 }
 0x306   : > { %4053 = vmatpush1.bf16.msra.mxu1 %v5738_v44  ;;  %v3651_v2 = vpop.f32.mrb[7].mxu0  ;;  %4927 = vmatprep.subr.bf16.mxu0 %v6311_v45  ;;  %v6332_v44 = vld [vmem:[#allocation9 + $0xa4] ss:$8 sps:$4 sm:$0xff]   ;;  %v5803_v45 = vcombine.high %v1406_v36, %v1410_v10  ;;  %v1414_v46 = vld [vmem:[#allocation6 + $0xa18] sm:$0xff]  ;;  %v4145_v17 = vmax.f32 %v7154_v50, 0.0 }
 0x307   : > { %v4146_v57 = vmax.f32 %v6051_v53, 0.0  ;;  %4063 = vmatprep.subr.bf16.mxu1 %v5747_v49  ;;  %v6330_v49 = vld [vmem:[#allocation9 + $0xa0] ss:$8 sps:$4 sm:$0xff]   ;;  %v5811_v52 = vcombine.high %v1414_v46, %v1418_v48  ;;  %v1422_v53 = vld [vmem:[#allocation6 + $0xa58] sm:$0xff]  ;;  %v5810_v2 = vcombine.low %v1414_v46, %v1418_v48 }
 0x308   : > { %v1426_v54 = vld [vmem:[#allocation6 + $0xa78] sm:$0xff]  ;;  %v4153_v23 = vpack.c.bf16 %v4145_v17, %v4145_v17  ;;  %v6354_v46 = vld [vmem:[#allocation9 + $0x120] ss:$8 sps:$4 sm:$0xff]  }
 0x309   : > { %v4154_v60 = vpack.c.bf16 %v4146_v57, %v4146_v57  ;;  %4055 = vmatmul.mubr.bf16.vlgmr.msra.gmra.mrb[20].mxu1 %v7090_v63  ;;  %4928 = vmatpush1.bf16.msra.mxu0 %v6309_v0  ;;  %v5771_v63 = vcombine.high %v1374_v55, %v1378_v5  ;;  %v6333_v0 = vld [vmem:[#allocation9 + $0xb0] ss:$8 sps:$4 sm:$0xff]   ;;  %v5819_v57 = vcombine.high %v1422_v53, %v1426_v54  ;;  %v6344_v5 = vld [vmem:[#allocation9 + $0xe4] ss:$8 sps:$4 sm:$0xff]  }
 0x30a   : > { %4064 = vmatpush1.bf16.msra.mxu1 %v5746_v26  ;;  %4095 = vmatprep.mubr.bf16.mxu1 %v7095_v9  ;;  %v6318_v9 = vld [vmem:[#allocation9 + $0x60] ss:$8 sps:$4 sm:$0xff]   ;;  %v6338_v26 = vld [vmem:[#allocation9 + $0xc4] ss:$8 sps:$4 sm:$0xff]   ;;  %v5818_v42 = vcombine.low %v1422_v53, %v1426_v54  ;;  %v1474_v50 = vld [vmem:[#allocation6 + $0xbf8] sm:$0xff] }
 0x30b   : > { %4929 = vmatprep.subr.bf16.mxu0 %v6314_v58  ;;  %4065 = vmatprep.subr.bf16.mxu1 %v5755_v22  ;;  %v1430_v58 = vld [vmem:[#allocation6 + $0xa98] sm:$0xff]  ;;  %v6362_v53 = vld [vmem:[#allocation9 + $0x144] ss:$8 sps:$4 sm:$0xff]   ;;  %v6360_v54 = vld [vmem:[#allocation9 + $0x140] ss:$8 sps:$4 sm:$0xff]  }
 0x30c   : > { %4953 = vmatprep.mubr.bf16.mxu0 %v4154_v60  ;;  %v1434_v22 = vld [vmem:[#allocation6 + $0xab8] sm:$0xff] }
 0x30d   : > { %4930 = vmatpush1.bf16.msra.mxu0 %v6312_v61  ;;  %v6341_v60 = vld [vmem:[#allocation9 + $0xd4] ss:$8 sps:$4 sm:$0xff]   ;;  %v5827_v61 = vcombine.high %v1430_v58, %v1434_v22  ;;  %v5826_v55 = vcombine.low %v1430_v58, %v1434_v22  ;;  %v6351_v36 = vld [vmem:[#allocation9 + $0x110] ss:$8 sps:$4 sm:$0xff]   ;;  %v6374_v22 = vld [vmem:[#allocation9 + $0x184] ss:$8 sps:$4 sm:$0xff]  }
 0x30e   : > { %4066 = vmatpush1.bf16.msra.mxu1 %v5754_v62  ;;  %4931 = vmatprep.subr.bf16.mxu0 %v6317_v1  ;;  %v1438_v62 = vld [vmem:[#allocation6 + $0xad8] sm:$0xff] }
 0x30f   : > { %4067 = vmatprep.subr.bf16.mxu1 %v5763_v4  ;;  %v1442_v1 = vld [vmem:[#allocation6 + $0xaf8] sm:$0xff] }
 0x310   : > { %v6339_v4 = vld [vmem:[#allocation9 + $0xd0] ss:$8 sps:$4 sm:$0xff]   ;;  %v5834_v11 = vcombine.low %v1438_v62, %v1442_v1  ;;  %v6371_v58 = vld [vmem:[#allocation9 + $0x174] ss:$8 sps:$4 sm:$0xff]  }
 0x311   : > { %4932 = vmatpush1.bf16.msra.mxu0 %v6315_v3  ;;  %v5835_v3 = vcombine.high %v1438_v62, %v1442_v1  ;;  %v6375_v62 = vld [vmem:[#allocation9 + $0x190] ss:$8 sps:$4 sm:$0xff]  }
 0x312   : > { %4068 = vmatpush1.bf16.msra.mxu1 %v5762_v6  ;;  %4933 = vmatprep.subr.bf16.mxu0 %v6320_v8  ;;  %v1446_v6 = vld [vmem:[#allocation6 + $0xb18] sm:$0xff] }
 0x313   : > { %4069 = vmatprep.subr.bf16.mxu1 %v5771_v63  ;;  %v1450_v8 = vld [vmem:[#allocation6 + $0xb38] sm:$0xff]  ;;  %v6342_v63 = vld [vmem:[#allocation9 + $0xe0] ss:$8 sps:$4 sm:$0xff]  }
 0x314   : > { %v5842_v18 = vcombine.low %v1446_v6, %v1450_v8 }
 0x315   : > { %4934 = vmatpush1.bf16.msra.mxu0 %v6318_v9  ;;  %v5843_v9 = vcombine.high %v1446_v6, %v1450_v8  ;;  %v6383_v8 = vld [vmem:[#allocation9 + $0x1b4] ss:$8 sps:$4 sm:$0xff]  }
 0x316   : > { %4070 = vmatpush1.bf16.msra.mxu1 %v5770_v14  ;;  %4935 = vmatprep.subr.bf16.mxu0 %v6323_v15  ;;  %v1454_v14 = vld [vmem:[#allocation6 + $0xb58] sm:$0xff] }
 0x317   : > { %4071 = vmatprep.subr.bf16.mxu1 %v5779_v16  ;;  %v1458_v15 = vld [vmem:[#allocation6 + $0xb78] sm:$0xff] }
 0x318   : > { %v6345_v16 = vld [vmem:[#allocation9 + $0xf0] ss:$8 sps:$4 sm:$0xff]  }
 0x319   : > { %4936 = vmatpush1.bf16.msra.mxu0 %v6321_v19  ;;  %v6350_v19 = vld [vmem:[#allocation9 + $0x104] ss:$8 sps:$4 sm:$0xff]  }
 0x31a   : > { %4072 = vmatpush1.bf16.msra.mxu1 %v5778_v27  ;;  %4937 = vmatprep.subr.bf16.mxu0 %v6326_v28  ;;  %v5851_v27 = vcombine.high %v1454_v14, %v1458_v15  ;;  %v1462_v28 = vld [vmem:[#allocation6 + $0xb98] sm:$0xff] }
 0x31b   : > { %4073 = vmatprep.subr.bf16.mxu1 %v5787_v34  ;;  %v1466_v34 = vld [vmem:[#allocation6 + $0xbb8] sm:$0xff] }
 0x31c   : > { %v5858_v10 = vcombine.low %v1462_v28, %v1466_v34 }
 0x31d   : > { %4938 = vmatpush1.bf16.msra.mxu0 %v6324_v29  ;;  %v5850_v29 = vcombine.low %v1454_v14, %v1458_v15  ;;  %v1496_v14 = vrot.slane %v7144_v20, %v518_v25  ;;  %v6392_v15 = vld [vmem:[#allocation9 + $0x1e4] ss:$8 sps:$4 sm:$0xff]   ;;  %v6399_v25 = vld [vmem:[#allocation9 + $0x210] ss:$8 sps:$4 sm:$0xff]  }
 0x31e   : > { %4074 = vmatpush1.bf16.msra.mxu1 %v5786_v32  ;;  %4939 = vmatprep.subr.bf16.mxu0 %v6329_v33  ;;  %v6353_v32 = vld [vmem:[#allocation9 + $0x114] ss:$8 sps:$4 sm:$0xff]   ;;  %v5859_v33 = vcombine.high %v1462_v28, %v1466_v34  ;;  %v6398_v28 = vld [vmem:[#allocation9 + $0x204] ss:$8 sps:$4 sm:$0xff]   ;;  %v6396_v34 = vld [vmem:[#allocation9 + $0x200] ss:$8 sps:$4 sm:$0xff]  }
 0x31f   : > { %4075 = vmatprep.subr.bf16.mxu1 %v5795_v35  ;;  %v1470_v35 = vld [vmem:[#allocation6 + $0xbd8] sm:$0xff] }
 0x320   : > { %v5866_v48 = vcombine.low %v1470_v35, %v1474_v50 }
 0x321   : > { %4940 = vmatpush1.bf16.msra.mxu0 %v6327_v39  ;;  %v6356_v39 = vld [vmem:[#allocation9 + $0x124] ss:$8 sps:$4 sm:$0xff]  }
 0x322   : > { %4076 = vmatpush1.bf16.msra.mxu1 %v5794_v13  ;;  %4941 = vmatprep.subr.bf16.mxu0 %v6332_v44  ;;  %v5867_v13 = vcombine.high %v1470_v35, %v1474_v50  ;;  %v1478_v44 = vld [vmem:[#allocation6 + $0xc18] sm:$0xff]  ;;  %v6410_v50 = vld [vmem:[#allocation9 + $0x244] ss:$8 sps:$4 sm:$0xff]  }
 0x323   : > { %4077 = vmatprep.subr.bf16.mxu1 %v5803_v45  ;;  %v1482_v45 = vld [vmem:[#allocation6 + $0xc38] sm:$0xff] }
 0x324   : > { %v6405_v35 = vld [vmem:[#allocation9 + $0x230] ss:$8 sps:$4 sm:$0xff]  }
 0x325   : > { %4942 = vmatpush1.bf16.msra.mxu0 %v6330_v49  ;;  %v6359_v49 = vld [vmem:[#allocation9 + $0x134] ss:$8 sps:$4 sm:$0xff]  }
 0x326   : > { %4078 = vmatpush1.bf16.msra.mxu1 %v5802_v51  ;;  %4943 = vmatprep.subr.bf16.mxu0 %v6335_v56  ;;  %v5875_v51 = vcombine.high %v1478_v44, %v1482_v45  ;;  %v6357_v56 = vld [vmem:[#allocation9 + $0x130] ss:$8 sps:$4 sm:$0xff]  }
 0x327   : > { %4079 = vmatprep.subr.bf16.mxu1 %v5811_v52  ;;  %v5874_v52 = vcombine.low %v1478_v44, %v1482_v45  ;;  %v6414_v44 = vld [vmem:[#allocation9 + $0x260] ss:$8 sps:$4 sm:$0xff]   ;;  %v6419_v45 = vld [vmem:[#allocation9 + $0x274] ss:$8 sps:$4 sm:$0xff]  }
 0x329   : > { %4944 = vmatpush1.bf16.msra.mxu0 %v6333_v0  ;;  %v6365_v0 = vld [vmem:[#allocation9 + $0x154] ss:$8 sps:$4 sm:$0xff]  }
 0x32a   : > { %4080 = vmatpush1.bf16.msra.mxu1 %v5810_v2  ;;  %4945 = vmatprep.subr.bf16.mxu0 %v6338_v26  ;;  %v6363_v2 = vld [vmem:[#allocation9 + $0x150] ss:$8 sps:$4 sm:$0xff]   ;;  %v6368_v26 = vld [vmem:[#allocation9 + $0x164] ss:$8 sps:$4 sm:$0xff]  }
 0x32b   : > { %4081 = vmatprep.subr.bf16.mxu1 %v5819_v57  ;;  %v6366_v57 = vld [vmem:[#allocation9 + $0x160] ss:$8 sps:$4 sm:$0xff]  }
 0x32d   : > { %4946 = vmatpush1.bf16.msra.mxu0 %v6336_v59  ;;  %v6372_v59 = vld [vmem:[#allocation9 + $0x180] ss:$8 sps:$4 sm:$0xff]  }
 0x32e   : > { %4082 = vmatpush1.bf16.msra.mxu1 %v5818_v42  ;;  %4947 = vmatprep.subr.bf16.mxu0 %v6341_v60  ;;  %v6377_v42 = vld [vmem:[#allocation9 + $0x194] ss:$8 sps:$4 sm:$0xff]  }
 0x32f   : > { %4083 = vmatprep.subr.bf16.mxu1 %v5827_v61 }
 0x331   : > { %4948 = vmatpush1.bf16.msra.mxu0 %v6339_v4 }
 0x332   : > { %4084 = vmatpush1.bf16.msra.mxu1 %v5826_v55  ;;  %4949 = vmatprep.subr.bf16.mxu0 %v6344_v5 }
 0x333   : > { %4085 = vmatprep.subr.bf16.mxu1 %v5835_v3  ;;  %v6378_v3 = vld [vmem:[#allocation9 + $0x1a0] ss:$8 sps:$4 sm:$0xff]  }
 0x335   : > { %4950 = vmatpush1.bf16.msra.mxu0 %v6342_v63  ;;  %v6381_v63 = vld [vmem:[#allocation9 + $0x1b0] ss:$8 sps:$4 sm:$0xff]  }
 0x336   : > { %4086 = vmatpush1.bf16.msra.mxu1 %v5834_v11  ;;  %4951 = vmatprep.subr.bf16.mxu0 %v6347_v12  ;;  %v6384_v11 = vld [vmem:[#allocation9 + $0x1c0] ss:$8 sps:$4 sm:$0xff]   ;;  %v6389_v12 = vld [vmem:[#allocation9 + $0x1d4] ss:$8 sps:$4 sm:$0xff]  }
 0x337   : > { %4087 = vmatprep.subr.bf16.mxu1 %v5843_v9  ;;  %v6387_v9 = vld [vmem:[#allocation9 + $0x1d0] ss:$8 sps:$4 sm:$0xff]  }
 0x339   : > { %4952 = vmatpush1.bf16.msra.mxu0 %v6345_v16  ;;  %v6390_v16 = vld [vmem:[#allocation9 + $0x1e0] ss:$8 sps:$4 sm:$0xff]  }
 0x33a   : > { %4088 = vmatpush1.bf16.msra.mxu1 %v5842_v18  ;;  %4962 = vmatprep.subr.bf16.mxu0 %v6350_v19  ;;  %v6395_v18 = vld [vmem:[#allocation9 + $0x1f4] ss:$8 sps:$4 sm:$0xff]   ;;  %v6393_v19 = vld [vmem:[#allocation9 + $0x1f0] ss:$8 sps:$4 sm:$0xff]  }
 0x33b   : > { %4089 = vmatprep.subr.bf16.mxu1 %v5851_v27 }
 0x33c   : > { %4954 = vmatmul.mubr.bf16.vlgmr.msra.gmra.mrb[12].mxu0 %v4153_v23  ;;  %v6401_v23 = vld [vmem:[#allocation9 + $0x214] ss:$8 sps:$4 sm:$0xff]  }
 0x33d   : > { %4963 = vmatpush1.bf16.msra.mxu0 %v6348_v21 }
 0x33e   : > { %4090 = vmatpush1.bf16.msra.mxu1 %v5850_v29  ;;  %4964 = vmatprep.subr.bf16.mxu0 %v6353_v32  ;;  %v6404_v29 = vld [vmem:[#allocation9 + $0x224] ss:$8 sps:$4 sm:$0xff]   ;;  %v6402_v32 = vld [vmem:[#allocation9 + $0x220] ss:$8 sps:$4 sm:$0xff]  }
 0x33f   : > { %4091 = vmatprep.subr.bf16.mxu1 %v5859_v33  ;;  %v6407_v33 = vld [vmem:[#allocation9 + $0x234] ss:$8 sps:$4 sm:$0xff]  }
 0x341   : > { %4965 = vmatpush1.bf16.msra.mxu0 %v6351_v36  ;;  %v6408_v36 = vld [vmem:[#allocation9 + $0x240] ss:$8 sps:$4 sm:$0xff]  }
 0x342   : > { %4092 = vmatpush1.bf16.msra.mxu1 %v5858_v10  ;;  %4966 = vmatprep.subr.bf16.mxu0 %v6356_v39  ;;  %v6413_v10 = vld [vmem:[#allocation9 + $0x254] ss:$8 sps:$4 sm:$0xff]   ;;  %v6411_v39 = vld [vmem:[#allocation9 + $0x250] ss:$8 sps:$4 sm:$0xff]  }
 0x343   : > { %4093 = vmatprep.subr.bf16.mxu1 %v5867_v13  ;;  %v6416_v13 = vld [vmem:[#allocation9 + $0x264] ss:$8 sps:$4 sm:$0xff]  }
 0x345   : > { %4967 = vmatpush1.bf16.msra.mxu0 %v6354_v46  ;;  %v6417_v46 = vld [vmem:[#allocation9 + $0x270] ss:$8 sps:$4 sm:$0xff]  }
 0x346   : > { %4094 = vmatpush1.bf16.msra.mxu1 %v5866_v48  ;;  %4968 = vmatprep.subr.bf16.mxu0 %v6359_v49  ;;  %v6422_v48 = vld [vmem:[#allocation9 + $0x284] ss:$8 sps:$4 sm:$0xff]   ;;  %v6420_v49 = vld [vmem:[#allocation9 + $0x280] ss:$8 sps:$4 sm:$0xff]  }
 0x347   : > { %4104 = vmatprep.subr.bf16.mxu1 %v5875_v51  ;;  %v6425_v51 = vld [vmem:[#allocation9 + $0x294] ss:$8 sps:$4 sm:$0xff]  }
 0x349   : > { %4096 = vmatmul.mubr.bf16.vlgmr.msra.gmra.mrb[20].mxu1 %v7112_v47  ;;  %4969 = vmatpush1.bf16.msra.mxu0 %v6357_v56  ;;  %v6369_v47 = vld [vmem:[#allocation9 + $0x170] ss:$8 sps:$4 sm:$0xff]  }
 0x34a   : > { %4105 = vmatpush1.bf16.msra.mxu1 %v5874_v52  ;;  %4970 = vmatprep.subr.bf16.mxu0 %v6362_v53  ;;  %v6423_v56 = vld [vmem:[#allocation9 + $0x290] ss:$8 sps:$4 sm:$0xff]   ;;  %v6428_v52 = vld [vmem:[#allocation9 + $0x2a4] ss:$8 sps:$4 sm:$0xff]   ;;  %v6426_v53 = vld [vmem:[#allocation9 + $0x2a0] ss:$8 sps:$4 sm:$0xff]  }
 0x34b   : > { %4136 = vmatprep.mubr.bf16.mxu1 %v6735_v31  ;;  %v1500_v31 = vrot.slane %v7144_v20, %v522_v30  ;;  %v6386_v30 = vld [vmem:[#allocation9 + $0x1c4] ss:$8 sps:$4 sm:$0xff]  }
 0x34d   : > { %4971 = vmatpush1.bf16.msra.mxu0 %v6360_v54  ;;  %v6431_v54 = vld [vmem:[#allocation9 + $0x2b4] ss:$8 sps:$4 sm:$0xff]  }
 0x34e   : > { %4972 = vmatprep.subr.bf16.mxu0 %v6365_v0  ;;  %v6429_v0 = vld [vmem:[#allocation9 + $0x2b0] ss:$8 sps:$4 sm:$0xff]  }
 0x351   : > { %4973 = vmatpush1.bf16.msra.mxu0 %v6363_v2  ;;  %v6434_v2 = vld [vmem:[#allocation9 + $0x2c4] ss:$8 sps:$4 sm:$0xff]  }
 0x352   : > { %4974 = vmatprep.subr.bf16.mxu0 %v6368_v26  ;;  %v6432_v26 = vld [vmem:[#allocation9 + $0x2c0] ss:$8 sps:$4 sm:$0xff]  }
 0x355   : > { %5879 = vmatmul.mubr.msk.bf16.vlgmr.msra.gmra.mrb[20].mxu1 %vm3485_vm3, %v7120_v7  ;;  %4975 = vmatpush1.bf16.msra.mxu0 %v6366_v57  ;;  %v6380_v7 = vld [vmem:[#allocation9 + $0x1a4] ss:$8 sps:$4 sm:$0xff]   ;;  %v6437_v57 = vld [vmem:[#allocation9 + $0x2d4] ss:$8 sps:$4 sm:$0xff]  }
 0x356   : > { %4976 = vmatprep.subr.bf16.mxu0 %v6371_v58  ;;  %v6435_v58 = vld [vmem:[#allocation9 + $0x2d0] ss:$8 sps:$4 sm:$0xff]  }
 0x359   : > { %4977 = vmatpush1.bf16.msra.mxu0 %v6369_v47  ;;  %v6440_v47 = vld [vmem:[#allocation9 + $0x2e4] ss:$8 sps:$4 sm:$0xff]  }
 0x35a   : > { %4978 = vmatprep.subr.bf16.mxu0 %v6374_v22  ;;  %v6438_v22 = vld [vmem:[#allocation9 + $0x2e0] ss:$8 sps:$4 sm:$0xff]  }
 0x35c   : > { %v3810_v60 = vpop.f32.mrb[16].mxu1 }
 0x35d   : > { %4979 = vmatpush1.bf16.msra.mxu0 %v6372_v59  ;;  %v3812_v61 = vpop.f32.mrb[17].mxu1  ;;  %v6052_v17 = vadd.f32 %v3810_v60, %v1496_v14  ;;  %v6485_v59 = vld [vmem:[%s7246_s7 + $0x40] sm:$0xff]  }
 0x35e   : > { %v6053_v1 = vadd.f32 %v3812_v61, %v1500_v31  ;;  %v3814_v4 = vpop.f32.mrb[18].mxu1  ;;  %4980 = vmatprep.subr.bf16.mxu0 %v6377_v42  ;;  %v6486_v31 = vld [vmem:[%s7246_s7] sm:$0xff]   ;;  %v6487_v42 = vld [vmem:[%s7246_s7 + $0x48] sm:$0xff]   ;;  %6026 = vmatprep.subr.bf16.mxu1 %v6485_v59 }
 0x35f   : > { %v3815_v55 = vpop.f32.mrb[19].mxu1  ;;  %v4147_v27 = vmax.f32 %v6052_v17, 0.0  ;;  %v6443_v60 = vld [vmem:[#allocation9 + $0x2f4] ss:$8 sps:$4 sm:$0xff]   ;;  %6027 = vmatpush3.bf16.msra.mxu1 %v6486_v31  ;;  %v6488_v61 = vld [vmem:[%s7246_s7 + $0x8] sm:$0xff]  }
 0x360   : > { %v4148_v5 = vmax.f32 %v6053_v1, 0.0  ;;  %6028 = vmatprep.subr.bf16.mxu1 %v6487_v42  ;;  %v6489_v1 = vld [vmem:[%s7246_s7 + $0x50] sm:$0xff]   ;;  %v6491_v55 = vld [vmem:[%s7246_s7 + $0x58] sm:$0xff]  }
 0x361   : > { %4981 = vmatpush1.bf16.msra.mxu0 %v6375_v62  ;;  %v4155_v21 = vpack.c.bf16 %v4147_v27, %v4147_v27  ;;  %v6441_v62 = vld [vmem:[#allocation9 + $0x2f0] ss:$8 sps:$4 sm:$0xff]   ;;  %v6446_v4 = vld [vmem:[#allocation9 + $0x304] ss:$8 sps:$4 sm:$0xff]  }
 0x362   : > { %v4156_v6 = vpack.c.bf16 %v4148_v5, %v4148_v5  ;;  %4982 = vmatprep.subr.bf16.mxu0 %v6380_v7  ;;  %v6490_v7 = vld [vmem:[%s7246_s7 + $0x10] sm:$0xff]   ;;  %v6492_v5 = vld [vmem:[%s7246_s7 + $0x18] sm:$0xff]  }
 0x363   : > { %6029 = vmatpush3.bf16.msra.mxu1 %v6488_v61 }
 0x364   : > { %4994 = vmatprep.mubr.bf16.mxu0 %v4156_v6  ;;  %6030 = vmatprep.subr.bf16.mxu1 %v6489_v1  ;;  %v6494_v6 = vld [vmem:[%s7246_s7 + $0x20] sm:$0xff]  }
 0x365   : > { %4983 = vmatpush1.bf16.msra.mxu0 %v6378_v3  ;;  %v6493_v3 = vld [vmem:[%s7246_s7 + $0x60] sm:$0xff]  }
 0x366   : > { %4984 = vmatprep.subr.bf16.mxu0 %v6383_v8  ;;  %v6495_v8 = vld [vmem:[%s7246_s7 + $0x68] sm:$0xff]  }
 0x367   : > { %6031 = vmatpush3.bf16.msra.mxu1 %v6490_v7 }
 0x368   : > { %6032 = vmatprep.subr.bf16.mxu1 %v6491_v55 }
 0x369   : > { %4985 = vmatpush1.bf16.msra.mxu0 %v6381_v63  ;;  %v6496_v63 = vld [vmem:[%s7246_s7 + $0x28] sm:$0xff]  }
 0x36a   : > { %4986 = vmatprep.subr.bf16.mxu0 %v6386_v30  ;;  %v1504_v30 = vrot.slane %v7144_v20, %v526_v38  ;;  %v6447_v38 = vld [vmem:[#allocation9 + $0x310] ss:$8 sps:$4 sm:$0xff]  }
 0x36b   : > { %6033 = vmatpush3.bf16.msra.mxu1 %v6492_v5  ;;  %v6500_v5 = vld [vmem:[%s7246_s7 + $0x38] sm:$0xff]  }
 0x36c   : > { %6034 = vmatprep.subr.bf16.mxu1 %v6493_v3  ;;  %v4284_v3 = vld [vmem:[#allocation10] sm:$0x3] }
 0x36d   : > { %4987 = vmatpush1.bf16.msra.mxu0 %v6384_v11  ;;  %v1508_v11 = vrot.slane %v7144_v20, %v530_v24  ;;  %v6450_v24 = vld [vmem:[#allocation9 + $0x320] ss:$8 sps:$4 sm:$0xff]  }
 0x36e   : > { %4988 = vmatprep.subr.bf16.mxu0 %v6389_v12 }
 0x36f   : > { %6035 = vmatpush3.bf16.msra.mxu1 %v6494_v6  ;;  %v4289_v6 = vrot.slane %v4284_v3, %v7055_v41 }
 0x370   : > { %6036 = vmatprep.subr.bf16.mxu1 %v6495_v8  ;;  %v4293_v8 = vrot.slane %v4284_v3, %v7060_v43 }
 0x371   : > { %4989 = vmatpush1.bf16.msra.mxu0 %v6387_v9 }
 0x372   : > { %4990 = vmatprep.subr.bf16.mxu0 %v6392_v15 }
 0x373   : > { %6037 = vmatpush3.bf16.msra.mxu1 %v6496_v63 }
 0x375   : > { %4991 = vmatpush1.bf16.msra.mxu0 %v6390_v16 }
 0x376   : > { %4992 = vmatprep.subr.bf16.mxu0 %v6395_v18 }
 0x379   : > { %4993 = vmatpush1.bf16.msra.mxu0 %v6393_v19 }
 0x37a   : > { %5003 = vmatprep.subr.bf16.mxu0 %v6398_v28  ;;  %v6444_v28 = vld [vmem:[#allocation9 + $0x300] ss:$8 sps:$4 sm:$0xff]  }
 0x37c   : > { %4995 = vmatmul.mubr.bf16.vlgmr.msra.gmra.mrb[12].mxu0 %v4155_v21  ;;  %v6449_v21 = vld [vmem:[#allocation9 + $0x314] ss:$8 sps:$4 sm:$0xff]  }
 0x37d   : > { %5004 = vmatpush1.bf16.msra.mxu0 %v6396_v34 }
 0x37e   : > { %5005 = vmatprep.subr.bf16.mxu0 %v6401_v23  ;;  %v6452_v23 = vld [vmem:[#allocation9 + $0x324] ss:$8 sps:$4 sm:$0xff]  }
 0x381   : > { %5006 = vmatpush1.bf16.msra.mxu0 %v6399_v25  ;;  %v6455_v25 = vld [vmem:[#allocation9 + $0x334] ss:$8 sps:$4 sm:$0xff]  }
 0x382   : > { %5007 = vmatprep.subr.bf16.mxu0 %v6404_v29  ;;  %v6453_v29 = vld [vmem:[#allocation9 + $0x330] ss:$8 sps:$4 sm:$0xff]  }
 0x385   : > { %5008 = vmatpush1.bf16.msra.mxu0 %v6402_v32  ;;  %v6458_v32 = vld [vmem:[#allocation9 + $0x344] ss:$8 sps:$4 sm:$0xff]  }
 0x386   : > { %5009 = vmatprep.subr.bf16.mxu0 %v6407_v33  ;;  %v6456_v33 = vld [vmem:[#allocation9 + $0x340] ss:$8 sps:$4 sm:$0xff]  }
 0x389   : > { %5010 = vmatpush1.bf16.msra.mxu0 %v6405_v35  ;;  %v6461_v35 = vld [vmem:[#allocation9 + $0x354] ss:$8 sps:$4 sm:$0xff]  }
 0x38a   : > { %5011 = vmatprep.subr.bf16.mxu0 %v6410_v50  ;;  %v6459_v50 = vld [vmem:[#allocation9 + $0x350] ss:$8 sps:$4 sm:$0xff]  }
 0x38d   : > { %5012 = vmatpush1.bf16.msra.mxu0 %v6408_v36  ;;  %v6464_v36 = vld [vmem:[#allocation9 + $0x364] ss:$8 sps:$4 sm:$0xff]  }
 0x38e   : > { %5013 = vmatprep.subr.bf16.mxu0 %v6413_v10  ;;  %v6462_v10 = vld [vmem:[#allocation9 + $0x360] ss:$8 sps:$4 sm:$0xff]  }
 0x391   : > { %5014 = vmatpush1.bf16.msra.mxu0 %v6411_v39  ;;  %v6467_v39 = vld [vmem:[#allocation9 + $0x374] ss:$8 sps:$4 sm:$0xff]  }
 0x392   : > { %5015 = vmatprep.subr.bf16.mxu0 %v6416_v13  ;;  %v6465_v13 = vld [vmem:[#allocation9 + $0x370] ss:$8 sps:$4 sm:$0xff]  }
 0x395   : > { %5016 = vmatpush1.bf16.msra.mxu0 %v6414_v44  ;;  %v6470_v44 = vld [vmem:[#allocation9 + $0x384] ss:$8 sps:$4 sm:$0xff]  }
 0x396   : > { %5017 = vmatprep.subr.bf16.mxu0 %v6419_v45  ;;  %v6468_v45 = vld [vmem:[#allocation9 + $0x380] ss:$8 sps:$4 sm:$0xff]  }
 0x399   : > { %5018 = vmatpush1.bf16.msra.mxu0 %v6417_v46  ;;  %v6473_v46 = vld [vmem:[#allocation9 + $0x394] ss:$8 sps:$4 sm:$0xff]  }
 0x39a   : > { %5019 = vmatprep.subr.bf16.mxu0 %v6422_v48  ;;  %v6471_v48 = vld [vmem:[#allocation9 + $0x390] ss:$8 sps:$4 sm:$0xff]  }
 0x39d   : > { %5020 = vmatpush1.bf16.msra.mxu0 %v6420_v49  ;;  %v6476_v49 = vld [vmem:[#allocation9 + $0x3a4] ss:$8 sps:$4 sm:$0xff]  }
 0x39e   : > { %5021 = vmatprep.subr.bf16.mxu0 %v6425_v51  ;;  %v6474_v51 = vld [vmem:[#allocation9 + $0x3a0] ss:$8 sps:$4 sm:$0xff]  }
 0x3a1   : > { %5022 = vmatpush1.bf16.msra.mxu0 %v6423_v56  ;;  %v6479_v56 = vld [vmem:[#allocation9 + $0x3b4] ss:$8 sps:$4 sm:$0xff]  }
 0x3a2   : > { %5023 = vmatprep.subr.bf16.mxu0 %v6428_v52  ;;  %v6477_v52 = vld [vmem:[#allocation9 + $0x3b0] ss:$8 sps:$4 sm:$0xff]  }
 0x3a5   : > { %5024 = vmatpush1.bf16.msra.mxu0 %v6426_v53  ;;  %v6482_v53 = vld [vmem:[#allocation9 + $0x3c4] ss:$8 sps:$4 sm:$0xff]  }
 0x3a6   : > { %5025 = vmatprep.subr.bf16.mxu0 %v6431_v54  ;;  %v4283_v54 = vld [vmem:[#allocation9 + $0x3d0] sm:$0x33] }
 0x3a9   : > { %5026 = vmatpush1.bf16.msra.mxu0 %v6429_v0  ;;  %v6480_v0 = vld [vmem:[#allocation9 + $0x3c0] ss:$8 sps:$4 sm:$0xff]  }
 0x3aa   : > { %5027 = vmatprep.subr.bf16.mxu0 %v6434_v2  ;;  %v6003_v2 = vcombine.high %v4283_v54, %v4283_v54 }
 0x3ad   : > { %5028 = vmatpush1.bf16.msra.mxu0 %v6432_v26  ;;  %v6002_v26 = vcombine.low %v4283_v54, %v4283_v54 }
 0x3ae   : > { %5029 = vmatprep.subr.bf16.mxu0 %v6437_v57 }
 0x3af   : > { %v4916_v57 = vsel %vm890_vm2, %v6002_v26, 0 }
 0x3b1   : > { %5030 = vmatpush1.bf16.msra.mxu0 %v6435_v58  ;;  %v1515_v58 = vsub.s32 7, %v7052_v40  ;;  %v6497_v40 = vld [vmem:[%s7246_s7 + $0x70] sm:$0xff]  }
 0x3b2   : > { %5031 = vmatprep.subr.bf16.mxu0 %v6440_v47  ;;  %v1512_v47 = vrot.slane %v7144_v20, %v534_v37  ;;  %v6498_v37 = vld [vmem:[%s7246_s7 + $0x30] sm:$0xff]   ;;  %6038 = vmatprep.subr.bf16.mxu1 %v6497_v40 }
 0x3b3   : > { %6039 = vmatpush3.bf16.msra.mxu1 %v6498_v37 }
 0x3b5   : > { %5032 = vmatpush1.bf16.msra.mxu0 %v6438_v22  ;;  %v1516_v22 = vrot.slane %v7144_v20, %v1515_v58  ;;  %v6499_v20 = vld [vmem:[%s7246_s7 + $0x78] sm:$0xff]  }
 0x3b6   : > { %5033 = vmatprep.subr.bf16.mxu0 %v6443_v60  ;;  %6040 = vmatprep.subr.bf16.mxu1 %v6499_v20 }
 0x3b7   : > { %6041 = vmatpush3.bf16.msra.mxu1 %v6500_v5 }
 0x3b9   : > { %5034 = vmatpush1.bf16.msra.mxu0 %v6441_v62 }
 0x3ba   : > { %5044 = vmatprep.subr.bf16.mxu0 %v6446_v4 }
 0x3cf   : > { %v3974_v12 = vpop.f32.mrb[8].mxu0 }
 0x3d0   : > { %v6054_v9 = vadd.f32 %v3974_v12, %v1504_v30  ;;  %v3976_v14 = vpop.f32.mrb[9].mxu0 }
 0x3d1   : > { %v6055_v15 = vadd.f32 %v3976_v14, %v1508_v11  ;;  %v3978_v16 = vpop.f32.mrb[10].mxu0 }
 0x3d2   : > { %v4149_v17 = vmax.f32 %v6054_v9, 0.0  ;;  %v3979_v18 = vpop.f32.mrb[11].mxu0 }
 0x3d3   : > { %v4150_v19 = vmax.f32 %v6055_v15, 0.0 }
 0x3d4   : > { %v4157_v34 = vpack.c.bf16 %v4149_v17, %v4149_v17 }
 0x3d5   : > { %v4158_v27 = vpack.c.bf16 %v4150_v19, %v4150_v19 }
 0x3d7   : > { %5035 = vmatprep.mubr.bf16.mxu0 %v4158_v27  ;;  %v6006_v27 = vld [vmem:[#allocation12] ss:$0 sm:$0xff] }
 0x3d8   : > { %5036 = vmatmul.mubr.bf16.vlgmr.msra.gmra.mrb[12].mxu0 %v4157_v34 }
 0x3d9   : > { %5045 = vmatpush1.bf16.msra.mxu0 %v6444_v28 }
 0x3da   : > { %5046 = vmatprep.subr.bf16.mxu0 %v6449_v21 }
 0x3dd   : > { %5047 = vmatpush1.bf16.msra.mxu0 %v6447_v38 }
 0x3de   : > { %5048 = vmatprep.subr.bf16.mxu0 %v6452_v23 }
 0x3e1   : > { %5049 = vmatpush1.bf16.msra.mxu0 %v6450_v24 }
 0x3e2   : > { %5050 = vmatprep.subr.bf16.mxu0 %v6455_v25 }
 0x3e5   : > { %5051 = vmatpush1.bf16.msra.mxu0 %v6453_v29 }
 0x3e6   : > { %5052 = vmatprep.subr.bf16.mxu0 %v6458_v32 }
 0x3e9   : > { %5053 = vmatpush1.bf16.msra.mxu0 %v6456_v33 }
 0x3ea   : > { %5054 = vmatprep.subr.bf16.mxu0 %v6461_v35 }
 0x3ed   : > { %5055 = vmatpush1.bf16.msra.mxu0 %v6459_v50 }
 0x3ee   : > { %5056 = vmatprep.subr.bf16.mxu0 %v6464_v36 }
 0x3f1   : > { %5057 = vmatpush1.bf16.msra.mxu0 %v6462_v10 }
 0x3f2   : > { %5058 = vmatprep.subr.bf16.mxu0 %v6467_v39 }
 0x3f5   : > { %5059 = vmatpush1.bf16.msra.mxu0 %v6465_v13 }
 0x3f6   : > { %5060 = vmatprep.subr.bf16.mxu0 %v6470_v44 }
 0x3f9   : > { %5061 = vmatpush1.bf16.msra.mxu0 %v6468_v45 }
 0x3fa   : > { %5062 = vmatprep.subr.bf16.mxu0 %v6473_v46 }
 0x3fd   : > { %5063 = vmatpush1.bf16.msra.mxu0 %v6471_v48 }
 0x3fe   : > { %5064 = vmatprep.subr.bf16.mxu0 %v6476_v49 }
 0x401   : > { %5065 = vmatpush1.bf16.msra.mxu0 %v6474_v51 }
 0x402   : > { %5066 = vmatprep.subr.bf16.mxu0 %v6479_v56 }
 0x405   : > { %5067 = vmatpush1.bf16.msra.mxu0 %v6477_v52 }
 0x406   : > { %5068 = vmatprep.subr.bf16.mxu0 %v6482_v53 }
 0x409   : > { %5069 = vmatpush1.bf16.msra.mxu0 %v6480_v0 }
 0x40a   : > { %6004 = vmatprep.subr.msk.bf16.mxu0 %vm890_vm2, %v6003_v2 }
 0x40d   : > { %5071 = vmatpush1.bf16.msra.mxu0 %v4916_v57 }
 0x428   : > { %v4138_v59 = vpop.f32.mrb[20].mxu1 }
 0x429   : > { %v6056_v31 = vadd.f32 %v4138_v59, %v1512_v47  ;;  %v4140_v42 = vpop.f32.mrb[21].mxu1 }
 0x42a   : > { %v6057_v60 = vadd.f32 %v4140_v42, %v1516_v22  ;;  %v4142_v61 = vpop.f32.mrb[22].mxu1 }
 0x42b   : > { %v4151_v62 = vmax.f32 %v6056_v31, 0.0  ;;  %v4143_v1 = vpop.f32.mrb[23].mxu1 }
 0x42c   : > { %v4152_v4 = vmax.f32 %v6057_v60, 0.0 }
 0x42d   : > { %v4159_v55 = vpack.c.bf16 %v4151_v62, %v4151_v62 }
 0x42e   : > { %v4160_v7 = vpack.c.bf16 %v4152_v4, %v4152_v4 }
 0x430   : > { %6005 = vmatprep.mubr.msk.bf16.mxu0 %vm4911_vm4, %v4160_v7 }
 0x431   : > { %5077 = vmatmul.mubr.bf16.vlgmr.msra.gmra.mrb[12].mxu0 %v4159_v55 }
 0x504   : > { %v5078_v63 = vpop.f32.mrb[12].mxu0 }
 0x505   : > { %v6058_v30 = vadd.f32 %v5078_v63, %v4289_v6  ;;  %v5080_v11 = vpop.f32.mrb[13].mxu0 }
 0x506   : > { %v6059_v12 = vadd.f32 %v5080_v11, %v4293_v8  ;;  %v5082_v9 = vpop.f32.mrb[14].mxu0 }
 0x507   : > { %v5085_v14 = vmax.f32 %v6058_v30, 0.0  ;;  %v5083_v15 = vpop.f32.mrb[15].mxu0 }
 0x508   : > { %v5086_v16 = vmax.f32 %v6059_v12, 0.0 }
 0x509   : > { %v5087_v18 = vpack.c.bf16 %v5085_v14, %v5085_v14 }
 0x50a   : > { %v5088_v17 = vpack.c.bf16 %v5086_v16, %v5086_v16 }
 0x50c   : > { %5256 = vmatprep.mubr.bf16.mxu1 %v5088_v17 }
 0x50d   : > { %5257 = vmatmul.mubr.bf16.vlgmr.msra.gmra.mrb[24].mxu1 %v5087_v18 }
 0x5e0   : > { %v6042_v19 = vpop.f32.mrb[24].mxu1 }
 0x5e1   : > { %v6043_v28 = vpop.f32.mrb[25].mxu1 }
 0x5e2   : > { %v6044_v34 = vadd.f32 %v6043_v28, %v6042_v19  ;;  %v6045_v41 = vpop.f32.mrb[26].mxu1 }
 0x5e3   : > { %v6046_v43 = vpop.f32.mrb[27].mxu1 }
 0x5e4   : > { %v5259_v21 = vadd.f32 %v6044_v34, %v6006_v27 }
 0x5e6   : > { %5265 = vst.msk [vmem:[%s424_s18] sm:$0xff] %vm5264_vm5, %v5259_v21 }
 0x5e7 PF: > { %s23_s30 = sadd.s32 1, %s6719_s30  }
 0x5e8   : > { %p20_p11 = scmp.ge.s32.totalorder %s23_s30, 5  }
 0x5ea   :  { %22 = sbr.rel (!%p20_p11) target bundleno = 4 (0x4), region = 115 }
 0x5f1   :  { %5285 = vsyncpa [#allocation3], 1 }
 0x5f2   :  { %5287 = vsyncpa [#allocation3 + $0x1], 1 }
 0x5f3   :  { %5288 = vsyncpa [#allocation5], 1 }
 0x5f4   :  { %5289 = vsyncpa [#allocation8], 1 }
 0x5f5   :  { %5290 = vsyncpa [#allocation11], 1 }

</bundles_post_ra>
